<compile_context>
chip_gen: v7x
topology: tpu7x:2x2x1
jax: 0.10.0
libtpu: 0.0.40
codegen_flags: <defaults>
</compile_context>

<pallas_src>
import functools

import numpy as np
import jax
import jax.numpy as jnp
from jax.experimental import pallas as pl
from jax.experimental.pallas import tpu as pltpu


def make_wki_kernel(hidden_size: int, num_layers: int, num_classes: int):
    H, L, C = hidden_size, num_layers, num_classes
    T = H          # LSTM sequence length == hidden_size (see forward analysis)
    G = 4 * H      # gate row width (i|f|g|o)

    def kernel(*refs):
        # ---- unpack refs (static layout; L is a Python constant) ----
        x_ref, w1_ref, b1_ref = refs[0], refs[1], refs[2]
        layer_refs = refs[3:3 + 3 * L]                     # (wih, whh, b) per layer
        w2_ref, b2_ref, w3_ref, b3_ref = refs[3 + 3 * L:3 + 3 * L + 4]
        out_ref = refs[3 + 3 * L + 4]
        gates_ref, hseq_ref = refs[3 + 3 * L + 5], refs[3 + 3 * L + 6]

        # ---- fc_1_1, produced directly as a column: (H,60)@(60,1)+(H,1) ----
        fc_col = (
            jnp.dot(w1_ref[...], x_ref[...], preferred_element_type=jnp.float32)
            + b1_ref[...]
        )  # (H, 1) == LSTM layer-0 input sequence (seq=H, input_dim=1)

        h = jnp.zeros((1, H), jnp.float32)   # final hidden state of last layer

        for l in range(L):
            wih_ref = layer_refs[3 * l]      # layer 0: (1,4H); layer>0: (H,4H)
            whh_ref = layer_refs[3 * l + 1]  # (H, 4H)
            b_ref = layer_refs[3 * l + 2]    # (1, 4H)  (= b_ih + b_hh)

            # Precompute every timestep's input contribution (cuDNN trick).
            if l == 0:
                # outer product (H,1)*(1,4H) -> (H,4H) on the VPU
                gates_ref[...] = fc_col * wih_ref[...] + b_ref[...]
            else:
                # hseq (T,H) @ wih (H,4H) on the MXU, one shot for all steps
                gates_ref[...] = (
                    jnp.dot(hseq_ref[...], wih_ref[...],
                            preferred_element_type=jnp.float32)
                    + b_ref[...]
                )

            whh = whh_ref[...]               # (H, 4H), loop-invariant
            last = (l == L - 1)

            h = jnp.zeros((1, H), jnp.float32)
            c = jnp.zeros((1, H), jnp.float32)

            # Fully unrolled time loop: static addresses, h/c stay in vregs.
            for t in range(T):
                g_row = gates_ref[pl.ds(t, 1), :] + jnp.dot(
                    h, whh, preferred_element_type=jnp.float32)      # (1, 4H)
                # One full-row sigmoid (covers i, f, o) + one tanh for g.
                sig = jax.nn.sigmoid(g_row)                           # (1, 4H)
                i_g = sig[:, 0:H]
                f_g = sig[:, H:2 * H]
                o_g = sig[:, 3 * H:4 * H]
                g_g = jnp.tanh(g_row[:, 2 * H:3 * H])
                c = f_g * c + i_g * g_g                               # (1, H)
                h = o_g * jnp.tanh(c)                                 # (1, H)
                if not last:
                    # handoff to the next layer; skipped entirely for last layer
                    hseq_ref[pl.ds(t, 1), :] = h

        # ---- fc_1_2 + ReLU ----
        z = jnp.dot(h, w2_ref[...], preferred_element_type=jnp.float32) + b2_ref[...]
        z = jnp.maximum(z, 0.0)
        # dropout(p=0.25): identity in eval mode.
        # ---- fc_1_3 + sigmoid ----
        z = jnp.dot(z, w3_ref[...], preferred_element_type=jnp.float32) + b3_ref[...]
        out_ref[...] = jax.nn.sigmoid(z)

    return kernel


@functools.partial(jax.jit, static_argnames=("hidden_size", "num_layers", "num_classes"))
def wki_forward(x, params, *, hidden_size, num_layers, num_classes):
    H, L, C = hidden_size, num_layers, num_classes
    T, G = H, 4 * H

    inputs = [x.reshape(60, 1).astype(jnp.float32), params["w1"], params["b1"]]
    for (wih, whh, b) in params["lstm"]:
        inputs += [wih, whh, b]
    inputs += [params["w2"], params["b2"], params["w3"], params["b3"]]

    kernel = make_wki_kernel(H, L, C)

    flops = 2 * (H * 60                       # fc_1_1
                 + (L - 1) * T * H * G        # layer>0 gate precompute
                 + L * T * H * G              # recurrent h@Whh over T steps
                 + H * 20 + 20 * C)           # fc_1_2, fc_1_3
    transcendentals = L * T * (G + 2 * H) + C
    bytes_accessed = 4 * (60 + H * 60 + H
                          + G + (L - 1) * H * G
                          + L * (H * G + G)
                          + H * 20 + 20 + 20 * C + C
                          + C)

    return pl.pallas_call(
        kernel,
        out_shape=jax.ShapeDtypeStruct((1, C), jnp.float32),
        in_specs=[pl.BlockSpec(memory_space=pltpu.MemorySpace.VMEM)] * len(inputs),
        out_specs=pl.BlockSpec(memory_space=pltpu.MemorySpace.VMEM),
        scratch_shapes=[
            pltpu.VMEM((T, G), jnp.float32),   # precomputed input-gate contributions
            pltpu.VMEM((T, H), jnp.float32),   # per-timestep hidden outputs (layer handoff)
        ],
        cost_estimate=pl.CostEstimate(
            flops=int(flops),
            transcendentals=int(transcendentals),
            bytes_accessed=int(bytes_accessed)),
    )(*inputs)


# ---------------- pure-JAX reference (correctness check) ----------------
def reference_forward(x, params, *, hidden_size, num_layers):
    H = hidden_size
    fc = params["w1"] @ x.reshape(60, 1) + params["b1"]      # (H, 1)
    inp = fc                                                  # (T=H, in_dim=1)
    h = jnp.zeros((1, H), jnp.float32)
    for l in range(num_layers):
        wih, whh, b = params["lstm"][l]
        h = jnp.zeros((1, H), jnp.float32)
        c = jnp.zeros((1, H), jnp.float32)
        outs = []
        for t in range(H):
            g = inp[t:t + 1, :] @ wih + h @ whh + b
            i = jax.nn.sigmoid(g[:, 0:H])
            f = jax.nn.sigmoid(g[:, H:2 * H])
            gg = jnp.tanh(g[:, 2 * H:3 * H])
            o = jax.nn.sigmoid(g[:, 3 * H:4 * H])
            c = f * c + i * gg
            h = o * jnp.tanh(c)
            outs.append(h)
        inp = jnp.concatenate(outs, axis=0)                   # (T, H)
    z = jnp.maximum(h @ params["w2"] + params["b2"], 0.0)
    return jax.nn.sigmoid(z @ params["w3"] + params["b3"])


def init_params(key, *, hidden_size, num_layers, num_classes):
    """Deterministic synthetic init mirroring PyTorch default uniform ranges."""
    H, L, C = hidden_size, num_layers, num_classes

    def uni(k, shape, bound):
        return jax.random.uniform(k, shape, jnp.float32, -bound, bound)

    keys = jax.random.split(key, 8 + 4 * L)
    kit = iter(keys)
    p = {}
    k1 = 1.0 / np.sqrt(60.0)
    p["w1"] = uni(next(kit), (H, 60), k1)            # fc_1_1 weight (out,in), used as-is
    p["b1"] = uni(next(kit), (H, 1), k1)
    klstm = 1.0 / np.sqrt(H)
    p["lstm"] = []
    for l in range(L):
        in_l = 1 if l == 0 else H
        wih = uni(next(kit), (in_l, 4 * H), klstm)   # pre-transposed (in, 4H)
        whh = uni(next(kit), (H, 4 * H), klstm)      # pre-transposed (H, 4H)
        b = uni(next(kit), (1, 4 * H), klstm) + uni(next(kit), (1, 4 * H), klstm)
        p["lstm"].append((wih, whh, b))
    k2 = 1.0 / np.sqrt(H)
    p["w2"] = uni(next(kit), (H, 20), k2)
    p["b2"] = uni(next(kit), (1, 20), k2)
    k3 = 1.0 / np.sqrt(20.0)
    p["w3"] = uni(next(kit), (20, C), k3)
    p["b3"] = uni(next(kit), (1, C), k3)
    return p


if __name__ == "__main__":
    NUM_CLASSES = 5
    INPUT_SIZE = 1      # forced to 1 by the module's forward (LSTM input dim is 1)
    HIDDEN_SIZE = 32
    NUM_LAYERS = 2

    key = jax.random.PRNGKey(0)
    kp, kx = jax.random.split(key)
    params = init_params(kp, hidden_size=HIDDEN_SIZE, num_layers=NUM_LAYERS,
                         num_classes=NUM_CLASSES)
    x = jax.random.normal(kx, (60,), jnp.float32)

    y = wki_forward(x, params, hidden_size=HIDDEN_SIZE, num_layers=NUM_LAYERS,
                    num_classes=NUM_CLASSES)
    y = jax.block_until_ready(y)
    assert y.shape == (1, NUM_CLASSES)

    # High-precision f32 reference; 1e-4 leaves margin for MXU f32 multi-pass
    # accumulation-order differences across the 2*32-step recurrence.
    with jax.default_matmul_precision("float32"):
        y_ref = reference_forward(x, params, hidden_size=HIDDEN_SIZE,
                                  num_layers=NUM_LAYERS)
        y_ref = jax.block_until_ready(y_ref)
    if not np.allclose(np.asarray(y), np.asarray(y_ref), atol=1e-4):
        raise AssertionError(f"mismatch:\nkernel={np.asarray(y)}\nref={np.asarray(y_ref)}")

    print("KERNEL_OK")
</pallas_src>

<mosaic_0001>
module attributes {stable_mosaic.version = 11 : i64} {
  func.func @kernel(%arg0: memref<60x1xf32, #tpu.memory_space<vmem>>, %arg1: memref<32x60xf32, #tpu.memory_space<vmem>>, %arg2: memref<32x1xf32, #tpu.memory_space<vmem>>, %arg3: memref<1x128xf32, #tpu.memory_space<vmem>>, %arg4: memref<32x128xf32, #tpu.memory_space<vmem>>, %arg5: memref<1x128xf32, #tpu.memory_space<vmem>>, %arg6: memref<32x128xf32, #tpu.memory_space<vmem>>, %arg7: memref<32x128xf32, #tpu.memory_space<vmem>>, %arg8: memref<1x128xf32, #tpu.memory_space<vmem>>, %arg9: memref<32x20xf32, #tpu.memory_space<vmem>>, %arg10: memref<1x20xf32, #tpu.memory_space<vmem>>, %arg11: memref<20x5xf32, #tpu.memory_space<vmem>>, %arg12: memref<1x5xf32, #tpu.memory_space<vmem>>, %arg13: memref<1x5xf32, #tpu.memory_space<vmem>>, %arg14: memref<32x128xf32, #tpu.memory_space<vmem>>, %arg15: memref<32x32xf32, #tpu.memory_space<vmem>>) attributes {dimension_semantics = [], scalar_prefetch = 0 : i64, scratch_operands = 2 : i64, tpu.core_type = #tpu.core_type<tc>} {
    %c0 = arith.constant 0 : index
    %c0_0 = arith.constant 0 : index
    %0 = vector.load %arg1[%c0, %c0_0] : memref<32x60xf32, #tpu.memory_space<vmem>>, vector<32x60xf32>
    %c0_1 = arith.constant 0 : index
    %c0_2 = arith.constant 0 : index
    %1 = vector.load %arg0[%c0_1, %c0_2] : memref<60x1xf32, #tpu.memory_space<vmem>>, vector<60x1xf32>
    %cst = arith.constant dense<0.000000e+00> : vector<32x1xf32>
    %2 = tpu.matmul %0, %1, %cst {dimension_numbers = #tpu.dot_dimension_numbers<[1], [0], [0], [1], [0, 0, 1, 1], [], []>} : vector<32x60xf32>, vector<60x1xf32>, vector<32x1xf32> -> vector<32x1xf32>
    %c0_3 = arith.constant 0 : index
    %c0_4 = arith.constant 0 : index
    %3 = vector.load %arg2[%c0_3, %c0_4] : memref<32x1xf32, #tpu.memory_space<vmem>>, vector<32x1xf32>
    %4 = arith.addf %2, %3 : vector<32x1xf32>
    %c0_5 = arith.constant 0 : index
    %c0_6 = arith.constant 0 : index
    %5 = vector.load %arg3[%c0_5, %c0_6] : memref<1x128xf32, #tpu.memory_space<vmem>>, vector<1x128xf32>
    %6 = vector.broadcast %4 : vector<32x1xf32> to vector<32x128xf32>
    %7 = vector.broadcast %5 : vector<1x128xf32> to vector<32x128xf32>
    %8 = arith.mulf %6, %7 : vector<32x128xf32>
    %c0_7 = arith.constant 0 : index
    %c0_8 = arith.constant 0 : index
    %9 = vector.load %arg5[%c0_7, %c0_8] : memref<1x128xf32, #tpu.memory_space<vmem>>, vector<1x128xf32>
    %10 = vector.broadcast %9 : vector<1x128xf32> to vector<32x128xf32>
    %11 = arith.addf %8, %10 : vector<32x128xf32>
    %c0_9 = arith.constant 0 : index
    %c0_10 = arith.constant 0 : index
    %12 = vector.load %arg14[%c0_9, %c0_10] : memref<32x128xf32, #tpu.memory_space<vmem>>, vector<32x128xf32>
    tpu.vector_store %arg14[%c0_9, %c0_10], %11 {strides = array<i32>} : memref<32x128xf32, #tpu.memory_space<vmem>>, vector<32x128xf32>,
    %c0_11 = arith.constant 0 : index
    %c0_12 = arith.constant 0 : index
    %13 = vector.load %arg4[%c0_11, %c0_12] : memref<32x128xf32, #tpu.memory_space<vmem>>, vector<32x128xf32>
    %cst_13 = arith.constant 0.000000e+00 : f32
    %14 = vector.broadcast %cst_13 : f32 to vector<1x32xf32>
    %cst_14 = arith.constant 0.000000e+00 : f32
    %15 = vector.broadcast %cst_14 : f32 to vector<1x32xf32>
    %c0_15 = arith.constant 0 : index
    %c0_16 = arith.constant 0 : index
    %16 = vector.load %arg14[%c0_15, %c0_16] : memref<32x128xf32, #tpu.memory_space<vmem>>, vector<1x128xf32>
    %cst_17 = arith.constant dense<0.000000e+00> : vector<1x128xf32>
    %17 = tpu.matmul %14, %13, %cst_17 {dimension_numbers = #tpu.dot_dimension_numbers<[1], [0], [0], [1], [0, 0, 1, 1], [], []>} : vector<1x32xf32>, vector<32x128xf32>, vector<1x128xf32> -> vector<1x128xf32>
    %18 = arith.addf %16, %17 : vector<1x128xf32>
    %19 = arith.negf %18 : vector<1x128xf32>
    %20 = math.exp %19 : vector<1x128xf32>
    %cst_18 = arith.constant 1.000000e+00 : f32
    %21 = vector.broadcast %cst_18 : f32 to vector<1x128xf32>
    %22 = arith.addf %21, %20 : vector<1x128xf32>
    %23 = arith.divf %21, %22 : vector<1x128xf32>
    %24 = vector.extract_strided_slice %23 {offsets = [0, 0], sizes = [1, 32], strides = [1, 1]} : vector<1x128xf32> to vector<1x32xf32>
    %25 = vector.extract_strided_slice %23 {offsets = [0, 32], sizes = [1, 32], strides = [1, 1]} : vector<1x128xf32> to vector<1x32xf32>
    %26 = vector.extract_strided_slice %23 {offsets = [0, 96], sizes = [1, 32], strides = [1, 1]} : vector<1x128xf32> to vector<1x32xf32>
    %27 = vector.extract_strided_slice %18 {offsets = [0, 64], sizes = [1, 32], strides = [1, 1]} : vector<1x128xf32> to vector<1x32xf32>
    %28 = math.tanh %27 : vector<1x32xf32>
    %29 = arith.mulf %25, %15 : vector<1x32xf32>
    %30 = arith.mulf %24, %28 : vector<1x32xf32>
    %31 = arith.addf %29, %30 : vector<1x32xf32>
    %32 = math.tanh %31 : vector<1x32xf32>
    %33 = arith.mulf %26, %32 : vector<1x32xf32>
    %c0_19 = arith.constant 0 : index
    %c0_20 = arith.constant 0 : index
    %34 = vector.load %arg15[%c0_19, %c0_20] : memref<32x32xf32, #tpu.memory_space<vmem>>, vector<1x32xf32>
    tpu.vector_store %arg15[%c0_19, %c0_20], %33 {strides = array<i32>} : memref<32x32xf32, #tpu.memory_space<vmem>>, vector<1x32xf32>,
    %c1 = arith.constant 1 : index
    %c0_21 = arith.constant 0 : index
    %35 = vector.load %arg14[%c1, %c0_21] : memref<32x128xf32, #tpu.memory_space<vmem>>, vector<1x128xf32>
    %cst_22 = arith.constant dense<0.000000e+00> : vector<1x128xf32>
    %36 = tpu.matmul %33, %13, %cst_22 {dimension_numbers = #tpu.dot_dimension_numbers<[1], [0], [0], [1], [0, 0, 1, 1], [], []>} : vector<1x32xf32>, vector<32x128xf32>, vector<1x128xf32> -> vector<1x128xf32>
    %37 = arith.addf %35, %36 : vector<1x128xf32>
    %38 = arith.negf %37 : vector<1x128xf32>
    %39 = math.exp %38 : vector<1x128xf32>
    %cst_23 = arith.constant 1.000000e+00 : f32
    %40 = vector.broadcast %cst_23 : f32 to vector<1x128xf32>
    %41 = arith.addf %40, %39 : vector<1x128xf32>
    %42 = arith.divf %40, %41 : vector<1x128xf32>
    %43 = vector.extract_strided_slice %42 {offsets = [0, 0], sizes = [1, 32], strides = [1, 1]} : vector<1x128xf32> to vector<1x32xf32>
    %44 = vector.extract_strided_slice %42 {offsets = [0, 32], sizes = [1, 32], strides = [1, 1]} : vector<1x128xf32> to vector<1x32xf32>
    %45 = vector.extract_strided_slice %42 {offsets = [0, 96], sizes = [1, 32], strides = [1, 1]} : vector<1x128xf32> to vector<1x32xf32>
    %46 = vector.extract_strided_slice %37 {offsets = [0, 64], sizes = [1, 32], strides = [1, 1]} : vector<1x128xf32> to vector<1x32xf32>
    %47 = math.tanh %46 : vector<1x32xf32>
    %48 = arith.mulf %44, %31 : vector<1x32xf32>
    %49 = arith.mulf %43, %47 : vector<1x32xf32>
    %50 = arith.addf %48, %49 : vector<1x32xf32>
    %51 = math.tanh %50 : vector<1x32xf32>
    %52 = arith.mulf %45, %51 : vector<1x32xf32>
    %c1_24 = arith.constant 1 : index
    %c0_25 = arith.constant 0 : index
    %53 = vector.load %arg15[%c1_24, %c0_25] : memref<32x32xf32, #tpu.memory_space<vmem>>, vector<1x32xf32>
    tpu.vector_store %arg15[%c1_24, %c0_25], %52 {strides = array<i32>} : memref<32x32xf32, #tpu.memory_space<vmem>>, vector<1x32xf32>,
    %c2 = arith.constant 2 : index
    %c0_26 = arith.constant 0 : index
    %54 = vector.load %arg14[%c2, %c0_26] : memref<32x128xf32, #tpu.memory_space<vmem>>, vector<1x128xf32>
    %cst_27 = arith.constant dense<0.000000e+00> : vector<1x128xf32>
    %55 = tpu.matmul %52, %13, %cst_27 {dimension_numbers = #tpu.dot_dimension_numbers<[1], [0], [0], [1], [0, 0, 1, 1], [], []>} : vector<1x32xf32>, vector<32x128xf32>, vector<1x128xf32> -> vector<1x128xf32>
    %56 = arith.addf %54, %55 : vector<1x128xf32>
    %57 = arith.negf %56 : vector<1x128xf32>
    %58 = math.exp %57 : vector<1x128xf32>
    %cst_28 = arith.constant 1.000000e+00 : f32
    %59 = vector.broadcast %cst_28 : f32 to vector<1x128xf32>
    %60 = arith.addf %59, %58 : vector<1x128xf32>
    %61 = arith.divf %59, %60 : vector<1x128xf32>
    %62 = vector.extract_strided_slice %61 {offsets = [0, 0], sizes = [1, 32], strides = [1, 1]} : vector<1x128xf32> to vector<1x32xf32>
    %63 = vector.extract_strided_slice %61 {offsets = [0, 32], sizes = [1, 32], strides = [1, 1]} : vector<1x128xf32> to vector<1x32xf32>
    %64 = vector.extract_strided_slice %61 {offsets = [0, 96], sizes = [1, 32], strides = [1, 1]} : vector<1x128xf32> to vector<1x32xf32>
    %65 = vector.extract_strided_slice %56 {offsets = [0, 64], sizes = [1, 32], strides = [1, 1]} : vector<1x128xf32> to vector<1x32xf32>
    %66 = math.tanh %65 : vector<1x32xf32>
    %67 = arith.mulf %63, %50 : vector<1x32xf32>
    %68 = arith.mulf %62, %66 : vector<1x32xf32>
    %69 = arith.addf %67, %68 : vector<1x32xf32>
    %70 = math.tanh %69 : vector<1x32xf32>
    %71 = arith.mulf %64, %70 : vector<1x32xf32>
    %c2_29 = arith.constant 2 : index
    %c0_30 = arith.constant 0 : index
    %72 = vector.load %arg15[%c2_29, %c0_30] : memref<32x32xf32, #tpu.memory_space<vmem>>, vector<1x32xf32>
    tpu.vector_store %arg15[%c2_29, %c0_30], %71 {strides = array<i32>} : memref<32x32xf32, #tpu.memory_space<vmem>>, vector<1x32xf32>,
    %c3 = arith.constant 3 : index
    %c0_31 = arith.constant 0 : index
    %73 = vector.load %arg14[%c3, %c0_31] : memref<32x128xf32, #tpu.memory_space<vmem>>, vector<1x128xf32>
    %cst_32 = arith.constant dense<0.000000e+00> : vector<1x128xf32>
    %74 = tpu.matmul %71, %13, %cst_32 {dimension_numbers = #tpu.dot_dimension_numbers<[1], [0], [0], [1], [0, 0, 1, 1], [], []>} : vector<1x32xf32>, vector<32x128xf32>, vector<1x128xf32> -> vector<1x128xf32>
    %75 = arith.addf %73, %74 : vector<1x128xf32>
    %76 = arith.negf %75 : vector<1x128xf32>
    %77 = math.exp %76 : vector<1x128xf32>
    %cst_33 = arith.constant 1.000000e+00 : f32
    %78 = vector.broadcast %cst_33 : f32 to vector<1x128xf32>
    %79 = arith.addf %78, %77 : vector<1x128xf32>
    %80 = arith.divf %78, %79 : vector<1x128xf32>
    %81 = vector.extract_strided_slice %80 {offsets = [0, 0], sizes = [1, 32], strides = [1, 1]} : vector<1x128xf32> to vector<1x32xf32>
    %82 = vector.extract_strided_slice %80 {offsets = [0, 32], sizes = [1, 32], strides = [1, 1]} : vector<1x128xf32> to vector<1x32xf32>
    %83 = vector.extract_strided_slice %80 {offsets = [0, 96], sizes = [1, 32], strides = [1, 1]} : vector<1x128xf32> to vector<1x32xf32>
    %84 = vector.extract_strided_slice %75 {offsets = [0, 64], sizes = [1, 32], strides = [1, 1]} : vector<1x128xf32> to vector<1x32xf32>
    %85 = math.tanh %84 : vector<1x32xf32>
    %86 = arith.mulf %82, %69 : vector<1x32xf32>
    %87 = arith.mulf %81, %85 : vector<1x32xf32>
    %88 = arith.addf %86, %87 : vector<1x32xf32>
    %89 = math.tanh %88 : vector<1x32xf32>
    %90 = arith.mulf %83, %89 : vector<1x32xf32>
    %c3_34 = arith.constant 3 : index
    %c0_35 = arith.constant 0 : index
    %91 = vector.load %arg15[%c3_34, %c0_35] : memref<32x32xf32, #tpu.memory_space<vmem>>, vector<1x32xf32>
    tpu.vector_store %arg15[%c3_34, %c0_35], %90 {strides = array<i32>} : memref<32x32xf32, #tpu.memory_space<vmem>>, vector<1x32xf32>,
    %c4 = arith.constant 4 : index
    %c0_36 = arith.constant 0 : index
    %92 = vector.load %arg14[%c4, %c0_36] : memref<32x128xf32, #tpu.memory_space<vmem>>, vector<1x128xf32>
    %cst_37 = arith.constant dense<0.000000e+00> : vector<1x128xf32>
    %93 = tpu.matmul %90, %13, %cst_37 {dimension_numbers = #tpu.dot_dimension_numbers<[1], [0], [0], [1], [0, 0, 1, 1], [], []>} : vector<1x32xf32>, vector<32x128xf32>, vector<1x128xf32> -> vector<1x128xf32>
    %94 = arith.addf %92, %93 : vector<1x128xf32>
    %95 = arith.negf %94 : vector<1x128xf32>
    %96 = math.exp %95 : vector<1x128xf32>
    %cst_38 = arith.constant 1.000000e+00 : f32
    %97 = vector.broadcast %cst_38 : f32 to vector<1x128xf32>
    %98 = arith.addf %97, %96 : vector<1x128xf32>
    %99 = arith.divf %97, %98 : vector<1x128xf32>
    %100 = vector.extract_strided_slice %99 {offsets = [0, 0], sizes = [1, 32], strides = [1, 1]} : vector<1x128xf32> to vector<1x32xf32>
    %101 = vector.extract_strided_slice %99 {offsets = [0, 32], sizes = [1, 32], strides = [1, 1]} : vector<1x128xf32> to vector<1x32xf32>
    %102 = vector.extract_strided_slice %99 {offsets = [0, 96], sizes = [1, 32], strides = [1, 1]} : vector<1x128xf32> to vector<1x32xf32>
    %103 = vector.extract_strided_slice %94 {offsets = [0, 64], sizes = [1, 32], strides = [1, 1]} : vector<1x128xf32> to vector<1x32xf32>
    %104 = math.tanh %103 : vector<1x32xf32>
    %105 = arith.mulf %101, %88 : vector<1x32xf32>
    %106 = arith.mulf %100, %104 : vector<1x32xf32>
    %107 = arith.addf %105, %106 : vector<1x32xf32>
    %108 = math.tanh %107 : vector<1x32xf32>
    %109 = arith.mulf %102, %108 : vector<1x32xf32>
    %c4_39 = arith.constant 4 : index
    %c0_40 = arith.constant 0 : index
    %110 = vector.load %arg15[%c4_39, %c0_40] : memref<32x32xf32, #tpu.memory_space<vmem>>, vector<1x32xf32>
    tpu.vector_store %arg15[%c4_39, %c0_40], %109 {strides = array<i32>} : memref<32x32xf32, #tpu.memory_space<vmem>>, vector<1x32xf32>,
    %c5 = arith.constant 5 : index
    %c0_41 = arith.constant 0 : index
    %111 = vector.load %arg14[%c5, %c0_41] : memref<32x128xf32, #tpu.memory_space<vmem>>, vector<1x128xf32>
    %cst_42 = arith.constant dense<0.000000e+00> : vector<1x128xf32>
    %112 = tpu.matmul %109, %13, %cst_42 {dimension_numbers = #tpu.dot_dimension_numbers<[1], [0], [0], [1], [0, 0, 1, 1], [], []>} : vector<1x32xf32>, vector<32x128xf32>, vector<1x128xf32> -> vector<1x128xf32>
    %113 = arith.addf %111, %112 : vector<1x128xf32>
    %114 = arith.negf %113 : vector<1x128xf32>
    %115 = math.exp %114 : vector<1x128xf32>
    %cst_43 = arith.constant 1.000000e+00 : f32
    %116 = vector.broadcast %cst_43 : f32 to vector<1x128xf32>
    %117 = arith.addf %116, %115 : vector<1x128xf32>
    %118 = arith.divf %116, %117 : vector<1x128xf32>
    %119 = vector.extract_strided_slice %118 {offsets = [0, 0], sizes = [1, 32], strides = [1, 1]} : vector<1x128xf32> to vector<1x32xf32>
    %120 = vector.extract_strided_slice %118 {offsets = [0, 32], sizes = [1, 32], strides = [1, 1]} : vector<1x128xf32> to vector<1x32xf32>
    %121 = vector.extract_strided_slice %118 {offsets = [0, 96], sizes = [1, 32], strides = [1, 1]} : vector<1x128xf32> to vector<1x32xf32>
    %122 = vector.extract_strided_slice %113 {offsets = [0, 64], sizes = [1, 32], strides = [1, 1]} : vector<1x128xf32> to vector<1x32xf32>
    %123 = math.tanh %122 : vector<1x32xf32>
    %124 = arith.mulf %120, %107 : vector<1x32xf32>
    %125 = arith.mulf %119, %123 : vector<1x32xf32>
    %126 = arith.addf %124, %125 : vector<1x32xf32>
    %127 = math.tanh %126 : vector<1x32xf32>
    %128 = arith.mulf %121, %127 : vector<1x32xf32>
    %c5_44 = arith.constant 5 : index
    %c0_45 = arith.constant 0 : index
    %129 = vector.load %arg15[%c5_44, %c0_45] : memref<32x32xf32, #tpu.memory_space<vmem>>, vector<1x32xf32>
    tpu.vector_store %arg15[%c5_44, %c0_45], %128 {strides = array<i32>} : memref<32x32xf32, #tpu.memory_space<vmem>>, vector<1x32xf32>,
    %c6 = arith.constant 6 : index
    %c0_46 = arith.constant 0 : index
    %130 = vector.load %arg14[%c6, %c0_46] : memref<32x128xf32, #tpu.memory_space<vmem>>, vector<1x128xf32>
    %cst_47 = arith.constant dense<0.000000e+00> : vector<1x128xf32>
    %131 = tpu.matmul %128, %13, %cst_47 {dimension_numbers = #tpu.dot_dimension_numbers<[1], [0], [0], [1], [0, 0, 1, 1], [], []>} : vector<1x32xf32>, vector<32x128xf32>, vector<1x128xf32> -> vector<1x128xf32>
    %132 = arith.addf %130, %131 : vector<1x128xf32>
    %133 = arith.negf %132 : vector<1x128xf32>
    %134 = math.exp %133 : vector<1x128xf32>
    %cst_48 = arith.constant 1.000000e+00 : f32
    %135 = vector.broadcast %cst_48 : f32 to vector<1x128xf32>
    %136 = arith.addf %135, %134 : vector<1x128xf32>
    %137 = arith.divf %135, %136 : vector<1x128xf32>
    %138 = vector.extract_strided_slice %137 {offsets = [0, 0], sizes = [1, 32], strides = [1, 1]} : vector<1x128xf32> to vector<1x32xf32>
    %139 = vector.extract_strided_slice %137 {offsets = [0, 32], sizes = [1, 32], strides = [1, 1]} : vector<1x128xf32> to vector<1x32xf32>
    %140 = vector.extract_strided_slice %137 {offsets = [0, 96], sizes = [1, 32], strides = [1, 1]} : vector<1x128xf32> to vector<1x32xf32>
    %141 = vector.extract_strided_slice %132 {offsets = [0, 64], sizes = [1, 32], strides = [1, 1]} : vector<1x128xf32> to vector<1x32xf32>
    %142 = math.tanh %141 : vector<1x32xf32>
    %143 = arith.mulf %139, %126 : vector<1x32xf32>
    %144 = arith.mulf %138, %142 : vector<1x32xf32>
    %145 = arith.addf %143, %144 : vector<1x32xf32>
    %146 = math.tanh %145 : vector<1x32xf32>
    %147 = arith.mulf %140, %146 : vector<1x32xf32>
    %c6_49 = arith.constant 6 : index
    %c0_50 = arith.constant 0 : index
    %148 = vector.load %arg15[%c6_49, %c0_50] : memref<32x32xf32, #tpu.memory_space<vmem>>, vector<1x32xf32>
    tpu.vector_store %arg15[%c6_49, %c0_50], %147 {strides = array<i32>} : memref<32x32xf32, #tpu.memory_space<vmem>>, vector<1x32xf32>,
    %c7 = arith.constant 7 : index
    %c0_51 = arith.constant 0 : index
    %149 = vector.load %arg14[%c7, %c0_51] : memref<32x128xf32, #tpu.memory_space<vmem>>, vector<1x128xf32>
    %cst_52 = arith.constant dense<0.000000e+00> : vector<1x128xf32>
    %150 = tpu.matmul %147, %13, %cst_52 {dimension_numbers = #tpu.dot_dimension_numbers<[1], [0], [0], [1], [0, 0, 1, 1], [], []>} : vector<1x32xf32>, vector<32x128xf32>, vector<1x128xf32> -> vector<1x128xf32>
    %151 = arith.addf %149, %150 : vector<1x128xf32>
    %152 = arith.negf %151 : vector<1x128xf32>
    %153 = math.exp %152 : vector<1x128xf32>
    %cst_53 = arith.constant 1.000000e+00 : f32
    %154 = vector.broadcast %cst_53 : f32 to vector<1x128xf32>
    %155 = arith.addf %154, %153 : vector<1x128xf32>
    %156 = arith.divf %154, %155 : vector<1x128xf32>
    %157 = vector.extract_strided_slice %156 {offsets = [0, 0], sizes = [1, 32], strides = [1, 1]} : vector<1x128xf32> to vector<1x32xf32>
    %158 = vector.extract_strided_slice %156 {offsets = [0, 32], sizes = [1, 32], strides = [1, 1]} : vector<1x128xf32> to vector<1x32xf32>
    %159 = vector.extract_strided_slice %156 {offsets = [0, 96], sizes = [1, 32], strides = [1, 1]} : vector<1x128xf32> to vector<1x32xf32>
    %160 = vector.extract_strided_slice %151 {offsets = [0, 64], sizes = [1, 32], strides = [1, 1]} : vector<1x128xf32> to vector<1x32xf32>
    %161 = math.tanh %160 : vector<1x32xf32>
    %162 = arith.mulf %158, %145 : vector<1x32xf32>
    %163 = arith.mulf %157, %161 : vector<1x32xf32>
    %164 = arith.addf %162, %163 : vector<1x32xf32>
    %165 = math.tanh %164 : vector<1x32xf32>
    %166 = arith.mulf %159, %165 : vector<1x32xf32>
    %c7_54 = arith.constant 7 : index
    %c0_55 = arith.constant 0 : index
    %167 = vector.load %arg15[%c7_54, %c0_55] : memref<32x32xf32, #tpu.memory_space<vmem>>, vector<1x32xf32>
    tpu.vector_store %arg15[%c7_54, %c0_55], %166 {strides = array<i32>} : memref<32x32xf32, #tpu.memory_space<vmem>>, vector<1x32xf32>,
    %c8 = arith.constant 8 : index
    %c0_56 = arith.constant 0 : index
    %168 = vector.load %arg14[%c8, %c0_56] : memref<32x128xf32, #tpu.memory_space<vmem>>, vector<1x128xf32>
    %cst_57 = arith.constant dense<0.000000e+00> : vector<1x128xf32>
    %169 = tpu.matmul %166, %13, %cst_57 {dimension_numbers = #tpu.dot_dimension_numbers<[1], [0], [0], [1], [0, 0, 1, 1], [], []>} : vector<1x32xf32>, vector<32x128xf32>, vector<1x128xf32> -> vector<1x128xf32>
    %170 = arith.addf %168, %169 : vector<1x128xf32>
    %171 = arith.negf %170 : vector<1x128xf32>
    %172 = math.exp %171 : vector<1x128xf32>
    %cst_58 = arith.constant 1.000000e+00 : f32
    %173 = vector.broadcast %cst_58 : f32 to vector<1x128xf32>
    %174 = arith.addf %173, %172 : vector<1x128xf32>
    %175 = arith.divf %173, %174 : vector<1x128xf32>
    %176 = vector.extract_strided_slice %175 {offsets = [0, 0], sizes = [1, 32], strides = [1, 1]} : vector<1x128xf32> to vector<1x32xf32>
    %177 = vector.extract_strided_slice %175 {offsets = [0, 32], sizes = [1, 32], strides = [1, 1]} : vector<1x128xf32> to vector<1x32xf32>
    %178 = vector.extract_strided_slice %175 {offsets = [0, 96], sizes = [1, 32], strides = [1, 1]} : vector<1x128xf32> to vector<1x32xf32>
    %179 = vector.extract_strided_slice %170 {offsets = [0, 64], sizes = [1, 32], strides = [1, 1]} : vector<1x128xf32> to vector<1x32xf32>
    %180 = math.tanh %179 : vector<1x32xf32>
    %181 = arith.mulf %177, %164 : vector<1x32xf32>
    %182 = arith.mulf %176, %180 : vector<1x32xf32>
    %183 = arith.addf %181, %182 : vector<1x32xf32>
    %184 = math.tanh %183 : vector<1x32xf32>
    %185 = arith.mulf %178, %184 : vector<1x32xf32>
    %c8_59 = arith.constant 8 : index
    %c0_60 = arith.constant 0 : index
    %186 = vector.load %arg15[%c8_59, %c0_60] : memref<32x32xf32, #tpu.memory_space<vmem>>, vector<1x32xf32>
    tpu.vector_store %arg15[%c8_59, %c0_60], %185 {strides = array<i32>} : memref<32x32xf32, #tpu.memory_space<vmem>>, vector<1x32xf32>,
    %c9 = arith.constant 9 : index
    %c0_61 = arith.constant 0 : index
    %187 = vector.load %arg14[%c9, %c0_61] : memref<32x128xf32, #tpu.memory_space<vmem>>, vector<1x128xf32>
    %cst_62 = arith.constant dense<0.000000e+00> : vector<1x128xf32>
    %188 = tpu.matmul %185, %13, %cst_62 {dimension_numbers = #tpu.dot_dimension_numbers<[1], [0], [0], [1], [0, 0, 1, 1], [], []>} : vector<1x32xf32>, vector<32x128xf32>, vector<1x128xf32> -> vector<1x128xf32>
    %189 = arith.addf %187, %188 : vector<1x128xf32>
    %190 = arith.negf %189 : vector<1x128xf32>
    %191 = math.exp %190 : vector<1x128xf32>
    %cst_63 = arith.constant 1.000000e+00 : f32
    %192 = vector.broadcast %cst_63 : f32 to vector<1x128xf32>
    %193 = arith.addf %192, %191 : vector<1x128xf32>
    %194 = arith.divf %192, %193 : vector<1x128xf32>
    %195 = vector.extract_strided_slice %194 {offsets = [0, 0], sizes = [1, 32], strides = [1, 1]} : vector<1x128xf32> to vector<1x32xf32>
    %196 = vector.extract_strided_slice %194 {offsets = [0, 32], sizes = [1, 32], strides = [1, 1]} : vector<1x128xf32> to vector<1x32xf32>
    %197 = vector.extract_strided_slice %194 {offsets = [0, 96], sizes = [1, 32], strides = [1, 1]} : vector<1x128xf32> to vector<1x32xf32>
    %198 = vector.extract_strided_slice %189 {offsets = [0, 64], sizes = [1, 32], strides = [1, 1]} : vector<1x128xf32> to vector<1x32xf32>
    %199 = math.tanh %198 : vector<1x32xf32>
    %200 = arith.mulf %196, %183 : vector<1x32xf32>
    %201 = arith.mulf %195, %199 : vector<1x32xf32>
    %202 = arith.addf %200, %201 : vector<1x32xf32>
    %203 = math.tanh %202 : vector<1x32xf32>
    %204 = arith.mulf %197, %203 : vector<1x32xf32>
    %c9_64 = arith.constant 9 : index
    %c0_65 = arith.constant 0 : index
    %205 = vector.load %arg15[%c9_64, %c0_65] : memref<32x32xf32, #tpu.memory_space<vmem>>, vector<1x32xf32>
    tpu.vector_store %arg15[%c9_64, %c0_65], %204 {strides = array<i32>} : memref<32x32xf32, #tpu.memory_space<vmem>>, vector<1x32xf32>,
    %c10 = arith.constant 10 : index
    %c0_66 = arith.constant 0 : index
    %206 = vector.load %arg14[%c10, %c0_66] : memref<32x128xf32, #tpu.memory_space<vmem>>, vector<1x128xf32>
    %cst_67 = arith.constant dense<0.000000e+00> : vector<1x128xf32>
    %207 = tpu.matmul %204, %13, %cst_67 {dimension_numbers = #tpu.dot_dimension_numbers<[1], [0], [0], [1], [0, 0, 1, 1], [], []>} : vector<1x32xf32>, vector<32x128xf32>, vector<1x128xf32> -> vector<1x128xf32>
    %208 = arith.addf %206, %207 : vector<1x128xf32>
    %209 = arith.negf %208 : vector<1x128xf32>
    %210 = math.exp %209 : vector<1x128xf32>
    %cst_68 = arith.constant 1.000000e+00 : f32
    %211 = vector.broadcast %cst_68 : f32 to vector<1x128xf32>
    %212 = arith.addf %211, %210 : vector<1x128xf32>
    %213 = arith.divf %211, %212 : vector<1x128xf32>
    %214 = vector.extract_strided_slice %213 {offsets = [0, 0], sizes = [1, 32], strides = [1, 1]} : vector<1x128xf32> to vector<1x32xf32>
    %215 = vector.extract_strided_slice %213 {offsets = [0, 32], sizes = [1, 32], strides = [1, 1]} : vector<1x128xf32> to vector<1x32xf32>
    %216 = vector.extract_strided_slice %213 {offsets = [0, 96], sizes = [1, 32], strides = [1, 1]} : vector<1x128xf32> to vector<1x32xf32>
    %217 = vector.extract_strided_slice %208 {offsets = [0, 64], sizes = [1, 32], strides = [1, 1]} : vector<1x128xf32> to vector<1x32xf32>
    %218 = math.tanh %217 : vector<1x32xf32>
    %219 = arith.mulf %215, %202 : vector<1x32xf32>
    %220 = arith.mulf %214, %218 : vector<1x32xf32>
    %221 = arith.addf %219, %220 : vector<1x32xf32>
    %222 = math.tanh %221 : vector<1x32xf32>
    %223 = arith.mulf %216, %222 : vector<1x32xf32>
    %c10_69 = arith.constant 10 : index
    %c0_70 = arith.constant 0 : index
    %224 = vector.load %arg15[%c10_69, %c0_70] : memref<32x32xf32, #tpu.memory_space<vmem>>, vector<1x32xf32>
    tpu.vector_store %arg15[%c10_69, %c0_70], %223 {strides = array<i32>} : memref<32x32xf32, #tpu.memory_space<vmem>>, vector<1x32xf32>,
    %c11 = arith.constant 11 : index
    %c0_71 = arith.constant 0 : index
    %225 = vector.load %arg14[%c11, %c0_71] : memref<32x128xf32, #tpu.memory_space<vmem>>, vector<1x128xf32>
    %cst_72 = arith.constant dense<0.000000e+00> : vector<1x128xf32>
    %226 = tpu.matmul %223, %13, %cst_72 {dimension_numbers = #tpu.dot_dimension_numbers<[1], [0], [0], [1], [0, 0, 1, 1], [], []>} : vector<1x32xf32>, vector<32x128xf32>, vector<1x128xf32> -> vector<1x128xf32>
    %227 = arith.addf %225, %226 : vector<1x128xf32>
    %228 = arith.negf %227 : vector<1x128xf32>
    %229 = math.exp %228 : vector<1x128xf32>
    %cst_73 = arith.constant 1.000000e+00 : f32
    %230 = vector.broadcast %cst_73 : f32 to vector<1x128xf32>
    %231 = arith.addf %230, %229 : vector<1x128xf32>
    %232 = arith.divf %230, %231 : vector<1x128xf32>
    %233 = vector.extract_strided_slice %232 {offsets = [0, 0], sizes = [1, 32], strides = [1, 1]} : vector<1x128xf32> to vector<1x32xf32>
    %234 = vector.extract_strided_slice %232 {offsets = [0, 32], sizes = [1, 32], strides = [1, 1]} : vector<1x128xf32> to vector<1x32xf32>
    %235 = vector.extract_strided_slice %232 {offsets = [0, 96], sizes = [1, 32], strides = [1, 1]} : vector<1x128xf32> to vector<1x32xf32>
    %236 = vector.extract_strided_slice %227 {offsets = [0, 64], sizes = [1, 32], strides = [1, 1]} : vector<1x128xf32> to vector<1x32xf32>
    %237 = math.tanh %236 : vector<1x32xf32>
    %238 = arith.mulf %234, %221 : vector<1x32xf32>
    %239 = arith.mulf %233, %237 : vector<1x32xf32>
    %240 = arith.addf %238, %239 : vector<1x32xf32>
    %241 = math.tanh %240 : vector<1x32xf32>
    %242 = arith.mulf %235, %241 : vector<1x32xf32>
    %c11_74 = arith.constant 11 : index
    %c0_75 = arith.constant 0 : index
    %243 = vector.load %arg15[%c11_74, %c0_75] : memref<32x32xf32, #tpu.memory_space<vmem>>, vector<1x32xf32>
    tpu.vector_store %arg15[%c11_74, %c0_75], %242 {strides = array<i32>} : memref<32x32xf32, #tpu.memory_space<vmem>>, vector<1x32xf32>,
    %c12 = arith.constant 12 : index
    %c0_76 = arith.constant 0 : index
    %244 = vector.load %arg14[%c12, %c0_76] : memref<32x128xf32, #tpu.memory_space<vmem>>, vector<1x128xf32>
    %cst_77 = arith.constant dense<0.000000e+00> : vector<1x128xf32>
    %245 = tpu.matmul %242, %13, %cst_77 {dimension_numbers = #tpu.dot_dimension_numbers<[1], [0], [0], [1], [0, 0, 1, 1], [], []>} : vector<1x32xf32>, vector<32x128xf32>, vector<1x128xf32> -> vector<1x128xf32>
    %246 = arith.addf %244, %245 : vector<1x128xf32>
    %247 = arith.negf %246 : vector<1x128xf32>
    %248 = math.exp %247 : vector<1x128xf32>
    %cst_78 = arith.constant 1.000000e+00 : f32
    %249 = vector.broadcast %cst_78 : f32 to vector<1x128xf32>
    %250 = arith.addf %249, %248 : vector<1x128xf32>
    %251 = arith.divf %249, %250 : vector<1x128xf32>
    %252 = vector.extract_strided_slice %251 {offsets = [0, 0], sizes = [1, 32], strides = [1, 1]} : vector<1x128xf32> to vector<1x32xf32>
    %253 = vector.extract_strided_slice %251 {offsets = [0, 32], sizes = [1, 32], strides = [1, 1]} : vector<1x128xf32> to vector<1x32xf32>
    %254 = vector.extract_strided_slice %251 {offsets = [0, 96], sizes = [1, 32], strides = [1, 1]} : vector<1x128xf32> to vector<1x32xf32>
    %255 = vector.extract_strided_slice %246 {offsets = [0, 64], sizes = [1, 32], strides = [1, 1]} : vector<1x128xf32> to vector<1x32xf32>
    %256 = math.tanh %255 : vector<1x32xf32>
    %257 = arith.mulf %253, %240 : vector<1x32xf32>
    %258 = arith.mulf %252, %256 : vector<1x32xf32>
    %259 = arith.addf %257, %258 : vector<1x32xf32>
    %260 = math.tanh %259 : vector<1x32xf32>
    %261 = arith.mulf %254, %260 : vector<1x32xf32>
    %c12_79 = arith.constant 12 : index
    %c0_80 = arith.constant 0 : index
    %262 = vector.load %arg15[%c12_79, %c0_80] : memref<32x32xf32, #tpu.memory_space<vmem>>, vector<1x32xf32>
    tpu.vector_store %arg15[%c12_79, %c0_80], %261 {strides = array<i32>} : memref<32x32xf32, #tpu.memory_space<vmem>>, vector<1x32xf32>,
    %c13 = arith.constant 13 : index
    %c0_81 = arith.constant 0 : index
    %263 = vector.load %arg14[%c13, %c0_81] : memref<32x128xf32, #tpu.memory_space<vmem>>, vector<1x128xf32>
    %cst_82 = arith.constant dense<0.000000e+00> : vector<1x128xf32>
    %264 = tpu.matmul %261, %13, %cst_82 {dimension_numbers = #tpu.dot_dimension_numbers<[1], [0], [0], [1], [0, 0, 1, 1], [], []>} : vector<1x32xf32>, vector<32x128xf32>, vector<1x128xf32> -> vector<1x128xf32>
    %265 = arith.addf %263, %264 : vector<1x128xf32>
    %266 = arith.negf %265 : vector<1x128xf32>
    %267 = math.exp %266 : vector<1x128xf32>
    %cst_83 = arith.constant 1.000000e+00 : f32
    %268 = vector.broadcast %cst_83 : f32 to vector<1x128xf32>
    %269 = arith.addf %268, %267 : vector<1x128xf32>
    %270 = arith.divf %268, %269 : vector<1x128xf32>
    %271 = vector.extract_strided_slice %270 {offsets = [0, 0], sizes = [1, 32], strides = [1, 1]} : vector<1x128xf32> to vector<1x32xf32>
    %272 = vector.extract_strided_slice %270 {offsets = [0, 32], sizes = [1, 32], strides = [1, 1]} : vector<1x128xf32> to vector<1x32xf32>
    %273 = vector.extract_strided_slice %270 {offsets = [0, 96], sizes = [1, 32], strides = [1, 1]} : vector<1x128xf32> to vector<1x32xf32>
    %274 = vector.extract_strided_slice %265 {offsets = [0, 64], sizes = [1, 32], strides = [1, 1]} : vector<1x128xf32> to vector<1x32xf32>
    %275 = math.tanh %274 : vector<1x32xf32>
    %276 = arith.mulf %272, %259 : vector<1x32xf32>
    %277 = arith.mulf %271, %275 : vector<1x32xf32>
    %278 = arith.addf %276, %277 : vector<1x32xf32>
    %279 = math.tanh %278 : vector<1x32xf32>
    %280 = arith.mulf %273, %279 : vector<1x32xf32>
    %c13_84 = arith.constant 13 : index
    %c0_85 = arith.constant 0 : index
    %281 = vector.load %arg15[%c13_84, %c0_85] : memref<32x32xf32, #tpu.memory_space<vmem>>, vector<1x32xf32>
    tpu.vector_store %arg15[%c13_84, %c0_85], %280 {strides = array<i32>} : memref<32x32xf32, #tpu.memory_space<vmem>>, vector<1x32xf32>,
    %c14 = arith.constant 14 : index
    %c0_86 = arith.constant 0 : index
    %282 = vector.load %arg14[%c14, %c0_86] : memref<32x128xf32, #tpu.memory_space<vmem>>, vector<1x128xf32>
    %cst_87 = arith.constant dense<0.000000e+00> : vector<1x128xf32>
    %283 = tpu.matmul %280, %13, %cst_87 {dimension_numbers = #tpu.dot_dimension_numbers<[1], [0], [0], [1], [0, 0, 1, 1], [], []>} : vector<1x32xf32>, vector<32x128xf32>, vector<1x128xf32> -> vector<1x128xf32>
    %284 = arith.addf %282, %283 : vector<1x128xf32>
    %285 = arith.negf %284 : vector<1x128xf32>
    %286 = math.exp %285 : vector<1x128xf32>
    %cst_88 = arith.constant 1.000000e+00 : f32
    %287 = vector.broadcast %cst_88 : f32 to vector<1x128xf32>
    %288 = arith.addf %287, %286 : vector<1x128xf32>
    %289 = arith.divf %287, %288 : vector<1x128xf32>
    %290 = vector.extract_strided_slice %289 {offsets = [0, 0], sizes = [1, 32], strides = [1, 1]} : vector<1x128xf32> to vector<1x32xf32>
    %291 = vector.extract_strided_slice %289 {offsets = [0, 32], sizes = [1, 32], strides = [1, 1]} : vector<1x128xf32> to vector<1x32xf32>
    %292 = vector.extract_strided_slice %289 {offsets = [0, 96], sizes = [1, 32], strides = [1, 1]} : vector<1x128xf32> to vector<1x32xf32>
    %293 = vector.extract_strided_slice %284 {offsets = [0, 64], sizes = [1, 32], strides = [1, 1]} : vector<1x128xf32> to vector<1x32xf32>
    %294 = math.tanh %293 : vector<1x32xf32>
    %295 = arith.mulf %291, %278 : vector<1x32xf32>
    %296 = arith.mulf %290, %294 : vector<1x32xf32>
    %297 = arith.addf %295, %296 : vector<1x32xf32>
    %298 = math.tanh %297 : vector<1x32xf32>
    %299 = arith.mulf %292, %298 : vector<1x32xf32>
    %c14_89 = arith.constant 14 : index
    %c0_90 = arith.constant 0 : index
    %300 = vector.load %arg15[%c14_89, %c0_90] : memref<32x32xf32, #tpu.memory_space<vmem>>, vector<1x32xf32>
    tpu.vector_store %arg15[%c14_89, %c0_90], %299 {strides = array<i32>} : memref<32x32xf32, #tpu.memory_space<vmem>>, vector<1x32xf32>,
    %c15 = arith.constant 15 : index
    %c0_91 = arith.constant 0 : index
    %301 = vector.load %arg14[%c15, %c0_91] : memref<32x128xf32, #tpu.memory_space<vmem>>, vector<1x128xf32>
    %cst_92 = arith.constant dense<0.000000e+00> : vector<1x128xf32>
    %302 = tpu.matmul %299, %13, %cst_92 {dimension_numbers = #tpu.dot_dimension_numbers<[1], [0], [0], [1], [0, 0, 1, 1], [], []>} : vector<1x32xf32>, vector<32x128xf32>, vector<1x128xf32> -> vector<1x128xf32>
    %303 = arith.addf %301, %302 : vector<1x128xf32>
    %304 = arith.negf %303 : vector<1x128xf32>
    %305 = math.exp %304 : vector<1x128xf32>
    %cst_93 = arith.constant 1.000000e+00 : f32
    %306 = vector.broadcast %cst_93 : f32 to vector<1x128xf32>
    %307 = arith.addf %306, %305 : vector<1x128xf32>
    %308 = arith.divf %306, %307 : vector<1x128xf32>
    %309 = vector.extract_strided_slice %308 {offsets = [0, 0], sizes = [1, 32], strides = [1, 1]} : vector<1x128xf32> to vector<1x32xf32>
    %310 = vector.extract_strided_slice %308 {offsets = [0, 32], sizes = [1, 32], strides = [1, 1]} : vector<1x128xf32> to vector<1x32xf32>
    %311 = vector.extract_strided_slice %308 {offsets = [0, 96], sizes = [1, 32], strides = [1, 1]} : vector<1x128xf32> to vector<1x32xf32>
    %312 = vector.extract_strided_slice %303 {offsets = [0, 64], sizes = [1, 32], strides = [1, 1]} : vector<1x128xf32> to vector<1x32xf32>
    %313 = math.tanh %312 : vector<1x32xf32>
    %314 = arith.mulf %310, %297 : vector<1x32xf32>
    %315 = arith.mulf %309, %313 : vector<1x32xf32>
    %316 = arith.addf %314, %315 : vector<1x32xf32>
    %317 = math.tanh %316 : vector<1x32xf32>
    %318 = arith.mulf %311, %317 : vector<1x32xf32>
    %c15_94 = arith.constant 15 : index
    %c0_95 = arith.constant 0 : index
    %319 = vector.load %arg15[%c15_94, %c0_95] : memref<32x32xf32, #tpu.memory_space<vmem>>, vector<1x32xf32>
    tpu.vector_store %arg15[%c15_94, %c0_95], %318 {strides = array<i32>} : memref<32x32xf32, #tpu.memory_space<vmem>>, vector<1x32xf32>,
    %c16 = arith.constant 16 : index
    %c0_96 = arith.constant 0 : index
    %320 = vector.load %arg14[%c16, %c0_96] : memref<32x128xf32, #tpu.memory_space<vmem>>, vector<1x128xf32>
    %cst_97 = arith.constant dense<0.000000e+00> : vector<1x128xf32>
    %321 = tpu.matmul %318, %13, %cst_97 {dimension_numbers = #tpu.dot_dimension_numbers<[1], [0], [0], [1], [0, 0, 1, 1], [], []>} : vector<1x32xf32>, vector<32x128xf32>, vector<1x128xf32> -> vector<1x128xf32>
    %322 = arith.addf %320, %321 : vector<1x128xf32>
    %323 = arith.negf %322 : vector<1x128xf32>
    %324 = math.exp %323 : vector<1x128xf32>
    %cst_98 = arith.constant 1.000000e+00 : f32
    %325 = vector.broadcast %cst_98 : f32 to vector<1x128xf32>
    %326 = arith.addf %325, %324 : vector<1x128xf32>
    %327 = arith.divf %325, %326 : vector<1x128xf32>
    %328 = vector.extract_strided_slice %327 {offsets = [0, 0], sizes = [1, 32], strides = [1, 1]} : vector<1x128xf32> to vector<1x32xf32>
    %329 = vector.extract_strided_slice %327 {offsets = [0, 32], sizes = [1, 32], strides = [1, 1]} : vector<1x128xf32> to vector<1x32xf32>
    %330 = vector.extract_strided_slice %327 {offsets = [0, 96], sizes = [1, 32], strides = [1, 1]} : vector<1x128xf32> to vector<1x32xf32>
    %331 = vector.extract_strided_slice %322 {offsets = [0, 64], sizes = [1, 32], strides = [1, 1]} : vector<1x128xf32> to vector<1x32xf32>
    %332 = math.tanh %331 : vector<1x32xf32>
    %333 = arith.mulf %329, %316 : vector<1x32xf32>
    %334 = arith.mulf %328, %332 : vector<1x32xf32>
    %335 = arith.addf %333, %334 : vector<1x32xf32>
    %336 = math.tanh %335 : vector<1x32xf32>
    %337 = arith.mulf %330, %336 : vector<1x32xf32>
    %c16_99 = arith.constant 16 : index
    %c0_100 = arith.constant 0 : index
    %338 = vector.load %arg15[%c16_99, %c0_100] : memref<32x32xf32, #tpu.memory_space<vmem>>, vector<1x32xf32>
    tpu.vector_store %arg15[%c16_99, %c0_100], %337 {strides = array<i32>} : memref<32x32xf32, #tpu.memory_space<vmem>>, vector<1x32xf32>,
    %c17 = arith.constant 17 : index
    %c0_101 = arith.constant 0 : index
    %339 = vector.load %arg14[%c17, %c0_101] : memref<32x128xf32, #tpu.memory_space<vmem>>, vector<1x128xf32>
    %cst_102 = arith.constant dense<0.000000e+00> : vector<1x128xf32>
    %340 = tpu.matmul %337, %13, %cst_102 {dimension_numbers = #tpu.dot_dimension_numbers<[1], [0], [0], [1], [0, 0, 1, 1], [], []>} : vector<1x32xf32>, vector<32x128xf32>, vector<1x128xf32> -> vector<1x128xf32>
    %341 = arith.addf %339, %340 : vector<1x128xf32>
    %342 = arith.negf %341 : vector<1x128xf32>
    %343 = math.exp %342 : vector<1x128xf32>
    %cst_103 = arith.constant 1.000000e+00 : f32
    %344 = vector.broadcast %cst_103 : f32 to vector<1x128xf32>
    %345 = arith.addf %344, %343 : vector<1x128xf32>
    %346 = arith.divf %344, %345 : vector<1x128xf32>
    %347 = vector.extract_strided_slice %346 {offsets = [0, 0], sizes = [1, 32], strides = [1, 1]} : vector<1x128xf32> to vector<1x32xf32>
    %348 = vector.extract_strided_slice %346 {offsets = [0, 32], sizes = [1, 32], strides = [1, 1]} : vector<1x128xf32> to vector<1x32xf32>
    %349 = vector.extract_strided_slice %346 {offsets = [0, 96], sizes = [1, 32], strides = [1, 1]} : vector<1x128xf32> to vector<1x32xf32>
    %350 = vector.extract_strided_slice %341 {offsets = [0, 64], sizes = [1, 32], strides = [1, 1]} : vector<1x128xf32> to vector<1x32xf32>
    %351 = math.tanh %350 : vector<1x32xf32>
    %352 = arith.mulf %348, %335 : vector<1x32xf32>
    %353 = arith.mulf %347, %351 : vector<1x32xf32>
    %354 = arith.addf %352, %353 : vector<1x32xf32>
    %355 = math.tanh %354 : vector<1x32xf32>
    %356 = arith.mulf %349, %355 : vector<1x32xf32>
    %c17_104 = arith.constant 17 : index
    %c0_105 = arith.constant 0 : index
    %357 = vector.load %arg15[%c17_104, %c0_105] : memref<32x32xf32, #tpu.memory_space<vmem>>, vector<1x32xf32>
    tpu.vector_store %arg15[%c17_104, %c0_105], %356 {strides = array<i32>} : memref<32x32xf32, #tpu.memory_space<vmem>>, vector<1x32xf32>,
    %c18 = arith.constant 18 : index
    %c0_106 = arith.constant 0 : index
    %358 = vector.load %arg14[%c18, %c0_106] : memref<32x128xf32, #tpu.memory_space<vmem>>, vector<1x128xf32>
    %cst_107 = arith.constant dense<0.000000e+00> : vector<1x128xf32>
    %359 = tpu.matmul %356, %13, %cst_107 {dimension_numbers = #tpu.dot_dimension_numbers<[1], [0], [0], [1], [0, 0, 1, 1], [], []>} : vector<1x32xf32>, vector<32x128xf32>, vector<1x128xf32> -> vector<1x128xf32>
    %360 = arith.addf %358, %359 : vector<1x128xf32>
    %361 = arith.negf %360 : vector<1x128xf32>
    %362 = math.exp %361 : vector<1x128xf32>
    %cst_108 = arith.constant 1.000000e+00 : f32
    %363 = vector.broadcast %cst_108 : f32 to vector<1x128xf32>
    %364 = arith.addf %363, %362 : vector<1x128xf32>
    %365 = arith.divf %363, %364 : vector<1x128xf32>
    %366 = vector.extract_strided_slice %365 {offsets = [0, 0], sizes = [1, 32], strides = [1, 1]} : vector<1x128xf32> to vector<1x32xf32>
    %367 = vector.extract_strided_slice %365 {offsets = [0, 32], sizes = [1, 32], strides = [1, 1]} : vector<1x128xf32> to vector<1x32xf32>
    %368 = vector.extract_strided_slice %365 {offsets = [0, 96], sizes = [1, 32], strides = [1, 1]} : vector<1x128xf32> to vector<1x32xf32>
    %369 = vector.extract_strided_slice %360 {offsets = [0, 64], sizes = [1, 32], strides = [1, 1]} : vector<1x128xf32> to vector<1x32xf32>
    %370 = math.tanh %369 : vector<1x32xf32>
    %371 = arith.mulf %367, %354 : vector<1x32xf32>
    %372 = arith.mulf %366, %370 : vector<1x32xf32>
    %373 = arith.addf %371, %372 : vector<1x32xf32>
    %374 = math.tanh %373 : vector<1x32xf32>
    %375 = arith.mulf %368, %374 : vector<1x32xf32>
    %c18_109 = arith.constant 18 : index
    %c0_110 = arith.constant 0 : index
    %376 = vector.load %arg15[%c18_109, %c0_110] : memref<32x32xf32, #tpu.memory_space<vmem>>, vector<1x32xf32>
    tpu.vector_store %arg15[%c18_109, %c0_110], %375 {strides = array<i32>} : memref<32x32xf32, #tpu.memory_space<vmem>>, vector<1x32xf32>,
    %c19 = arith.constant 19 : index
    %c0_111 = arith.constant 0 : index
    %377 = vector.load %arg14[%c19, %c0_111] : memref<32x128xf32, #tpu.memory_space<vmem>>, vector<1x128xf32>
    %cst_112 = arith.constant dense<0.000000e+00> : vector<1x128xf32>
    %378 = tpu.matmul %375, %13, %cst_112 {dimension_numbers = #tpu.dot_dimension_numbers<[1], [0], [0], [1], [0, 0, 1, 1], [], []>} : vector<1x32xf32>, vector<32x128xf32>, vector<1x128xf32> -> vector<1x128xf32>
    %379 = arith.addf %377, %378 : vector<1x128xf32>
    %380 = arith.negf %379 : vector<1x128xf32>
    %381 = math.exp %380 : vector<1x128xf32>
    %cst_113 = arith.constant 1.000000e+00 : f32
    %382 = vector.broadcast %cst_113 : f32 to vector<1x128xf32>
    %383 = arith.addf %382, %381 : vector<1x128xf32>
    %384 = arith.divf %382, %383 : vector<1x128xf32>
    %385 = vector.extract_strided_slice %384 {offsets = [0, 0], sizes = [1, 32], strides = [1, 1]} : vector<1x128xf32> to vector<1x32xf32>
    %386 = vector.extract_strided_slice %384 {offsets = [0, 32], sizes = [1, 32], strides = [1, 1]} : vector<1x128xf32> to vector<1x32xf32>
    %387 = vector.extract_strided_slice %384 {offsets = [0, 96], sizes = [1, 32], strides = [1, 1]} : vector<1x128xf32> to vector<1x32xf32>
    %388 = vector.extract_strided_slice %379 {offsets = [0, 64], sizes = [1, 32], strides = [1, 1]} : vector<1x128xf32> to vector<1x32xf32>
    %389 = math.tanh %388 : vector<1x32xf32>
    %390 = arith.mulf %386, %373 : vector<1x32xf32>
    %391 = arith.mulf %385, %389 : vector<1x32xf32>
    %392 = arith.addf %390, %391 : vector<1x32xf32>
    %393 = math.tanh %392 : vector<1x32xf32>
    %394 = arith.mulf %387, %393 : vector<1x32xf32>
    %c19_114 = arith.constant 19 : index
    %c0_115 = arith.constant 0 : index
    %395 = vector.load %arg15[%c19_114, %c0_115] : memref<32x32xf32, #tpu.memory_space<vmem>>, vector<1x32xf32>
    tpu.vector_store %arg15[%c19_114, %c0_115], %394 {strides = array<i32>} : memref<32x32xf32, #tpu.memory_space<vmem>>, vector<1x32xf32>,
    %c20 = arith.constant 20 : index
    %c0_116 = arith.constant 0 : index
    %396 = vector.load %arg14[%c20, %c0_116] : memref<32x128xf32, #tpu.memory_space<vmem>>, vector<1x128xf32>
    %cst_117 = arith.constant dense<0.000000e+00> : vector<1x128xf32>
    %397 = tpu.matmul %394, %13, %cst_117 {dimension_numbers = #tpu.dot_dimension_numbers<[1], [0], [0], [1], [0, 0, 1, 1], [], []>} : vector<1x32xf32>, vector<32x128xf32>, vector<1x128xf32> -> vector<1x128xf32>
    %398 = arith.addf %396, %397 : vector<1x128xf32>
    %399 = arith.negf %398 : vector<1x128xf32>
    %400 = math.exp %399 : vector<1x128xf32>
    %cst_118 = arith.constant 1.000000e+00 : f32
    %401 = vector.broadcast %cst_118 : f32 to vector<1x128xf32>
    %402 = arith.addf %401, %400 : vector<1x128xf32>
    %403 = arith.divf %401, %402 : vector<1x128xf32>
    %404 = vector.extract_strided_slice %403 {offsets = [0, 0], sizes = [1, 32], strides = [1, 1]} : vector<1x128xf32> to vector<1x32xf32>
    %405 = vector.extract_strided_slice %403 {offsets = [0, 32], sizes = [1, 32], strides = [1, 1]} : vector<1x128xf32> to vector<1x32xf32>
    %406 = vector.extract_strided_slice %403 {offsets = [0, 96], sizes = [1, 32], strides = [1, 1]} : vector<1x128xf32> to vector<1x32xf32>
    %407 = vector.extract_strided_slice %398 {offsets = [0, 64], sizes = [1, 32], strides = [1, 1]} : vector<1x128xf32> to vector<1x32xf32>
    %408 = math.tanh %407 : vector<1x32xf32>
    %409 = arith.mulf %405, %392 : vector<1x32xf32>
    %410 = arith.mulf %404, %408 : vector<1x32xf32>
    %411 = arith.addf %409, %410 : vector<1x32xf32>
    %412 = math.tanh %411 : vector<1x32xf32>
    %413 = arith.mulf %406, %412 : vector<1x32xf32>
    %c20_119 = arith.constant 20 : index
    %c0_120 = arith.constant 0 : index
    %414 = vector.load %arg15[%c20_119, %c0_120] : memref<32x32xf32, #tpu.memory_space<vmem>>, vector<1x32xf32>
    tpu.vector_store %arg15[%c20_119, %c0_120], %413 {strides = array<i32>} : memref<32x32xf32, #tpu.memory_space<vmem>>, vector<1x32xf32>,
    %c21 = arith.constant 21 : index
    %c0_121 = arith.constant 0 : index
    %415 = vector.load %arg14[%c21, %c0_121] : memref<32x128xf32, #tpu.memory_space<vmem>>, vector<1x128xf32>
    %cst_122 = arith.constant dense<0.000000e+00> : vector<1x128xf32>
    %416 = tpu.matmul %413, %13, %cst_122 {dimension_numbers = #tpu.dot_dimension_numbers<[1], [0], [0], [1], [0, 0, 1, 1], [], []>} : vector<1x32xf32>, vector<32x128xf32>, vector<1x128xf32> -> vector<1x128xf32>
    %417 = arith.addf %415, %416 : vector<1x128xf32>
    %418 = arith.negf %417 : vector<1x128xf32>
    %419 = math.exp %418 : vector<1x128xf32>
    %cst_123 = arith.constant 1.000000e+00 : f32
    %420 = vector.broadcast %cst_123 : f32 to vector<1x128xf32>
    %421 = arith.addf %420, %419 : vector<1x128xf32>
    %422 = arith.divf %420, %421 : vector<1x128xf32>
    %423 = vector.extract_strided_slice %422 {offsets = [0, 0], sizes = [1, 32], strides = [1, 1]} : vector<1x128xf32> to vector<1x32xf32>
    %424 = vector.extract_strided_slice %422 {offsets = [0, 32], sizes = [1, 32], strides = [1, 1]} : vector<1x128xf32> to vector<1x32xf32>
    %425 = vector.extract_strided_slice %422 {offsets = [0, 96], sizes = [1, 32], strides = [1, 1]} : vector<1x128xf32> to vector<1x32xf32>
    %426 = vector.extract_strided_slice %417 {offsets = [0, 64], sizes = [1, 32], strides = [1, 1]} : vector<1x128xf32> to vector<1x32xf32>
    %427 = math.tanh %426 : vector<1x32xf32>
    %428 = arith.mulf %424, %411 : vector<1x32xf32>
    %429 = arith.mulf %423, %427 : vector<1x32xf32>
    %430 = arith.addf %428, %429 : vector<1x32xf32>
    %431 = math.tanh %430 : vector<1x32xf32>
    %432 = arith.mulf %425, %431 : vector<1x32xf32>
    %c21_124 = arith.constant 21 : index
    %c0_125 = arith.constant 0 : index
    %433 = vector.load %arg15[%c21_124, %c0_125] : memref<32x32xf32, #tpu.memory_space<vmem>>, vector<1x32xf32>
    tpu.vector_store %arg15[%c21_124, %c0_125], %432 {strides = array<i32>} : memref<32x32xf32, #tpu.memory_space<vmem>>, vector<1x32xf32>,
    %c22 = arith.constant 22 : index
    %c0_126 = arith.constant 0 : index
    %434 = vector.load %arg14[%c22, %c0_126] : memref<32x128xf32, #tpu.memory_space<vmem>>, vector<1x128xf32>
    %cst_127 = arith.constant dense<0.000000e+00> : vector<1x128xf32>
    %435 = tpu.matmul %432, %13, %cst_127 {dimension_numbers = #tpu.dot_dimension_numbers<[1], [0], [0], [1], [0, 0, 1, 1], [], []>} : vector<1x32xf32>, vector<32x128xf32>, vector<1x128xf32> -> vector<1x128xf32>
    %436 = arith.addf %434, %435 : vector<1x128xf32>
    %437 = arith.negf %436 : vector<1x128xf32>
    %438 = math.exp %437 : vector<1x128xf32>
    %cst_128 = arith.constant 1.000000e+00 : f32
    %439 = vector.broadcast %cst_128 : f32 to vector<1x128xf32>
    %440 = arith.addf %439, %438 : vector<1x128xf32>
    %441 = arith.divf %439, %440 : vector<1x128xf32>
    %442 = vector.extract_strided_slice %441 {offsets = [0, 0], sizes = [1, 32], strides = [1, 1]} : vector<1x128xf32> to vector<1x32xf32>
    %443 = vector.extract_strided_slice %441 {offsets = [0, 32], sizes = [1, 32], strides = [1, 1]} : vector<1x128xf32> to vector<1x32xf32>
    %444 = vector.extract_strided_slice %441 {offsets = [0, 96], sizes = [1, 32], strides = [1, 1]} : vector<1x128xf32> to vector<1x32xf32>
    %445 = vector.extract_strided_slice %436 {offsets = [0, 64], sizes = [1, 32], strides = [1, 1]} : vector<1x128xf32> to vector<1x32xf32>
    %446 = math.tanh %445 : vector<1x32xf32>
    %447 = arith.mulf %443, %430 : vector<1x32xf32>
    %448 = arith.mulf %442, %446 : vector<1x32xf32>
    %449 = arith.addf %447, %448 : vector<1x32xf32>
    %450 = math.tanh %449 : vector<1x32xf32>
    %451 = arith.mulf %444, %450 : vector<1x32xf32>
    %c22_129 = arith.constant 22 : index
    %c0_130 = arith.constant 0 : index
    %452 = vector.load %arg15[%c22_129, %c0_130] : memref<32x32xf32, #tpu.memory_space<vmem>>, vector<1x32xf32>
    tpu.vector_store %arg15[%c22_129, %c0_130], %451 {strides = array<i32>} : memref<32x32xf32, #tpu.memory_space<vmem>>, vector<1x32xf32>,
    %c23 = arith.constant 23 : index
    %c0_131 = arith.constant 0 : index
    %453 = vector.load %arg14[%c23, %c0_131] : memref<32x128xf32, #tpu.memory_space<vmem>>, vector<1x128xf32>
    %cst_132 = arith.constant dense<0.000000e+00> : vector<1x128xf32>
    %454 = tpu.matmul %451, %13, %cst_132 {dimension_numbers = #tpu.dot_dimension_numbers<[1], [0], [0], [1], [0, 0, 1, 1], [], []>} : vector<1x32xf32>, vector<32x128xf32>, vector<1x128xf32> -> vector<1x128xf32>
    %455 = arith.addf %453, %454 : vector<1x128xf32>
    %456 = arith.negf %455 : vector<1x128xf32>
    %457 = math.exp %456 : vector<1x128xf32>
    %cst_133 = arith.constant 1.000000e+00 : f32
    %458 = vector.broadcast %cst_133 : f32 to vector<1x128xf32>
    %459 = arith.addf %458, %457 : vector<1x128xf32>
    %460 = arith.divf %458, %459 : vector<1x128xf32>
    %461 = vector.extract_strided_slice %460 {offsets = [0, 0], sizes = [1, 32], strides = [1, 1]} : vector<1x128xf32> to vector<1x32xf32>
    %462 = vector.extract_strided_slice %460 {offsets = [0, 32], sizes = [1, 32], strides = [1, 1]} : vector<1x128xf32> to vector<1x32xf32>
    %463 = vector.extract_strided_slice %460 {offsets = [0, 96], sizes = [1, 32], strides = [1, 1]} : vector<1x128xf32> to vector<1x32xf32>
    %464 = vector.extract_strided_slice %455 {offsets = [0, 64], sizes = [1, 32], strides = [1, 1]} : vector<1x128xf32> to vector<1x32xf32>
    %465 = math.tanh %464 : vector<1x32xf32>
    %466 = arith.mulf %462, %449 : vector<1x32xf32>
    %467 = arith.mulf %461, %465 : vector<1x32xf32>
    %468 = arith.addf %466, %467 : vector<1x32xf32>
    %469 = math.tanh %468 : vector<1x32xf32>
    %470 = arith.mulf %463, %469 : vector<1x32xf32>
    %c23_134 = arith.constant 23 : index
    %c0_135 = arith.constant 0 : index
    %471 = vector.load %arg15[%c23_134, %c0_135] : memref<32x32xf32, #tpu.memory_space<vmem>>, vector<1x32xf32>
    tpu.vector_store %arg15[%c23_134, %c0_135], %470 {strides = array<i32>} : memref<32x32xf32, #tpu.memory_space<vmem>>, vector<1x32xf32>,
    %c24 = arith.constant 24 : index
    %c0_136 = arith.constant 0 : index
    %472 = vector.load %arg14[%c24, %c0_136] : memref<32x128xf32, #tpu.memory_space<vmem>>, vector<1x128xf32>
    %cst_137 = arith.constant dense<0.000000e+00> : vector<1x128xf32>
    %473 = tpu.matmul %470, %13, %cst_137 {dimension_numbers = #tpu.dot_dimension_numbers<[1], [0], [0], [1], [0, 0, 1, 1], [], []>} : vector<1x32xf32>, vector<32x128xf32>, vector<1x128xf32> -> vector<1x128xf32>
    %474 = arith.addf %472, %473 : vector<1x128xf32>
    %475 = arith.negf %474 : vector<1x128xf32>
    %476 = math.exp %475 : vector<1x128xf32>
    %cst_138 = arith.constant 1.000000e+00 : f32
    %477 = vector.broadcast %cst_138 : f32 to vector<1x128xf32>
    %478 = arith.addf %477, %476 : vector<1x128xf32>
    %479 = arith.divf %477, %478 : vector<1x128xf32>
    %480 = vector.extract_strided_slice %479 {offsets = [0, 0], sizes = [1, 32], strides = [1, 1]} : vector<1x128xf32> to vector<1x32xf32>
    %481 = vector.extract_strided_slice %479 {offsets = [0, 32], sizes = [1, 32], strides = [1, 1]} : vector<1x128xf32> to vector<1x32xf32>
    %482 = vector.extract_strided_slice %479 {offsets = [0, 96], sizes = [1, 32], strides = [1, 1]} : vector<1x128xf32> to vector<1x32xf32>
    %483 = vector.extract_strided_slice %474 {offsets = [0, 64], sizes = [1, 32], strides = [1, 1]} : vector<1x128xf32> to vector<1x32xf32>
    %484 = math.tanh %483 : vector<1x32xf32>
    %485 = arith.mulf %481, %468 : vector<1x32xf32>
    %486 = arith.mulf %480, %484 : vector<1x32xf32>
    %487 = arith.addf %485, %486 : vector<1x32xf32>
    %488 = math.tanh %487 : vector<1x32xf32>
    %489 = arith.mulf %482, %488 : vector<1x32xf32>
    %c24_139 = arith.constant 24 : index
    %c0_140 = arith.constant 0 : index
    %490 = vector.load %arg15[%c24_139, %c0_140] : memref<32x32xf32, #tpu.memory_space<vmem>>, vector<1x32xf32>
    tpu.vector_store %arg15[%c24_139, %c0_140], %489 {strides = array<i32>} : memref<32x32xf32, #tpu.memory_space<vmem>>, vector<1x32xf32>,
    %c25 = arith.constant 25 : index
    %c0_141 = arith.constant 0 : index
    %491 = vector.load %arg14[%c25, %c0_141] : memref<32x128xf32, #tpu.memory_space<vmem>>, vector<1x128xf32>
    %cst_142 = arith.constant dense<0.000000e+00> : vector<1x128xf32>
    %492 = tpu.matmul %489, %13, %cst_142 {dimension_numbers = #tpu.dot_dimension_numbers<[1], [0], [0], [1], [0, 0, 1, 1], [], []>} : vector<1x32xf32>, vector<32x128xf32>, vector<1x128xf32> -> vector<1x128xf32>
    %493 = arith.addf %491, %492 : vector<1x128xf32>
    %494 = arith.negf %493 : vector<1x128xf32>
    %495 = math.exp %494 : vector<1x128xf32>
    %cst_143 = arith.constant 1.000000e+00 : f32
    %496 = vector.broadcast %cst_143 : f32 to vector<1x128xf32>
    %497 = arith.addf %496, %495 : vector<1x128xf32>
    %498 = arith.divf %496, %497 : vector<1x128xf32>
    %499 = vector.extract_strided_slice %498 {offsets = [0, 0], sizes = [1, 32], strides = [1, 1]} : vector<1x128xf32> to vector<1x32xf32>
    %500 = vector.extract_strided_slice %498 {offsets = [0, 32], sizes = [1, 32], strides = [1, 1]} : vector<1x128xf32> to vector<1x32xf32>
    %501 = vector.extract_strided_slice %498 {offsets = [0, 96], sizes = [1, 32], strides = [1, 1]} : vector<1x128xf32> to vector<1x32xf32>
    %502 = vector.extract_strided_slice %493 {offsets = [0, 64], sizes = [1, 32], strides = [1, 1]} : vector<1x128xf32> to vector<1x32xf32>
    %503 = math.tanh %502 : vector<1x32xf32>
    %504 = arith.mulf %500, %487 : vector<1x32xf32>
    %505 = arith.mulf %499, %503 : vector<1x32xf32>
    %506 = arith.addf %504, %505 : vector<1x32xf32>
    %507 = math.tanh %506 : vector<1x32xf32>
    %508 = arith.mulf %501, %507 : vector<1x32xf32>
    %c25_144 = arith.constant 25 : index
    %c0_145 = arith.constant 0 : index
    %509 = vector.load %arg15[%c25_144, %c0_145] : memref<32x32xf32, #tpu.memory_space<vmem>>, vector<1x32xf32>
    tpu.vector_store %arg15[%c25_144, %c0_145], %508 {strides = array<i32>} : memref<32x32xf32, #tpu.memory_space<vmem>>, vector<1x32xf32>,
    %c26 = arith.constant 26 : index
    %c0_146 = arith.constant 0 : index
    %510 = vector.load %arg14[%c26, %c0_146] : memref<32x128xf32, #tpu.memory_space<vmem>>, vector<1x128xf32>
    %cst_147 = arith.constant dense<0.000000e+00> : vector<1x128xf32>
    %511 = tpu.matmul %508, %13, %cst_147 {dimension_numbers = #tpu.dot_dimension_numbers<[1], [0], [0], [1], [0, 0, 1, 1], [], []>} : vector<1x32xf32>, vector<32x128xf32>, vector<1x128xf32> -> vector<1x128xf32>
    %512 = arith.addf %510, %511 : vector<1x128xf32>
    %513 = arith.negf %512 : vector<1x128xf32>
    %514 = math.exp %513 : vector<1x128xf32>
    %cst_148 = arith.constant 1.000000e+00 : f32
    %515 = vector.broadcast %cst_148 : f32 to vector<1x128xf32>
    %516 = arith.addf %515, %514 : vector<1x128xf32>
    %517 = arith.divf %515, %516 : vector<1x128xf32>
    %518 = vector.extract_strided_slice %517 {offsets = [0, 0], sizes = [1, 32], strides = [1, 1]} : vector<1x128xf32> to vector<1x32xf32>
    %519 = vector.extract_strided_slice %517 {offsets = [0, 32], sizes = [1, 32], strides = [1, 1]} : vector<1x128xf32> to vector<1x32xf32>
    %520 = vector.extract_strided_slice %517 {offsets = [0, 96], sizes = [1, 32], strides = [1, 1]} : vector<1x128xf32> to vector<1x32xf32>
    %521 = vector.extract_strided_slice %512 {offsets = [0, 64], sizes = [1, 32], strides = [1, 1]} : vector<1x128xf32> to vector<1x32xf32>
    %522 = math.tanh %521 : vector<1x32xf32>
    %523 = arith.mulf %519, %506 : vector<1x32xf32>
    %524 = arith.mulf %518, %522 : vector<1x32xf32>
    %525 = arith.addf %523, %524 : vector<1x32xf32>
    %526 = math.tanh %525 : vector<1x32xf32>
    %527 = arith.mulf %520, %526 : vector<1x32xf32>
    %c26_149 = arith.constant 26 : index
    %c0_150 = arith.constant 0 : index
    %528 = vector.load %arg15[%c26_149, %c0_150] : memref<32x32xf32, #tpu.memory_space<vmem>>, vector<1x32xf32>
    tpu.vector_store %arg15[%c26_149, %c0_150], %527 {strides = array<i32>} : memref<32x32xf32, #tpu.memory_space<vmem>>, vector<1x32xf32>,
    %c27 = arith.constant 27 : index
    %c0_151 = arith.constant 0 : index
    %529 = vector.load %arg14[%c27, %c0_151] : memref<32x128xf32, #tpu.memory_space<vmem>>, vector<1x128xf32>
    %cst_152 = arith.constant dense<0.000000e+00> : vector<1x128xf32>
    %530 = tpu.matmul %527, %13, %cst_152 {dimension_numbers = #tpu.dot_dimension_numbers<[1], [0], [0], [1], [0, 0, 1, 1], [], []>} : vector<1x32xf32>, vector<32x128xf32>, vector<1x128xf32> -> vector<1x128xf32>
    %531 = arith.addf %529, %530 : vector<1x128xf32>
    %532 = arith.negf %531 : vector<1x128xf32>
    %533 = math.exp %532 : vector<1x128xf32>
    %cst_153 = arith.constant 1.000000e+00 : f32
    %534 = vector.broadcast %cst_153 : f32 to vector<1x128xf32>
    %535 = arith.addf %534, %533 : vector<1x128xf32>
    %536 = arith.divf %534, %535 : vector<1x128xf32>
    %537 = vector.extract_strided_slice %536 {offsets = [0, 0], sizes = [1, 32], strides = [1, 1]} : vector<1x128xf32> to vector<1x32xf32>
    %538 = vector.extract_strided_slice %536 {offsets = [0, 32], sizes = [1, 32], strides = [1, 1]} : vector<1x128xf32> to vector<1x32xf32>
    %539 = vector.extract_strided_slice %536 {offsets = [0, 96], sizes = [1, 32], strides = [1, 1]} : vector<1x128xf32> to vector<1x32xf32>
    %540 = vector.extract_strided_slice %531 {offsets = [0, 64], sizes = [1, 32], strides = [1, 1]} : vector<1x128xf32> to vector<1x32xf32>
    %541 = math.tanh %540 : vector<1x32xf32>
    %542 = arith.mulf %538, %525 : vector<1x32xf32>
    %543 = arith.mulf %537, %541 : vector<1x32xf32>
    %544 = arith.addf %542, %543 : vector<1x32xf32>
    %545 = math.tanh %544 : vector<1x32xf32>
    %546 = arith.mulf %539, %545 : vector<1x32xf32>
    %c27_154 = arith.constant 27 : index
    %c0_155 = arith.constant 0 : index
    %547 = vector.load %arg15[%c27_154, %c0_155] : memref<32x32xf32, #tpu.memory_space<vmem>>, vector<1x32xf32>
    tpu.vector_store %arg15[%c27_154, %c0_155], %546 {strides = array<i32>} : memref<32x32xf32, #tpu.memory_space<vmem>>, vector<1x32xf32>,
    %c28 = arith.constant 28 : index
    %c0_156 = arith.constant 0 : index
    %548 = vector.load %arg14[%c28, %c0_156] : memref<32x128xf32, #tpu.memory_space<vmem>>, vector<1x128xf32>
    %cst_157 = arith.constant dense<0.000000e+00> : vector<1x128xf32>
    %549 = tpu.matmul %546, %13, %cst_157 {dimension_numbers = #tpu.dot_dimension_numbers<[1], [0], [0], [1], [0, 0, 1, 1], [], []>} : vector<1x32xf32>, vector<32x128xf32>, vector<1x128xf32> -> vector<1x128xf32>
    %550 = arith.addf %548, %549 : vector<1x128xf32>
    %551 = arith.negf %550 : vector<1x128xf32>
    %552 = math.exp %551 : vector<1x128xf32>
    %cst_158 = arith.constant 1.000000e+00 : f32
    %553 = vector.broadcast %cst_158 : f32 to vector<1x128xf32>
    %554 = arith.addf %553, %552 : vector<1x128xf32>
    %555 = arith.divf %553, %554 : vector<1x128xf32>
    %556 = vector.extract_strided_slice %555 {offsets = [0, 0], sizes = [1, 32], strides = [1, 1]} : vector<1x128xf32> to vector<1x32xf32>
    %557 = vector.extract_strided_slice %555 {offsets = [0, 32], sizes = [1, 32], strides = [1, 1]} : vector<1x128xf32> to vector<1x32xf32>
    %558 = vector.extract_strided_slice %555 {offsets = [0, 96], sizes = [1, 32], strides = [1, 1]} : vector<1x128xf32> to vector<1x32xf32>
    %559 = vector.extract_strided_slice %550 {offsets = [0, 64], sizes = [1, 32], strides = [1, 1]} : vector<1x128xf32> to vector<1x32xf32>
    %560 = math.tanh %559 : vector<1x32xf32>
    %561 = arith.mulf %557, %544 : vector<1x32xf32>
    %562 = arith.mulf %556, %560 : vector<1x32xf32>
    %563 = arith.addf %561, %562 : vector<1x32xf32>
    %564 = math.tanh %563 : vector<1x32xf32>
    %565 = arith.mulf %558, %564 : vector<1x32xf32>
    %c28_159 = arith.constant 28 : index
    %c0_160 = arith.constant 0 : index
    %566 = vector.load %arg15[%c28_159, %c0_160] : memref<32x32xf32, #tpu.memory_space<vmem>>, vector<1x32xf32>
    tpu.vector_store %arg15[%c28_159, %c0_160], %565 {strides = array<i32>} : memref<32x32xf32, #tpu.memory_space<vmem>>, vector<1x32xf32>,
    %c29 = arith.constant 29 : index
    %c0_161 = arith.constant 0 : index
    %567 = vector.load %arg14[%c29, %c0_161] : memref<32x128xf32, #tpu.memory_space<vmem>>, vector<1x128xf32>
    %cst_162 = arith.constant dense<0.000000e+00> : vector<1x128xf32>
    %568 = tpu.matmul %565, %13, %cst_162 {dimension_numbers = #tpu.dot_dimension_numbers<[1], [0], [0], [1], [0, 0, 1, 1], [], []>} : vector<1x32xf32>, vector<32x128xf32>, vector<1x128xf32> -> vector<1x128xf32>
    %569 = arith.addf %567, %568 : vector<1x128xf32>
    %570 = arith.negf %569 : vector<1x128xf32>
    %571 = math.exp %570 : vector<1x128xf32>
    %cst_163 = arith.constant 1.000000e+00 : f32
    %572 = vector.broadcast %cst_163 : f32 to vector<1x128xf32>
    %573 = arith.addf %572, %571 : vector<1x128xf32>
    %574 = arith.divf %572, %573 : vector<1x128xf32>
    %575 = vector.extract_strided_slice %574 {offsets = [0, 0], sizes = [1, 32], strides = [1, 1]} : vector<1x128xf32> to vector<1x32xf32>
    %576 = vector.extract_strided_slice %574 {offsets = [0, 32], sizes = [1, 32], strides = [1, 1]} : vector<1x128xf32> to vector<1x32xf32>
    %577 = vector.extract_strided_slice %574 {offsets = [0, 96], sizes = [1, 32], strides = [1, 1]} : vector<1x128xf32> to vector<1x32xf32>
    %578 = vector.extract_strided_slice %569 {offsets = [0, 64], sizes = [1, 32], strides = [1, 1]} : vector<1x128xf32> to vector<1x32xf32>
    %579 = math.tanh %578 : vector<1x32xf32>
    %580 = arith.mulf %576, %563 : vector<1x32xf32>
    %581 = arith.mulf %575, %579 : vector<1x32xf32>
    %582 = arith.addf %580, %581 : vector<1x32xf32>
    %583 = math.tanh %582 : vector<1x32xf32>
    %584 = arith.mulf %577, %583 : vector<1x32xf32>
    %c29_164 = arith.constant 29 : index
    %c0_165 = arith.constant 0 : index
    %585 = vector.load %arg15[%c29_164, %c0_165] : memref<32x32xf32, #tpu.memory_space<vmem>>, vector<1x32xf32>
    tpu.vector_store %arg15[%c29_164, %c0_165], %584 {strides = array<i32>} : memref<32x32xf32, #tpu.memory_space<vmem>>, vector<1x32xf32>,
    %c30 = arith.constant 30 : index
    %c0_166 = arith.constant 0 : index
    %586 = vector.load %arg14[%c30, %c0_166] : memref<32x128xf32, #tpu.memory_space<vmem>>, vector<1x128xf32>
    %cst_167 = arith.constant dense<0.000000e+00> : vector<1x128xf32>
    %587 = tpu.matmul %584, %13, %cst_167 {dimension_numbers = #tpu.dot_dimension_numbers<[1], [0], [0], [1], [0, 0, 1, 1], [], []>} : vector<1x32xf32>, vector<32x128xf32>, vector<1x128xf32> -> vector<1x128xf32>
    %588 = arith.addf %586, %587 : vector<1x128xf32>
    %589 = arith.negf %588 : vector<1x128xf32>
    %590 = math.exp %589 : vector<1x128xf32>
    %cst_168 = arith.constant 1.000000e+00 : f32
    %591 = vector.broadcast %cst_168 : f32 to vector<1x128xf32>
    %592 = arith.addf %591, %590 : vector<1x128xf32>
    %593 = arith.divf %591, %592 : vector<1x128xf32>
    %594 = vector.extract_strided_slice %593 {offsets = [0, 0], sizes = [1, 32], strides = [1, 1]} : vector<1x128xf32> to vector<1x32xf32>
    %595 = vector.extract_strided_slice %593 {offsets = [0, 32], sizes = [1, 32], strides = [1, 1]} : vector<1x128xf32> to vector<1x32xf32>
    %596 = vector.extract_strided_slice %593 {offsets = [0, 96], sizes = [1, 32], strides = [1, 1]} : vector<1x128xf32> to vector<1x32xf32>
    %597 = vector.extract_strided_slice %588 {offsets = [0, 64], sizes = [1, 32], strides = [1, 1]} : vector<1x128xf32> to vector<1x32xf32>
    %598 = math.tanh %597 : vector<1x32xf32>
    %599 = arith.mulf %595, %582 : vector<1x32xf32>
    %600 = arith.mulf %594, %598 : vector<1x32xf32>
    %601 = arith.addf %599, %600 : vector<1x32xf32>
    %602 = math.tanh %601 : vector<1x32xf32>
    %603 = arith.mulf %596, %602 : vector<1x32xf32>
    %c30_169 = arith.constant 30 : index
    %c0_170 = arith.constant 0 : index
    %604 = vector.load %arg15[%c30_169, %c0_170] : memref<32x32xf32, #tpu.memory_space<vmem>>, vector<1x32xf32>
    tpu.vector_store %arg15[%c30_169, %c0_170], %603 {strides = array<i32>} : memref<32x32xf32, #tpu.memory_space<vmem>>, vector<1x32xf32>,
    %c31 = arith.constant 31 : index
    %c0_171 = arith.constant 0 : index
    %605 = vector.load %arg14[%c31, %c0_171] : memref<32x128xf32, #tpu.memory_space<vmem>>, vector<1x128xf32>
    %cst_172 = arith.constant dense<0.000000e+00> : vector<1x128xf32>
    %606 = tpu.matmul %603, %13, %cst_172 {dimension_numbers = #tpu.dot_dimension_numbers<[1], [0], [0], [1], [0, 0, 1, 1], [], []>} : vector<1x32xf32>, vector<32x128xf32>, vector<1x128xf32> -> vector<1x128xf32>
    %607 = arith.addf %605, %606 : vector<1x128xf32>
    %608 = arith.negf %607 : vector<1x128xf32>
    %609 = math.exp %608 : vector<1x128xf32>
    %cst_173 = arith.constant 1.000000e+00 : f32
    %610 = vector.broadcast %cst_173 : f32 to vector<1x128xf32>
    %611 = arith.addf %610, %609 : vector<1x128xf32>
    %612 = arith.divf %610, %611 : vector<1x128xf32>
    %613 = vector.extract_strided_slice %612 {offsets = [0, 0], sizes = [1, 32], strides = [1, 1]} : vector<1x128xf32> to vector<1x32xf32>
    %614 = vector.extract_strided_slice %612 {offsets = [0, 32], sizes = [1, 32], strides = [1, 1]} : vector<1x128xf32> to vector<1x32xf32>
    %615 = vector.extract_strided_slice %612 {offsets = [0, 96], sizes = [1, 32], strides = [1, 1]} : vector<1x128xf32> to vector<1x32xf32>
    %616 = vector.extract_strided_slice %607 {offsets = [0, 64], sizes = [1, 32], strides = [1, 1]} : vector<1x128xf32> to vector<1x32xf32>
    %617 = math.tanh %616 : vector<1x32xf32>
    %618 = arith.mulf %614, %601 : vector<1x32xf32>
    %619 = arith.mulf %613, %617 : vector<1x32xf32>
    %620 = arith.addf %618, %619 : vector<1x32xf32>
    %621 = math.tanh %620 : vector<1x32xf32>
    %622 = arith.mulf %615, %621 : vector<1x32xf32>
    %c31_174 = arith.constant 31 : index
    %c0_175 = arith.constant 0 : index
    %623 = vector.load %arg15[%c31_174, %c0_175] : memref<32x32xf32, #tpu.memory_space<vmem>>, vector<1x32xf32>
    tpu.vector_store %arg15[%c31_174, %c0_175], %622 {strides = array<i32>} : memref<32x32xf32, #tpu.memory_space<vmem>>, vector<1x32xf32>,
    %c0_176 = arith.constant 0 : index
    %c0_177 = arith.constant 0 : index
    %624 = vector.load %arg15[%c0_176, %c0_177] : memref<32x32xf32, #tpu.memory_space<vmem>>, vector<32x32xf32>
    %c0_178 = arith.constant 0 : index
    %c0_179 = arith.constant 0 : index
    %625 = vector.load %arg6[%c0_178, %c0_179] : memref<32x128xf32, #tpu.memory_space<vmem>>, vector<32x128xf32>
    %cst_180 = arith.constant dense<0.000000e+00> : vector<32x128xf32>
    %626 = tpu.matmul %624, %625, %cst_180 {dimension_numbers = #tpu.dot_dimension_numbers<[1], [0], [0], [1], [0, 0, 1, 1], [], []>} : vector<32x32xf32>, vector<32x128xf32>, vector<32x128xf32> -> vector<32x128xf32>
    %c0_181 = arith.constant 0 : index
    %c0_182 = arith.constant 0 : index
    %627 = vector.load %arg8[%c0_181, %c0_182] : memref<1x128xf32, #tpu.memory_space<vmem>>, vector<1x128xf32>
    %628 = vector.broadcast %627 : vector<1x128xf32> to vector<32x128xf32>
    %629 = arith.addf %626, %628 : vector<32x128xf32>
    %c0_183 = arith.constant 0 : index
    %c0_184 = arith.constant 0 : index
    %630 = vector.load %arg14[%c0_183, %c0_184] : memref<32x128xf32, #tpu.memory_space<vmem>>, vector<32x128xf32>
    tpu.vector_store %arg14[%c0_183, %c0_184], %629 {strides = array<i32>} : memref<32x128xf32, #tpu.memory_space<vmem>>, vector<32x128xf32>,
    %c0_185 = arith.constant 0 : index
    %c0_186 = arith.constant 0 : index
    %631 = vector.load %arg7[%c0_185, %c0_186] : memref<32x128xf32, #tpu.memory_space<vmem>>, vector<32x128xf32>
    %cst_187 = arith.constant 0.000000e+00 : f32
    %632 = vector.broadcast %cst_187 : f32 to vector<1x32xf32>
    %cst_188 = arith.constant 0.000000e+00 : f32
    %633 = vector.broadcast %cst_188 : f32 to vector<1x32xf32>
    %c0_189 = arith.constant 0 : index
    %c0_190 = arith.constant 0 : index
    %634 = vector.load %arg14[%c0_189, %c0_190] : memref<32x128xf32, #tpu.memory_space<vmem>>, vector<1x128xf32>
    %cst_191 = arith.constant dense<0.000000e+00> : vector<1x128xf32>
    %635 = tpu.matmul %632, %631, %cst_191 {dimension_numbers = #tpu.dot_dimension_numbers<[1], [0], [0], [1], [0, 0, 1, 1], [], []>} : vector<1x32xf32>, vector<32x128xf32>, vector<1x128xf32> -> vector<1x128xf32>
    %636 = arith.addf %634, %635 : vector<1x128xf32>
    %637 = arith.negf %636 : vector<1x128xf32>
    %638 = math.exp %637 : vector<1x128xf32>
    %cst_192 = arith.constant 1.000000e+00 : f32
    %639 = vector.broadcast %cst_192 : f32 to vector<1x128xf32>
    %640 = arith.addf %639, %638 : vector<1x128xf32>
    %641 = arith.divf %639, %640 : vector<1x128xf32>
    %642 = vector.extract_strided_slice %641 {offsets = [0, 0], sizes = [1, 32], strides = [1, 1]} : vector<1x128xf32> to vector<1x32xf32>
    %643 = vector.extract_strided_slice %641 {offsets = [0, 32], sizes = [1, 32], strides = [1, 1]} : vector<1x128xf32> to vector<1x32xf32>
    %644 = vector.extract_strided_slice %641 {offsets = [0, 96], sizes = [1, 32], strides = [1, 1]} : vector<1x128xf32> to vector<1x32xf32>
    %645 = vector.extract_strided_slice %636 {offsets = [0, 64], sizes = [1, 32], strides = [1, 1]} : vector<1x128xf32> to vector<1x32xf32>
    %646 = math.tanh %645 : vector<1x32xf32>
    %647 = arith.mulf %643, %633 : vector<1x32xf32>
    %648 = arith.mulf %642, %646 : vector<1x32xf32>
    %649 = arith.addf %647, %648 : vector<1x32xf32>
    %650 = math.tanh %649 : vector<1x32xf32>
    %651 = arith.mulf %644, %650 : vector<1x32xf32>
    %c1_193 = arith.constant 1 : index
    %c0_194 = arith.constant 0 : index
    %652 = vector.load %arg14[%c1_193, %c0_194] : memref<32x128xf32, #tpu.memory_space<vmem>>, vector<1x128xf32>
    %cst_195 = arith.constant dense<0.000000e+00> : vector<1x128xf32>
    %653 = tpu.matmul %651, %631, %cst_195 {dimension_numbers = #tpu.dot_dimension_numbers<[1], [0], [0], [1], [0, 0, 1, 1], [], []>} : vector<1x32xf32>, vector<32x128xf32>, vector<1x128xf32> -> vector<1x128xf32>
    %654 = arith.addf %652, %653 : vector<1x128xf32>
    %655 = arith.negf %654 : vector<1x128xf32>
    %656 = math.exp %655 : vector<1x128xf32>
    %cst_196 = arith.constant 1.000000e+00 : f32
    %657 = vector.broadcast %cst_196 : f32 to vector<1x128xf32>
    %658 = arith.addf %657, %656 : vector<1x128xf32>
    %659 = arith.divf %657, %658 : vector<1x128xf32>
    %660 = vector.extract_strided_slice %659 {offsets = [0, 0], sizes = [1, 32], strides = [1, 1]} : vector<1x128xf32> to vector<1x32xf32>
    %661 = vector.extract_strided_slice %659 {offsets = [0, 32], sizes = [1, 32], strides = [1, 1]} : vector<1x128xf32> to vector<1x32xf32>
    %662 = vector.extract_strided_slice %659 {offsets = [0, 96], sizes = [1, 32], strides = [1, 1]} : vector<1x128xf32> to vector<1x32xf32>
    %663 = vector.extract_strided_slice %654 {offsets = [0, 64], sizes = [1, 32], strides = [1, 1]} : vector<1x128xf32> to vector<1x32xf32>
    %664 = math.tanh %663 : vector<1x32xf32>
    %665 = arith.mulf %661, %649 : vector<1x32xf32>
    %666 = arith.mulf %660, %664 : vector<1x32xf32>
    %667 = arith.addf %665, %666 : vector<1x32xf32>
    %668 = math.tanh %667 : vector<1x32xf32>
    %669 = arith.mulf %662, %668 : vector<1x32xf32>
    %c2_197 = arith.constant 2 : index
    %c0_198 = arith.constant 0 : index
    %670 = vector.load %arg14[%c2_197, %c0_198] : memref<32x128xf32, #tpu.memory_space<vmem>>, vector<1x128xf32>
    %cst_199 = arith.constant dense<0.000000e+00> : vector<1x128xf32>
    %671 = tpu.matmul %669, %631, %cst_199 {dimension_numbers = #tpu.dot_dimension_numbers<[1], [0], [0], [1], [0, 0, 1, 1], [], []>} : vector<1x32xf32>, vector<32x128xf32>, vector<1x128xf32> -> vector<1x128xf32>
    %672 = arith.addf %670, %671 : vector<1x128xf32>
    %673 = arith.negf %672 : vector<1x128xf32>
    %674 = math.exp %673 : vector<1x128xf32>
    %cst_200 = arith.constant 1.000000e+00 : f32
    %675 = vector.broadcast %cst_200 : f32 to vector<1x128xf32>
    %676 = arith.addf %675, %674 : vector<1x128xf32>
    %677 = arith.divf %675, %676 : vector<1x128xf32>
    %678 = vector.extract_strided_slice %677 {offsets = [0, 0], sizes = [1, 32], strides = [1, 1]} : vector<1x128xf32> to vector<1x32xf32>
    %679 = vector.extract_strided_slice %677 {offsets = [0, 32], sizes = [1, 32], strides = [1, 1]} : vector<1x128xf32> to vector<1x32xf32>
    %680 = vector.extract_strided_slice %677 {offsets = [0, 96], sizes = [1, 32], strides = [1, 1]} : vector<1x128xf32> to vector<1x32xf32>
    %681 = vector.extract_strided_slice %672 {offsets = [0, 64], sizes = [1, 32], strides = [1, 1]} : vector<1x128xf32> to vector<1x32xf32>
    %682 = math.tanh %681 : vector<1x32xf32>
    %683 = arith.mulf %679, %667 : vector<1x32xf32>
    %684 = arith.mulf %678, %682 : vector<1x32xf32>
    %685 = arith.addf %683, %684 : vector<1x32xf32>
    %686 = math.tanh %685 : vector<1x32xf32>
    %687 = arith.mulf %680, %686 : vector<1x32xf32>
    %c3_201 = arith.constant 3 : index
    %c0_202 = arith.constant 0 : index
    %688 = vector.load %arg14[%c3_201, %c0_202] : memref<32x128xf32, #tpu.memory_space<vmem>>, vector<1x128xf32>
    %cst_203 = arith.constant dense<0.000000e+00> : vector<1x128xf32>
    %689 = tpu.matmul %687, %631, %cst_203 {dimension_numbers = #tpu.dot_dimension_numbers<[1], [0], [0], [1], [0, 0, 1, 1], [], []>} : vector<1x32xf32>, vector<32x128xf32>, vector<1x128xf32> -> vector<1x128xf32>
    %690 = arith.addf %688, %689 : vector<1x128xf32>
    %691 = arith.negf %690 : vector<1x128xf32>
    %692 = math.exp %691 : vector<1x128xf32>
    %cst_204 = arith.constant 1.000000e+00 : f32
    %693 = vector.broadcast %cst_204 : f32 to vector<1x128xf32>
    %694 = arith.addf %693, %692 : vector<1x128xf32>
    %695 = arith.divf %693, %694 : vector<1x128xf32>
    %696 = vector.extract_strided_slice %695 {offsets = [0, 0], sizes = [1, 32], strides = [1, 1]} : vector<1x128xf32> to vector<1x32xf32>
    %697 = vector.extract_strided_slice %695 {offsets = [0, 32], sizes = [1, 32], strides = [1, 1]} : vector<1x128xf32> to vector<1x32xf32>
    %698 = vector.extract_strided_slice %695 {offsets = [0, 96], sizes = [1, 32], strides = [1, 1]} : vector<1x128xf32> to vector<1x32xf32>
    %699 = vector.extract_strided_slice %690 {offsets = [0, 64], sizes = [1, 32], strides = [1, 1]} : vector<1x128xf32> to vector<1x32xf32>
    %700 = math.tanh %699 : vector<1x32xf32>
    %701 = arith.mulf %697, %685 : vector<1x32xf32>
    %702 = arith.mulf %696, %700 : vector<1x32xf32>
    %703 = arith.addf %701, %702 : vector<1x32xf32>
    %704 = math.tanh %703 : vector<1x32xf32>
    %705 = arith.mulf %698, %704 : vector<1x32xf32>
    %c4_205 = arith.constant 4 : index
    %c0_206 = arith.constant 0 : index
    %706 = vector.load %arg14[%c4_205, %c0_206] : memref<32x128xf32, #tpu.memory_space<vmem>>, vector<1x128xf32>
    %cst_207 = arith.constant dense<0.000000e+00> : vector<1x128xf32>
    %707 = tpu.matmul %705, %631, %cst_207 {dimension_numbers = #tpu.dot_dimension_numbers<[1], [0], [0], [1], [0, 0, 1, 1], [], []>} : vector<1x32xf32>, vector<32x128xf32>, vector<1x128xf32> -> vector<1x128xf32>
    %708 = arith.addf %706, %707 : vector<1x128xf32>
    %709 = arith.negf %708 : vector<1x128xf32>
    %710 = math.exp %709 : vector<1x128xf32>
    %cst_208 = arith.constant 1.000000e+00 : f32
    %711 = vector.broadcast %cst_208 : f32 to vector<1x128xf32>
    %712 = arith.addf %711, %710 : vector<1x128xf32>
    %713 = arith.divf %711, %712 : vector<1x128xf32>
    %714 = vector.extract_strided_slice %713 {offsets = [0, 0], sizes = [1, 32], strides = [1, 1]} : vector<1x128xf32> to vector<1x32xf32>
    %715 = vector.extract_strided_slice %713 {offsets = [0, 32], sizes = [1, 32], strides = [1, 1]} : vector<1x128xf32> to vector<1x32xf32>
    %716 = vector.extract_strided_slice %713 {offsets = [0, 96], sizes = [1, 32], strides = [1, 1]} : vector<1x128xf32> to vector<1x32xf32>
    %717 = vector.extract_strided_slice %708 {offsets = [0, 64], sizes = [1, 32], strides = [1, 1]} : vector<1x128xf32> to vector<1x32xf32>
    %718 = math.tanh %717 : vector<1x32xf32>
    %719 = arith.mulf %715, %703 : vector<1x32xf32>
    %720 = arith.mulf %714, %718 : vector<1x32xf32>
    %721 = arith.addf %719, %720 : vector<1x32xf32>
    %722 = math.tanh %721 : vector<1x32xf32>
    %723 = arith.mulf %716, %722 : vector<1x32xf32>
    %c5_209 = arith.constant 5 : index
    %c0_210 = arith.constant 0 : index
    %724 = vector.load %arg14[%c5_209, %c0_210] : memref<32x128xf32, #tpu.memory_space<vmem>>, vector<1x128xf32>
    %cst_211 = arith.constant dense<0.000000e+00> : vector<1x128xf32>
    %725 = tpu.matmul %723, %631, %cst_211 {dimension_numbers = #tpu.dot_dimension_numbers<[1], [0], [0], [1], [0, 0, 1, 1], [], []>} : vector<1x32xf32>, vector<32x128xf32>, vector<1x128xf32> -> vector<1x128xf32>
    %726 = arith.addf %724, %725 : vector<1x128xf32>
    %727 = arith.negf %726 : vector<1x128xf32>
    %728 = math.exp %727 : vector<1x128xf32>
    %cst_212 = arith.constant 1.000000e+00 : f32
    %729 = vector.broadcast %cst_212 : f32 to vector<1x128xf32>
    %730 = arith.addf %729, %728 : vector<1x128xf32>
    %731 = arith.divf %729, %730 : vector<1x128xf32>
    %732 = vector.extract_strided_slice %731 {offsets = [0, 0], sizes = [1, 32], strides = [1, 1]} : vector<1x128xf32> to vector<1x32xf32>
    %733 = vector.extract_strided_slice %731 {offsets = [0, 32], sizes = [1, 32], strides = [1, 1]} : vector<1x128xf32> to vector<1x32xf32>
    %734 = vector.extract_strided_slice %731 {offsets = [0, 96], sizes = [1, 32], strides = [1, 1]} : vector<1x128xf32> to vector<1x32xf32>
    %735 = vector.extract_strided_slice %726 {offsets = [0, 64], sizes = [1, 32], strides = [1, 1]} : vector<1x128xf32> to vector<1x32xf32>
    %736 = math.tanh %735 : vector<1x32xf32>
    %737 = arith.mulf %733, %721 : vector<1x32xf32>
    %738 = arith.mulf %732, %736 : vector<1x32xf32>
    %739 = arith.addf %737, %738 : vector<1x32xf32>
    %740 = math.tanh %739 : vector<1x32xf32>
    %741 = arith.mulf %734, %740 : vector<1x32xf32>
    %c6_213 = arith.constant 6 : index
    %c0_214 = arith.constant 0 : index
    %742 = vector.load %arg14[%c6_213, %c0_214] : memref<32x128xf32, #tpu.memory_space<vmem>>, vector<1x128xf32>
    %cst_215 = arith.constant dense<0.000000e+00> : vector<1x128xf32>
    %743 = tpu.matmul %741, %631, %cst_215 {dimension_numbers = #tpu.dot_dimension_numbers<[1], [0], [0], [1], [0, 0, 1, 1], [], []>} : vector<1x32xf32>, vector<32x128xf32>, vector<1x128xf32> -> vector<1x128xf32>
    %744 = arith.addf %742, %743 : vector<1x128xf32>
    %745 = arith.negf %744 : vector<1x128xf32>
    %746 = math.exp %745 : vector<1x128xf32>
    %cst_216 = arith.constant 1.000000e+00 : f32
    %747 = vector.broadcast %cst_216 : f32 to vector<1x128xf32>
    %748 = arith.addf %747, %746 : vector<1x128xf32>
    %749 = arith.divf %747, %748 : vector<1x128xf32>
    %750 = vector.extract_strided_slice %749 {offsets = [0, 0], sizes = [1, 32], strides = [1, 1]} : vector<1x128xf32> to vector<1x32xf32>
    %751 = vector.extract_strided_slice %749 {offsets = [0, 32], sizes = [1, 32], strides = [1, 1]} : vector<1x128xf32> to vector<1x32xf32>
    %752 = vector.extract_strided_slice %749 {offsets = [0, 96], sizes = [1, 32], strides = [1, 1]} : vector<1x128xf32> to vector<1x32xf32>
    %753 = vector.extract_strided_slice %744 {offsets = [0, 64], sizes = [1, 32], strides = [1, 1]} : vector<1x128xf32> to vector<1x32xf32>
    %754 = math.tanh %753 : vector<1x32xf32>
    %755 = arith.mulf %751, %739 : vector<1x32xf32>
    %756 = arith.mulf %750, %754 : vector<1x32xf32>
    %757 = arith.addf %755, %756 : vector<1x32xf32>
    %758 = math.tanh %757 : vector<1x32xf32>
    %759 = arith.mulf %752, %758 : vector<1x32xf32>
    %c7_217 = arith.constant 7 : index
    %c0_218 = arith.constant 0 : index
    %760 = vector.load %arg14[%c7_217, %c0_218] : memref<32x128xf32, #tpu.memory_space<vmem>>, vector<1x128xf32>
    %cst_219 = arith.constant dense<0.000000e+00> : vector<1x128xf32>
    %761 = tpu.matmul %759, %631, %cst_219 {dimension_numbers = #tpu.dot_dimension_numbers<[1], [0], [0], [1], [0, 0, 1, 1], [], []>} : vector<1x32xf32>, vector<32x128xf32>, vector<1x128xf32> -> vector<1x128xf32>
    %762 = arith.addf %760, %761 : vector<1x128xf32>
    %763 = arith.negf %762 : vector<1x128xf32>
    %764 = math.exp %763 : vector<1x128xf32>
    %cst_220 = arith.constant 1.000000e+00 : f32
    %765 = vector.broadcast %cst_220 : f32 to vector<1x128xf32>
    %766 = arith.addf %765, %764 : vector<1x128xf32>
    %767 = arith.divf %765, %766 : vector<1x128xf32>
    %768 = vector.extract_strided_slice %767 {offsets = [0, 0], sizes = [1, 32], strides = [1, 1]} : vector<1x128xf32> to vector<1x32xf32>
    %769 = vector.extract_strided_slice %767 {offsets = [0, 32], sizes = [1, 32], strides = [1, 1]} : vector<1x128xf32> to vector<1x32xf32>
    %770 = vector.extract_strided_slice %767 {offsets = [0, 96], sizes = [1, 32], strides = [1, 1]} : vector<1x128xf32> to vector<1x32xf32>
    %771 = vector.extract_strided_slice %762 {offsets = [0, 64], sizes = [1, 32], strides = [1, 1]} : vector<1x128xf32> to vector<1x32xf32>
    %772 = math.tanh %771 : vector<1x32xf32>
    %773 = arith.mulf %769, %757 : vector<1x32xf32>
    %774 = arith.mulf %768, %772 : vector<1x32xf32>
    %775 = arith.addf %773, %774 : vector<1x32xf32>
    %776 = math.tanh %775 : vector<1x32xf32>
    %777 = arith.mulf %770, %776 : vector<1x32xf32>
    %c8_221 = arith.constant 8 : index
    %c0_222 = arith.constant 0 : index
    %778 = vector.load %arg14[%c8_221, %c0_222] : memref<32x128xf32, #tpu.memory_space<vmem>>, vector<1x128xf32>
    %cst_223 = arith.constant dense<0.000000e+00> : vector<1x128xf32>
    %779 = tpu.matmul %777, %631, %cst_223 {dimension_numbers = #tpu.dot_dimension_numbers<[1], [0], [0], [1], [0, 0, 1, 1], [], []>} : vector<1x32xf32>, vector<32x128xf32>, vector<1x128xf32> -> vector<1x128xf32>
    %780 = arith.addf %778, %779 : vector<1x128xf32>
    %781 = arith.negf %780 : vector<1x128xf32>
    %782 = math.exp %781 : vector<1x128xf32>
    %cst_224 = arith.constant 1.000000e+00 : f32
    %783 = vector.broadcast %cst_224 : f32 to vector<1x128xf32>
    %784 = arith.addf %783, %782 : vector<1x128xf32>
    %785 = arith.divf %783, %784 : vector<1x128xf32>
    %786 = vector.extract_strided_slice %785 {offsets = [0, 0], sizes = [1, 32], strides = [1, 1]} : vector<1x128xf32> to vector<1x32xf32>
    %787 = vector.extract_strided_slice %785 {offsets = [0, 32], sizes = [1, 32], strides = [1, 1]} : vector<1x128xf32> to vector<1x32xf32>
    %788 = vector.extract_strided_slice %785 {offsets = [0, 96], sizes = [1, 32], strides = [1, 1]} : vector<1x128xf32> to vector<1x32xf32>
    %789 = vector.extract_strided_slice %780 {offsets = [0, 64], sizes = [1, 32], strides = [1, 1]} : vector<1x128xf32> to vector<1x32xf32>
    %790 = math.tanh %789 : vector<1x32xf32>
    %791 = arith.mulf %787, %775 : vector<1x32xf32>
    %792 = arith.mulf %786, %790 : vector<1x32xf32>
    %793 = arith.addf %791, %792 : vector<1x32xf32>
    %794 = math.tanh %793 : vector<1x32xf32>
    %795 = arith.mulf %788, %794 : vector<1x32xf32>
    %c9_225 = arith.constant 9 : index
    %c0_226 = arith.constant 0 : index
    %796 = vector.load %arg14[%c9_225, %c0_226] : memref<32x128xf32, #tpu.memory_space<vmem>>, vector<1x128xf32>
    %cst_227 = arith.constant dense<0.000000e+00> : vector<1x128xf32>
    %797 = tpu.matmul %795, %631, %cst_227 {dimension_numbers = #tpu.dot_dimension_numbers<[1], [0], [0], [1], [0, 0, 1, 1], [], []>} : vector<1x32xf32>, vector<32x128xf32>, vector<1x128xf32> -> vector<1x128xf32>
    %798 = arith.addf %796, %797 : vector<1x128xf32>
    %799 = arith.negf %798 : vector<1x128xf32>
    %800 = math.exp %799 : vector<1x128xf32>
    %cst_228 = arith.constant 1.000000e+00 : f32
    %801 = vector.broadcast %cst_228 : f32 to vector<1x128xf32>
    %802 = arith.addf %801, %800 : vector<1x128xf32>
    %803 = arith.divf %801, %802 : vector<1x128xf32>
    %804 = vector.extract_strided_slice %803 {offsets = [0, 0], sizes = [1, 32], strides = [1, 1]} : vector<1x128xf32> to vector<1x32xf32>
    %805 = vector.extract_strided_slice %803 {offsets = [0, 32], sizes = [1, 32], strides = [1, 1]} : vector<1x128xf32> to vector<1x32xf32>
    %806 = vector.extract_strided_slice %803 {offsets = [0, 96], sizes = [1, 32], strides = [1, 1]} : vector<1x128xf32> to vector<1x32xf32>
    %807 = vector.extract_strided_slice %798 {offsets = [0, 64], sizes = [1, 32], strides = [1, 1]} : vector<1x128xf32> to vector<1x32xf32>
    %808 = math.tanh %807 : vector<1x32xf32>
    %809 = arith.mulf %805, %793 : vector<1x32xf32>
    %810 = arith.mulf %804, %808 : vector<1x32xf32>
    %811 = arith.addf %809, %810 : vector<1x32xf32>
    %812 = math.tanh %811 : vector<1x32xf32>
    %813 = arith.mulf %806, %812 : vector<1x32xf32>
    %c10_229 = arith.constant 10 : index
    %c0_230 = arith.constant 0 : index
    %814 = vector.load %arg14[%c10_229, %c0_230] : memref<32x128xf32, #tpu.memory_space<vmem>>, vector<1x128xf32>
    %cst_231 = arith.constant dense<0.000000e+00> : vector<1x128xf32>
    %815 = tpu.matmul %813, %631, %cst_231 {dimension_numbers = #tpu.dot_dimension_numbers<[1], [0], [0], [1], [0, 0, 1, 1], [], []>} : vector<1x32xf32>, vector<32x128xf32>, vector<1x128xf32> -> vector<1x128xf32>
    %816 = arith.addf %814, %815 : vector<1x128xf32>
    %817 = arith.negf %816 : vector<1x128xf32>
    %818 = math.exp %817 : vector<1x128xf32>
    %cst_232 = arith.constant 1.000000e+00 : f32
    %819 = vector.broadcast %cst_232 : f32 to vector<1x128xf32>
    %820 = arith.addf %819, %818 : vector<1x128xf32>
    %821 = arith.divf %819, %820 : vector<1x128xf32>
    %822 = vector.extract_strided_slice %821 {offsets = [0, 0], sizes = [1, 32], strides = [1, 1]} : vector<1x128xf32> to vector<1x32xf32>
    %823 = vector.extract_strided_slice %821 {offsets = [0, 32], sizes = [1, 32], strides = [1, 1]} : vector<1x128xf32> to vector<1x32xf32>
    %824 = vector.extract_strided_slice %821 {offsets = [0, 96], sizes = [1, 32], strides = [1, 1]} : vector<1x128xf32> to vector<1x32xf32>
    %825 = vector.extract_strided_slice %816 {offsets = [0, 64], sizes = [1, 32], strides = [1, 1]} : vector<1x128xf32> to vector<1x32xf32>
    %826 = math.tanh %825 : vector<1x32xf32>
    %827 = arith.mulf %823, %811 : vector<1x32xf32>
    %828 = arith.mulf %822, %826 : vector<1x32xf32>
    %829 = arith.addf %827, %828 : vector<1x32xf32>
    %830 = math.tanh %829 : vector<1x32xf32>
    %831 = arith.mulf %824, %830 : vector<1x32xf32>
    %c11_233 = arith.constant 11 : index
    %c0_234 = arith.constant 0 : index
    %832 = vector.load %arg14[%c11_233, %c0_234] : memref<32x128xf32, #tpu.memory_space<vmem>>, vector<1x128xf32>
    %cst_235 = arith.constant dense<0.000000e+00> : vector<1x128xf32>
    %833 = tpu.matmul %831, %631, %cst_235 {dimension_numbers = #tpu.dot_dimension_numbers<[1], [0], [0], [1], [0, 0, 1, 1], [], []>} : vector<1x32xf32>, vector<32x128xf32>, vector<1x128xf32> -> vector<1x128xf32>
    %834 = arith.addf %832, %833 : vector<1x128xf32>
    %835 = arith.negf %834 : vector<1x128xf32>
    %836 = math.exp %835 : vector<1x128xf32>
    %cst_236 = arith.constant 1.000000e+00 : f32
    %837 = vector.broadcast %cst_236 : f32 to vector<1x128xf32>
    %838 = arith.addf %837, %836 : vector<1x128xf32>
    %839 = arith.divf %837, %838 : vector<1x128xf32>
    %840 = vector.extract_strided_slice %839 {offsets = [0, 0], sizes = [1, 32], strides = [1, 1]} : vector<1x128xf32> to vector<1x32xf32>
    %841 = vector.extract_strided_slice %839 {offsets = [0, 32], sizes = [1, 32], strides = [1, 1]} : vector<1x128xf32> to vector<1x32xf32>
    %842 = vector.extract_strided_slice %839 {offsets = [0, 96], sizes = [1, 32], strides = [1, 1]} : vector<1x128xf32> to vector<1x32xf32>
    %843 = vector.extract_strided_slice %834 {offsets = [0, 64], sizes = [1, 32], strides = [1, 1]} : vector<1x128xf32> to vector<1x32xf32>
    %844 = math.tanh %843 : vector<1x32xf32>
    %845 = arith.mulf %841, %829 : vector<1x32xf32>
    %846 = arith.mulf %840, %844 : vector<1x32xf32>
    %847 = arith.addf %845, %846 : vector<1x32xf32>
    %848 = math.tanh %847 : vector<1x32xf32>
    %849 = arith.mulf %842, %848 : vector<1x32xf32>
    %c12_237 = arith.constant 12 : index
    %c0_238 = arith.constant 0 : index
    %850 = vector.load %arg14[%c12_237, %c0_238] : memref<32x128xf32, #tpu.memory_space<vmem>>, vector<1x128xf32>
    %cst_239 = arith.constant dense<0.000000e+00> : vector<1x128xf32>
    %851 = tpu.matmul %849, %631, %cst_239 {dimension_numbers = #tpu.dot_dimension_numbers<[1], [0], [0], [1], [0, 0, 1, 1], [], []>} : vector<1x32xf32>, vector<32x128xf32>, vector<1x128xf32> -> vector<1x128xf32>
    %852 = arith.addf %850, %851 : vector<1x128xf32>
    %853 = arith.negf %852 : vector<1x128xf32>
    %854 = math.exp %853 : vector<1x128xf32>
    %cst_240 = arith.constant 1.000000e+00 : f32
    %855 = vector.broadcast %cst_240 : f32 to vector<1x128xf32>
    %856 = arith.addf %855, %854 : vector<1x128xf32>
    %857 = arith.divf %855, %856 : vector<1x128xf32>
    %858 = vector.extract_strided_slice %857 {offsets = [0, 0], sizes = [1, 32], strides = [1, 1]} : vector<1x128xf32> to vector<1x32xf32>
    %859 = vector.extract_strided_slice %857 {offsets = [0, 32], sizes = [1, 32], strides = [1, 1]} : vector<1x128xf32> to vector<1x32xf32>
    %860 = vector.extract_strided_slice %857 {offsets = [0, 96], sizes = [1, 32], strides = [1, 1]} : vector<1x128xf32> to vector<1x32xf32>
    %861 = vector.extract_strided_slice %852 {offsets = [0, 64], sizes = [1, 32], strides = [1, 1]} : vector<1x128xf32> to vector<1x32xf32>
    %862 = math.tanh %861 : vector<1x32xf32>
    %863 = arith.mulf %859, %847 : vector<1x32xf32>
    %864 = arith.mulf %858, %862 : vector<1x32xf32>
    %865 = arith.addf %863, %864 : vector<1x32xf32>
    %866 = math.tanh %865 : vector<1x32xf32>
    %867 = arith.mulf %860, %866 : vector<1x32xf32>
    %c13_241 = arith.constant 13 : index
    %c0_242 = arith.constant 0 : index
    %868 = vector.load %arg14[%c13_241, %c0_242] : memref<32x128xf32, #tpu.memory_space<vmem>>, vector<1x128xf32>
    %cst_243 = arith.constant dense<0.000000e+00> : vector<1x128xf32>
    %869 = tpu.matmul %867, %631, %cst_243 {dimension_numbers = #tpu.dot_dimension_numbers<[1], [0], [0], [1], [0, 0, 1, 1], [], []>} : vector<1x32xf32>, vector<32x128xf32>, vector<1x128xf32> -> vector<1x128xf32>
    %870 = arith.addf %868, %869 : vector<1x128xf32>
    %871 = arith.negf %870 : vector<1x128xf32>
    %872 = math.exp %871 : vector<1x128xf32>
    %cst_244 = arith.constant 1.000000e+00 : f32
    %873 = vector.broadcast %cst_244 : f32 to vector<1x128xf32>
    %874 = arith.addf %873, %872 : vector<1x128xf32>
    %875 = arith.divf %873, %874 : vector<1x128xf32>
    %876 = vector.extract_strided_slice %875 {offsets = [0, 0], sizes = [1, 32], strides = [1, 1]} : vector<1x128xf32> to vector<1x32xf32>
    %877 = vector.extract_strided_slice %875 {offsets = [0, 32], sizes = [1, 32], strides = [1, 1]} : vector<1x128xf32> to vector<1x32xf32>
    %878 = vector.extract_strided_slice %875 {offsets = [0, 96], sizes = [1, 32], strides = [1, 1]} : vector<1x128xf32> to vector<1x32xf32>
    %879 = vector.extract_strided_slice %870 {offsets = [0, 64], sizes = [1, 32], strides = [1, 1]} : vector<1x128xf32> to vector<1x32xf32>
    %880 = math.tanh %879 : vector<1x32xf32>
    %881 = arith.mulf %877, %865 : vector<1x32xf32>
    %882 = arith.mulf %876, %880 : vector<1x32xf32>
    %883 = arith.addf %881, %882 : vector<1x32xf32>
    %884 = math.tanh %883 : vector<1x32xf32>
    %885 = arith.mulf %878, %884 : vector<1x32xf32>
    %c14_245 = arith.constant 14 : index
    %c0_246 = arith.constant 0 : index
    %886 = vector.load %arg14[%c14_245, %c0_246] : memref<32x128xf32, #tpu.memory_space<vmem>>, vector<1x128xf32>
    %cst_247 = arith.constant dense<0.000000e+00> : vector<1x128xf32>
    %887 = tpu.matmul %885, %631, %cst_247 {dimension_numbers = #tpu.dot_dimension_numbers<[1], [0], [0], [1], [0, 0, 1, 1], [], []>} : vector<1x32xf32>, vector<32x128xf32>, vector<1x128xf32> -> vector<1x128xf32>
    %888 = arith.addf %886, %887 : vector<1x128xf32>
    %889 = arith.negf %888 : vector<1x128xf32>
    %890 = math.exp %889 : vector<1x128xf32>
    %cst_248 = arith.constant 1.000000e+00 : f32
    %891 = vector.broadcast %cst_248 : f32 to vector<1x128xf32>
    %892 = arith.addf %891, %890 : vector<1x128xf32>
    %893 = arith.divf %891, %892 : vector<1x128xf32>
    %894 = vector.extract_strided_slice %893 {offsets = [0, 0], sizes = [1, 32], strides = [1, 1]} : vector<1x128xf32> to vector<1x32xf32>
    %895 = vector.extract_strided_slice %893 {offsets = [0, 32], sizes = [1, 32], strides = [1, 1]} : vector<1x128xf32> to vector<1x32xf32>
    %896 = vector.extract_strided_slice %893 {offsets = [0, 96], sizes = [1, 32], strides = [1, 1]} : vector<1x128xf32> to vector<1x32xf32>
    %897 = vector.extract_strided_slice %888 {offsets = [0, 64], sizes = [1, 32], strides = [1, 1]} : vector<1x128xf32> to vector<1x32xf32>
    %898 = math.tanh %897 : vector<1x32xf32>
    %899 = arith.mulf %895, %883 : vector<1x32xf32>
    %900 = arith.mulf %894, %898 : vector<1x32xf32>
    %901 = arith.addf %899, %900 : vector<1x32xf32>
    %902 = math.tanh %901 : vector<1x32xf32>
    %903 = arith.mulf %896, %902 : vector<1x32xf32>
    %c15_249 = arith.constant 15 : index
    %c0_250 = arith.constant 0 : index
    %904 = vector.load %arg14[%c15_249, %c0_250] : memref<32x128xf32, #tpu.memory_space<vmem>>, vector<1x128xf32>
    %cst_251 = arith.constant dense<0.000000e+00> : vector<1x128xf32>
    %905 = tpu.matmul %903, %631, %cst_251 {dimension_numbers = #tpu.dot_dimension_numbers<[1], [0], [0], [1], [0, 0, 1, 1], [], []>} : vector<1x32xf32>, vector<32x128xf32>, vector<1x128xf32> -> vector<1x128xf32>
    %906 = arith.addf %904, %905 : vector<1x128xf32>
    %907 = arith.negf %906 : vector<1x128xf32>
    %908 = math.exp %907 : vector<1x128xf32>
    %cst_252 = arith.constant 1.000000e+00 : f32
    %909 = vector.broadcast %cst_252 : f32 to vector<1x128xf32>
    %910 = arith.addf %909, %908 : vector<1x128xf32>
    %911 = arith.divf %909, %910 : vector<1x128xf32>
    %912 = vector.extract_strided_slice %911 {offsets = [0, 0], sizes = [1, 32], strides = [1, 1]} : vector<1x128xf32> to vector<1x32xf32>
    %913 = vector.extract_strided_slice %911 {offsets = [0, 32], sizes = [1, 32], strides = [1, 1]} : vector<1x128xf32> to vector<1x32xf32>
    %914 = vector.extract_strided_slice %911 {offsets = [0, 96], sizes = [1, 32], strides = [1, 1]} : vector<1x128xf32> to vector<1x32xf32>
    %915 = vector.extract_strided_slice %906 {offsets = [0, 64], sizes = [1, 32], strides = [1, 1]} : vector<1x128xf32> to vector<1x32xf32>
    %916 = math.tanh %915 : vector<1x32xf32>
    %917 = arith.mulf %913, %901 : vector<1x32xf32>
    %918 = arith.mulf %912, %916 : vector<1x32xf32>
    %919 = arith.addf %917, %918 : vector<1x32xf32>
    %920 = math.tanh %919 : vector<1x32xf32>
    %921 = arith.mulf %914, %920 : vector<1x32xf32>
    %c16_253 = arith.constant 16 : index
    %c0_254 = arith.constant 0 : index
    %922 = vector.load %arg14[%c16_253, %c0_254] : memref<32x128xf32, #tpu.memory_space<vmem>>, vector<1x128xf32>
    %cst_255 = arith.constant dense<0.000000e+00> : vector<1x128xf32>
    %923 = tpu.matmul %921, %631, %cst_255 {dimension_numbers = #tpu.dot_dimension_numbers<[1], [0], [0], [1], [0, 0, 1, 1], [], []>} : vector<1x32xf32>, vector<32x128xf32>, vector<1x128xf32> -> vector<1x128xf32>
    %924 = arith.addf %922, %923 : vector<1x128xf32>
    %925 = arith.negf %924 : vector<1x128xf32>
    %926 = math.exp %925 : vector<1x128xf32>
    %cst_256 = arith.constant 1.000000e+00 : f32
    %927 = vector.broadcast %cst_256 : f32 to vector<1x128xf32>
    %928 = arith.addf %927, %926 : vector<1x128xf32>
    %929 = arith.divf %927, %928 : vector<1x128xf32>
    %930 = vector.extract_strided_slice %929 {offsets = [0, 0], sizes = [1, 32], strides = [1, 1]} : vector<1x128xf32> to vector<1x32xf32>
    %931 = vector.extract_strided_slice %929 {offsets = [0, 32], sizes = [1, 32], strides = [1, 1]} : vector<1x128xf32> to vector<1x32xf32>
    %932 = vector.extract_strided_slice %929 {offsets = [0, 96], sizes = [1, 32], strides = [1, 1]} : vector<1x128xf32> to vector<1x32xf32>
    %933 = vector.extract_strided_slice %924 {offsets = [0, 64], sizes = [1, 32], strides = [1, 1]} : vector<1x128xf32> to vector<1x32xf32>
    %934 = math.tanh %933 : vector<1x32xf32>
    %935 = arith.mulf %931, %919 : vector<1x32xf32>
    %936 = arith.mulf %930, %934 : vector<1x32xf32>
    %937 = arith.addf %935, %936 : vector<1x32xf32>
    %938 = math.tanh %937 : vector<1x32xf32>
    %939 = arith.mulf %932, %938 : vector<1x32xf32>
    %c17_257 = arith.constant 17 : index
    %c0_258 = arith.constant 0 : index
    %940 = vector.load %arg14[%c17_257, %c0_258] : memref<32x128xf32, #tpu.memory_space<vmem>>, vector<1x128xf32>
    %cst_259 = arith.constant dense<0.000000e+00> : vector<1x128xf32>
    %941 = tpu.matmul %939, %631, %cst_259 {dimension_numbers = #tpu.dot_dimension_numbers<[1], [0], [0], [1], [0, 0, 1, 1], [], []>} : vector<1x32xf32>, vector<32x128xf32>, vector<1x128xf32> -> vector<1x128xf32>
    %942 = arith.addf %940, %941 : vector<1x128xf32>
    %943 = arith.negf %942 : vector<1x128xf32>
    %944 = math.exp %943 : vector<1x128xf32>
    %cst_260 = arith.constant 1.000000e+00 : f32
    %945 = vector.broadcast %cst_260 : f32 to vector<1x128xf32>
    %946 = arith.addf %945, %944 : vector<1x128xf32>
    %947 = arith.divf %945, %946 : vector<1x128xf32>
    %948 = vector.extract_strided_slice %947 {offsets = [0, 0], sizes = [1, 32], strides = [1, 1]} : vector<1x128xf32> to vector<1x32xf32>
    %949 = vector.extract_strided_slice %947 {offsets = [0, 32], sizes = [1, 32], strides = [1, 1]} : vector<1x128xf32> to vector<1x32xf32>
    %950 = vector.extract_strided_slice %947 {offsets = [0, 96], sizes = [1, 32], strides = [1, 1]} : vector<1x128xf32> to vector<1x32xf32>
    %951 = vector.extract_strided_slice %942 {offsets = [0, 64], sizes = [1, 32], strides = [1, 1]} : vector<1x128xf32> to vector<1x32xf32>
    %952 = math.tanh %951 : vector<1x32xf32>
    %953 = arith.mulf %949, %937 : vector<1x32xf32>
    %954 = arith.mulf %948, %952 : vector<1x32xf32>
    %955 = arith.addf %953, %954 : vector<1x32xf32>
    %956 = math.tanh %955 : vector<1x32xf32>
    %957 = arith.mulf %950, %956 : vector<1x32xf32>
    %c18_261 = arith.constant 18 : index
    %c0_262 = arith.constant 0 : index
    %958 = vector.load %arg14[%c18_261, %c0_262] : memref<32x128xf32, #tpu.memory_space<vmem>>, vector<1x128xf32>
    %cst_263 = arith.constant dense<0.000000e+00> : vector<1x128xf32>
    %959 = tpu.matmul %957, %631, %cst_263 {dimension_numbers = #tpu.dot_dimension_numbers<[1], [0], [0], [1], [0, 0, 1, 1], [], []>} : vector<1x32xf32>, vector<32x128xf32>, vector<1x128xf32> -> vector<1x128xf32>
    %960 = arith.addf %958, %959 : vector<1x128xf32>
    %961 = arith.negf %960 : vector<1x128xf32>
    %962 = math.exp %961 : vector<1x128xf32>
    %cst_264 = arith.constant 1.000000e+00 : f32
    %963 = vector.broadcast %cst_264 : f32 to vector<1x128xf32>
    %964 = arith.addf %963, %962 : vector<1x128xf32>
    %965 = arith.divf %963, %964 : vector<1x128xf32>
    %966 = vector.extract_strided_slice %965 {offsets = [0, 0], sizes = [1, 32], strides = [1, 1]} : vector<1x128xf32> to vector<1x32xf32>
    %967 = vector.extract_strided_slice %965 {offsets = [0, 32], sizes = [1, 32], strides = [1, 1]} : vector<1x128xf32> to vector<1x32xf32>
    %968 = vector.extract_strided_slice %965 {offsets = [0, 96], sizes = [1, 32], strides = [1, 1]} : vector<1x128xf32> to vector<1x32xf32>
    %969 = vector.extract_strided_slice %960 {offsets = [0, 64], sizes = [1, 32], strides = [1, 1]} : vector<1x128xf32> to vector<1x32xf32>
    %970 = math.tanh %969 : vector<1x32xf32>
    %971 = arith.mulf %967, %955 : vector<1x32xf32>
    %972 = arith.mulf %966, %970 : vector<1x32xf32>
    %973 = arith.addf %971, %972 : vector<1x32xf32>
    %974 = math.tanh %973 : vector<1x32xf32>
    %975 = arith.mulf %968, %974 : vector<1x32xf32>
    %c19_265 = arith.constant 19 : index
    %c0_266 = arith.constant 0 : index
    %976 = vector.load %arg14[%c19_265, %c0_266] : memref<32x128xf32, #tpu.memory_space<vmem>>, vector<1x128xf32>
    %cst_267 = arith.constant dense<0.000000e+00> : vector<1x128xf32>
    %977 = tpu.matmul %975, %631, %cst_267 {dimension_numbers = #tpu.dot_dimension_numbers<[1], [0], [0], [1], [0, 0, 1, 1], [], []>} : vector<1x32xf32>, vector<32x128xf32>, vector<1x128xf32> -> vector<1x128xf32>
    %978 = arith.addf %976, %977 : vector<1x128xf32>
    %979 = arith.negf %978 : vector<1x128xf32>
    %980 = math.exp %979 : vector<1x128xf32>
    %cst_268 = arith.constant 1.000000e+00 : f32
    %981 = vector.broadcast %cst_268 : f32 to vector<1x128xf32>
    %982 = arith.addf %981, %980 : vector<1x128xf32>
    %983 = arith.divf %981, %982 : vector<1x128xf32>
    %984 = vector.extract_strided_slice %983 {offsets = [0, 0], sizes = [1, 32], strides = [1, 1]} : vector<1x128xf32> to vector<1x32xf32>
    %985 = vector.extract_strided_slice %983 {offsets = [0, 32], sizes = [1, 32], strides = [1, 1]} : vector<1x128xf32> to vector<1x32xf32>
    %986 = vector.extract_strided_slice %983 {offsets = [0, 96], sizes = [1, 32], strides = [1, 1]} : vector<1x128xf32> to vector<1x32xf32>
    %987 = vector.extract_strided_slice %978 {offsets = [0, 64], sizes = [1, 32], strides = [1, 1]} : vector<1x128xf32> to vector<1x32xf32>
    %988 = math.tanh %987 : vector<1x32xf32>
    %989 = arith.mulf %985, %973 : vector<1x32xf32>
    %990 = arith.mulf %984, %988 : vector<1x32xf32>
    %991 = arith.addf %989, %990 : vector<1x32xf32>
    %992 = math.tanh %991 : vector<1x32xf32>
    %993 = arith.mulf %986, %992 : vector<1x32xf32>
    %c20_269 = arith.constant 20 : index
    %c0_270 = arith.constant 0 : index
    %994 = vector.load %arg14[%c20_269, %c0_270] : memref<32x128xf32, #tpu.memory_space<vmem>>, vector<1x128xf32>
    %cst_271 = arith.constant dense<0.000000e+00> : vector<1x128xf32>
    %995 = tpu.matmul %993, %631, %cst_271 {dimension_numbers = #tpu.dot_dimension_numbers<[1], [0], [0], [1], [0, 0, 1, 1], [], []>} : vector<1x32xf32>, vector<32x128xf32>, vector<1x128xf32> -> vector<1x128xf32>
    %996 = arith.addf %994, %995 : vector<1x128xf32>
    %997 = arith.negf %996 : vector<1x128xf32>
    %998 = math.exp %997 : vector<1x128xf32>
    %cst_272 = arith.constant 1.000000e+00 : f32
    %999 = vector.broadcast %cst_272 : f32 to vector<1x128xf32>
    %1000 = arith.addf %999, %998 : vector<1x128xf32>
    %1001 = arith.divf %999, %1000 : vector<1x128xf32>
    %1002 = vector.extract_strided_slice %1001 {offsets = [0, 0], sizes = [1, 32], strides = [1, 1]} : vector<1x128xf32> to vector<1x32xf32>
    %1003 = vector.extract_strided_slice %1001 {offsets = [0, 32], sizes = [1, 32], strides = [1, 1]} : vector<1x128xf32> to vector<1x32xf32>
    %1004 = vector.extract_strided_slice %1001 {offsets = [0, 96], sizes = [1, 32], strides = [1, 1]} : vector<1x128xf32> to vector<1x32xf32>
    %1005 = vector.extract_strided_slice %996 {offsets = [0, 64], sizes = [1, 32], strides = [1, 1]} : vector<1x128xf32> to vector<1x32xf32>
    %1006 = math.tanh %1005 : vector<1x32xf32>
    %1007 = arith.mulf %1003, %991 : vector<1x32xf32>
    %1008 = arith.mulf %1002, %1006 : vector<1x32xf32>
    %1009 = arith.addf %1007, %1008 : vector<1x32xf32>
    %1010 = math.tanh %1009 : vector<1x32xf32>
    %1011 = arith.mulf %1004, %1010 : vector<1x32xf32>
    %c21_273 = arith.constant 21 : index
    %c0_274 = arith.constant 0 : index
    %1012 = vector.load %arg14[%c21_273, %c0_274] : memref<32x128xf32, #tpu.memory_space<vmem>>, vector<1x128xf32>
    %cst_275 = arith.constant dense<0.000000e+00> : vector<1x128xf32>
    %1013 = tpu.matmul %1011, %631, %cst_275 {dimension_numbers = #tpu.dot_dimension_numbers<[1], [0], [0], [1], [0, 0, 1, 1], [], []>} : vector<1x32xf32>, vector<32x128xf32>, vector<1x128xf32> -> vector<1x128xf32>
    %1014 = arith.addf %1012, %1013 : vector<1x128xf32>
    %1015 = arith.negf %1014 : vector<1x128xf32>
    %1016 = math.exp %1015 : vector<1x128xf32>
    %cst_276 = arith.constant 1.000000e+00 : f32
    %1017 = vector.broadcast %cst_276 : f32 to vector<1x128xf32>
    %1018 = arith.addf %1017, %1016 : vector<1x128xf32>
    %1019 = arith.divf %1017, %1018 : vector<1x128xf32>
    %1020 = vector.extract_strided_slice %1019 {offsets = [0, 0], sizes = [1, 32], strides = [1, 1]} : vector<1x128xf32> to vector<1x32xf32>
    %1021 = vector.extract_strided_slice %1019 {offsets = [0, 32], sizes = [1, 32], strides = [1, 1]} : vector<1x128xf32> to vector<1x32xf32>
    %1022 = vector.extract_strided_slice %1019 {offsets = [0, 96], sizes = [1, 32], strides = [1, 1]} : vector<1x128xf32> to vector<1x32xf32>
    %1023 = vector.extract_strided_slice %1014 {offsets = [0, 64], sizes = [1, 32], strides = [1, 1]} : vector<1x128xf32> to vector<1x32xf32>
    %1024 = math.tanh %1023 : vector<1x32xf32>
    %1025 = arith.mulf %1021, %1009 : vector<1x32xf32>
    %1026 = arith.mulf %1020, %1024 : vector<1x32xf32>
    %1027 = arith.addf %1025, %1026 : vector<1x32xf32>
    %1028 = math.tanh %1027 : vector<1x32xf32>
    %1029 = arith.mulf %1022, %1028 : vector<1x32xf32>
    %c22_277 = arith.constant 22 : index
    %c0_278 = arith.constant 0 : index
    %1030 = vector.load %arg14[%c22_277, %c0_278] : memref<32x128xf32, #tpu.memory_space<vmem>>, vector<1x128xf32>
    %cst_279 = arith.constant dense<0.000000e+00> : vector<1x128xf32>
    %1031 = tpu.matmul %1029, %631, %cst_279 {dimension_numbers = #tpu.dot_dimension_numbers<[1], [0], [0], [1], [0, 0, 1, 1], [], []>} : vector<1x32xf32>, vector<32x128xf32>, vector<1x128xf32> -> vector<1x128xf32>
    %1032 = arith.addf %1030, %1031 : vector<1x128xf32>
    %1033 = arith.negf %1032 : vector<1x128xf32>
    %1034 = math.exp %1033 : vector<1x128xf32>
    %cst_280 = arith.constant 1.000000e+00 : f32
    %1035 = vector.broadcast %cst_280 : f32 to vector<1x128xf32>
    %1036 = arith.addf %1035, %1034 : vector<1x128xf32>
    %1037 = arith.divf %1035, %1036 : vector<1x128xf32>
    %1038 = vector.extract_strided_slice %1037 {offsets = [0, 0], sizes = [1, 32], strides = [1, 1]} : vector<1x128xf32> to vector<1x32xf32>
    %1039 = vector.extract_strided_slice %1037 {offsets = [0, 32], sizes = [1, 32], strides = [1, 1]} : vector<1x128xf32> to vector<1x32xf32>
    %1040 = vector.extract_strided_slice %1037 {offsets = [0, 96], sizes = [1, 32], strides = [1, 1]} : vector<1x128xf32> to vector<1x32xf32>
    %1041 = vector.extract_strided_slice %1032 {offsets = [0, 64], sizes = [1, 32], strides = [1, 1]} : vector<1x128xf32> to vector<1x32xf32>
    %1042 = math.tanh %1041 : vector<1x32xf32>
    %1043 = arith.mulf %1039, %1027 : vector<1x32xf32>
    %1044 = arith.mulf %1038, %1042 : vector<1x32xf32>
    %1045 = arith.addf %1043, %1044 : vector<1x32xf32>
    %1046 = math.tanh %1045 : vector<1x32xf32>
    %1047 = arith.mulf %1040, %1046 : vector<1x32xf32>
    %c23_281 = arith.constant 23 : index
    %c0_282 = arith.constant 0 : index
    %1048 = vector.load %arg14[%c23_281, %c0_282] : memref<32x128xf32, #tpu.memory_space<vmem>>, vector<1x128xf32>
    %cst_283 = arith.constant dense<0.000000e+00> : vector<1x128xf32>
    %1049 = tpu.matmul %1047, %631, %cst_283 {dimension_numbers = #tpu.dot_dimension_numbers<[1], [0], [0], [1], [0, 0, 1, 1], [], []>} : vector<1x32xf32>, vector<32x128xf32>, vector<1x128xf32> -> vector<1x128xf32>
    %1050 = arith.addf %1048, %1049 : vector<1x128xf32>
    %1051 = arith.negf %1050 : vector<1x128xf32>
    %1052 = math.exp %1051 : vector<1x128xf32>
    %cst_284 = arith.constant 1.000000e+00 : f32
    %1053 = vector.broadcast %cst_284 : f32 to vector<1x128xf32>
    %1054 = arith.addf %1053, %1052 : vector<1x128xf32>
    %1055 = arith.divf %1053, %1054 : vector<1x128xf32>
    %1056 = vector.extract_strided_slice %1055 {offsets = [0, 0], sizes = [1, 32], strides = [1, 1]} : vector<1x128xf32> to vector<1x32xf32>
    %1057 = vector.extract_strided_slice %1055 {offsets = [0, 32], sizes = [1, 32], strides = [1, 1]} : vector<1x128xf32> to vector<1x32xf32>
    %1058 = vector.extract_strided_slice %1055 {offsets = [0, 96], sizes = [1, 32], strides = [1, 1]} : vector<1x128xf32> to vector<1x32xf32>
    %1059 = vector.extract_strided_slice %1050 {offsets = [0, 64], sizes = [1, 32], strides = [1, 1]} : vector<1x128xf32> to vector<1x32xf32>
    %1060 = math.tanh %1059 : vector<1x32xf32>
    %1061 = arith.mulf %1057, %1045 : vector<1x32xf32>
    %1062 = arith.mulf %1056, %1060 : vector<1x32xf32>
    %1063 = arith.addf %1061, %1062 : vector<1x32xf32>
    %1064 = math.tanh %1063 : vector<1x32xf32>
    %1065 = arith.mulf %1058, %1064 : vector<1x32xf32>
    %c24_285 = arith.constant 24 : index
    %c0_286 = arith.constant 0 : index
    %1066 = vector.load %arg14[%c24_285, %c0_286] : memref<32x128xf32, #tpu.memory_space<vmem>>, vector<1x128xf32>
    %cst_287 = arith.constant dense<0.000000e+00> : vector<1x128xf32>
    %1067 = tpu.matmul %1065, %631, %cst_287 {dimension_numbers = #tpu.dot_dimension_numbers<[1], [0], [0], [1], [0, 0, 1, 1], [], []>} : vector<1x32xf32>, vector<32x128xf32>, vector<1x128xf32> -> vector<1x128xf32>
    %1068 = arith.addf %1066, %1067 : vector<1x128xf32>
    %1069 = arith.negf %1068 : vector<1x128xf32>
    %1070 = math.exp %1069 : vector<1x128xf32>
    %cst_288 = arith.constant 1.000000e+00 : f32
    %1071 = vector.broadcast %cst_288 : f32 to vector<1x128xf32>
    %1072 = arith.addf %1071, %1070 : vector<1x128xf32>
    %1073 = arith.divf %1071, %1072 : vector<1x128xf32>
    %1074 = vector.extract_strided_slice %1073 {offsets = [0, 0], sizes = [1, 32], strides = [1, 1]} : vector<1x128xf32> to vector<1x32xf32>
    %1075 = vector.extract_strided_slice %1073 {offsets = [0, 32], sizes = [1, 32], strides = [1, 1]} : vector<1x128xf32> to vector<1x32xf32>
    %1076 = vector.extract_strided_slice %1073 {offsets = [0, 96], sizes = [1, 32], strides = [1, 1]} : vector<1x128xf32> to vector<1x32xf32>
    %1077 = vector.extract_strided_slice %1068 {offsets = [0, 64], sizes = [1, 32], strides = [1, 1]} : vector<1x128xf32> to vector<1x32xf32>
    %1078 = math.tanh %1077 : vector<1x32xf32>
    %1079 = arith.mulf %1075, %1063 : vector<1x32xf32>
    %1080 = arith.mulf %1074, %1078 : vector<1x32xf32>
    %1081 = arith.addf %1079, %1080 : vector<1x32xf32>
    %1082 = math.tanh %1081 : vector<1x32xf32>
    %1083 = arith.mulf %1076, %1082 : vector<1x32xf32>
    %c25_289 = arith.constant 25 : index
    %c0_290 = arith.constant 0 : index
    %1084 = vector.load %arg14[%c25_289, %c0_290] : memref<32x128xf32, #tpu.memory_space<vmem>>, vector<1x128xf32>
    %cst_291 = arith.constant dense<0.000000e+00> : vector<1x128xf32>
    %1085 = tpu.matmul %1083, %631, %cst_291 {dimension_numbers = #tpu.dot_dimension_numbers<[1], [0], [0], [1], [0, 0, 1, 1], [], []>} : vector<1x32xf32>, vector<32x128xf32>, vector<1x128xf32> -> vector<1x128xf32>
    %1086 = arith.addf %1084, %1085 : vector<1x128xf32>
    %1087 = arith.negf %1086 : vector<1x128xf32>
    %1088 = math.exp %1087 : vector<1x128xf32>
    %cst_292 = arith.constant 1.000000e+00 : f32
    %1089 = vector.broadcast %cst_292 : f32 to vector<1x128xf32>
    %1090 = arith.addf %1089, %1088 : vector<1x128xf32>
    %1091 = arith.divf %1089, %1090 : vector<1x128xf32>
    %1092 = vector.extract_strided_slice %1091 {offsets = [0, 0], sizes = [1, 32], strides = [1, 1]} : vector<1x128xf32> to vector<1x32xf32>
    %1093 = vector.extract_strided_slice %1091 {offsets = [0, 32], sizes = [1, 32], strides = [1, 1]} : vector<1x128xf32> to vector<1x32xf32>
    %1094 = vector.extract_strided_slice %1091 {offsets = [0, 96], sizes = [1, 32], strides = [1, 1]} : vector<1x128xf32> to vector<1x32xf32>
    %1095 = vector.extract_strided_slice %1086 {offsets = [0, 64], sizes = [1, 32], strides = [1, 1]} : vector<1x128xf32> to vector<1x32xf32>
    %1096 = math.tanh %1095 : vector<1x32xf32>
    %1097 = arith.mulf %1093, %1081 : vector<1x32xf32>
    %1098 = arith.mulf %1092, %1096 : vector<1x32xf32>
    %1099 = arith.addf %1097, %1098 : vector<1x32xf32>
    %1100 = math.tanh %1099 : vector<1x32xf32>
    %1101 = arith.mulf %1094, %1100 : vector<1x32xf32>
    %c26_293 = arith.constant 26 : index
    %c0_294 = arith.constant 0 : index
    %1102 = vector.load %arg14[%c26_293, %c0_294] : memref<32x128xf32, #tpu.memory_space<vmem>>, vector<1x128xf32>
    %cst_295 = arith.constant dense<0.000000e+00> : vector<1x128xf32>
    %1103 = tpu.matmul %1101, %631, %cst_295 {dimension_numbers = #tpu.dot_dimension_numbers<[1], [0], [0], [1], [0, 0, 1, 1], [], []>} : vector<1x32xf32>, vector<32x128xf32>, vector<1x128xf32> -> vector<1x128xf32>
    %1104 = arith.addf %1102, %1103 : vector<1x128xf32>
    %1105 = arith.negf %1104 : vector<1x128xf32>
    %1106 = math.exp %1105 : vector<1x128xf32>
    %cst_296 = arith.constant 1.000000e+00 : f32
    %1107 = vector.broadcast %cst_296 : f32 to vector<1x128xf32>
    %1108 = arith.addf %1107, %1106 : vector<1x128xf32>
    %1109 = arith.divf %1107, %1108 : vector<1x128xf32>
    %1110 = vector.extract_strided_slice %1109 {offsets = [0, 0], sizes = [1, 32], strides = [1, 1]} : vector<1x128xf32> to vector<1x32xf32>
    %1111 = vector.extract_strided_slice %1109 {offsets = [0, 32], sizes = [1, 32], strides = [1, 1]} : vector<1x128xf32> to vector<1x32xf32>
    %1112 = vector.extract_strided_slice %1109 {offsets = [0, 96], sizes = [1, 32], strides = [1, 1]} : vector<1x128xf32> to vector<1x32xf32>
    %1113 = vector.extract_strided_slice %1104 {offsets = [0, 64], sizes = [1, 32], strides = [1, 1]} : vector<1x128xf32> to vector<1x32xf32>
    %1114 = math.tanh %1113 : vector<1x32xf32>
    %1115 = arith.mulf %1111, %1099 : vector<1x32xf32>
    %1116 = arith.mulf %1110, %1114 : vector<1x32xf32>
    %1117 = arith.addf %1115, %1116 : vector<1x32xf32>
    %1118 = math.tanh %1117 : vector<1x32xf32>
    %1119 = arith.mulf %1112, %1118 : vector<1x32xf32>
    %c27_297 = arith.constant 27 : index
    %c0_298 = arith.constant 0 : index
    %1120 = vector.load %arg14[%c27_297, %c0_298] : memref<32x128xf32, #tpu.memory_space<vmem>>, vector<1x128xf32>
    %cst_299 = arith.constant dense<0.000000e+00> : vector<1x128xf32>
    %1121 = tpu.matmul %1119, %631, %cst_299 {dimension_numbers = #tpu.dot_dimension_numbers<[1], [0], [0], [1], [0, 0, 1, 1], [], []>} : vector<1x32xf32>, vector<32x128xf32>, vector<1x128xf32> -> vector<1x128xf32>
    %1122 = arith.addf %1120, %1121 : vector<1x128xf32>
    %1123 = arith.negf %1122 : vector<1x128xf32>
    %1124 = math.exp %1123 : vector<1x128xf32>
    %cst_300 = arith.constant 1.000000e+00 : f32
    %1125 = vector.broadcast %cst_300 : f32 to vector<1x128xf32>
    %1126 = arith.addf %1125, %1124 : vector<1x128xf32>
    %1127 = arith.divf %1125, %1126 : vector<1x128xf32>
    %1128 = vector.extract_strided_slice %1127 {offsets = [0, 0], sizes = [1, 32], strides = [1, 1]} : vector<1x128xf32> to vector<1x32xf32>
    %1129 = vector.extract_strided_slice %1127 {offsets = [0, 32], sizes = [1, 32], strides = [1, 1]} : vector<1x128xf32> to vector<1x32xf32>
    %1130 = vector.extract_strided_slice %1127 {offsets = [0, 96], sizes = [1, 32], strides = [1, 1]} : vector<1x128xf32> to vector<1x32xf32>
    %1131 = vector.extract_strided_slice %1122 {offsets = [0, 64], sizes = [1, 32], strides = [1, 1]} : vector<1x128xf32> to vector<1x32xf32>
    %1132 = math.tanh %1131 : vector<1x32xf32>
    %1133 = arith.mulf %1129, %1117 : vector<1x32xf32>
    %1134 = arith.mulf %1128, %1132 : vector<1x32xf32>
    %1135 = arith.addf %1133, %1134 : vector<1x32xf32>
    %1136 = math.tanh %1135 : vector<1x32xf32>
    %1137 = arith.mulf %1130, %1136 : vector<1x32xf32>
    %c28_301 = arith.constant 28 : index
    %c0_302 = arith.constant 0 : index
    %1138 = vector.load %arg14[%c28_301, %c0_302] : memref<32x128xf32, #tpu.memory_space<vmem>>, vector<1x128xf32>
    %cst_303 = arith.constant dense<0.000000e+00> : vector<1x128xf32>
    %1139 = tpu.matmul %1137, %631, %cst_303 {dimension_numbers = #tpu.dot_dimension_numbers<[1], [0], [0], [1], [0, 0, 1, 1], [], []>} : vector<1x32xf32>, vector<32x128xf32>, vector<1x128xf32> -> vector<1x128xf32>
    %1140 = arith.addf %1138, %1139 : vector<1x128xf32>
    %1141 = arith.negf %1140 : vector<1x128xf32>
    %1142 = math.exp %1141 : vector<1x128xf32>
    %cst_304 = arith.constant 1.000000e+00 : f32
    %1143 = vector.broadcast %cst_304 : f32 to vector<1x128xf32>
    %1144 = arith.addf %1143, %1142 : vector<1x128xf32>
    %1145 = arith.divf %1143, %1144 : vector<1x128xf32>
    %1146 = vector.extract_strided_slice %1145 {offsets = [0, 0], sizes = [1, 32], strides = [1, 1]} : vector<1x128xf32> to vector<1x32xf32>
    %1147 = vector.extract_strided_slice %1145 {offsets = [0, 32], sizes = [1, 32], strides = [1, 1]} : vector<1x128xf32> to vector<1x32xf32>
    %1148 = vector.extract_strided_slice %1145 {offsets = [0, 96], sizes = [1, 32], strides = [1, 1]} : vector<1x128xf32> to vector<1x32xf32>
    %1149 = vector.extract_strided_slice %1140 {offsets = [0, 64], sizes = [1, 32], strides = [1, 1]} : vector<1x128xf32> to vector<1x32xf32>
    %1150 = math.tanh %1149 : vector<1x32xf32>
    %1151 = arith.mulf %1147, %1135 : vector<1x32xf32>
    %1152 = arith.mulf %1146, %1150 : vector<1x32xf32>
    %1153 = arith.addf %1151, %1152 : vector<1x32xf32>
    %1154 = math.tanh %1153 : vector<1x32xf32>
    %1155 = arith.mulf %1148, %1154 : vector<1x32xf32>
    %c29_305 = arith.constant 29 : index
    %c0_306 = arith.constant 0 : index
    %1156 = vector.load %arg14[%c29_305, %c0_306] : memref<32x128xf32, #tpu.memory_space<vmem>>, vector<1x128xf32>
    %cst_307 = arith.constant dense<0.000000e+00> : vector<1x128xf32>
    %1157 = tpu.matmul %1155, %631, %cst_307 {dimension_numbers = #tpu.dot_dimension_numbers<[1], [0], [0], [1], [0, 0, 1, 1], [], []>} : vector<1x32xf32>, vector<32x128xf32>, vector<1x128xf32> -> vector<1x128xf32>
    %1158 = arith.addf %1156, %1157 : vector<1x128xf32>
    %1159 = arith.negf %1158 : vector<1x128xf32>
    %1160 = math.exp %1159 : vector<1x128xf32>
    %cst_308 = arith.constant 1.000000e+00 : f32
    %1161 = vector.broadcast %cst_308 : f32 to vector<1x128xf32>
    %1162 = arith.addf %1161, %1160 : vector<1x128xf32>
    %1163 = arith.divf %1161, %1162 : vector<1x128xf32>
    %1164 = vector.extract_strided_slice %1163 {offsets = [0, 0], sizes = [1, 32], strides = [1, 1]} : vector<1x128xf32> to vector<1x32xf32>
    %1165 = vector.extract_strided_slice %1163 {offsets = [0, 32], sizes = [1, 32], strides = [1, 1]} : vector<1x128xf32> to vector<1x32xf32>
    %1166 = vector.extract_strided_slice %1163 {offsets = [0, 96], sizes = [1, 32], strides = [1, 1]} : vector<1x128xf32> to vector<1x32xf32>
    %1167 = vector.extract_strided_slice %1158 {offsets = [0, 64], sizes = [1, 32], strides = [1, 1]} : vector<1x128xf32> to vector<1x32xf32>
    %1168 = math.tanh %1167 : vector<1x32xf32>
    %1169 = arith.mulf %1165, %1153 : vector<1x32xf32>
    %1170 = arith.mulf %1164, %1168 : vector<1x32xf32>
    %1171 = arith.addf %1169, %1170 : vector<1x32xf32>
    %1172 = math.tanh %1171 : vector<1x32xf32>
    %1173 = arith.mulf %1166, %1172 : vector<1x32xf32>
    %c30_309 = arith.constant 30 : index
    %c0_310 = arith.constant 0 : index
    %1174 = vector.load %arg14[%c30_309, %c0_310] : memref<32x128xf32, #tpu.memory_space<vmem>>, vector<1x128xf32>
    %cst_311 = arith.constant dense<0.000000e+00> : vector<1x128xf32>
    %1175 = tpu.matmul %1173, %631, %cst_311 {dimension_numbers = #tpu.dot_dimension_numbers<[1], [0], [0], [1], [0, 0, 1, 1], [], []>} : vector<1x32xf32>, vector<32x128xf32>, vector<1x128xf32> -> vector<1x128xf32>
    %1176 = arith.addf %1174, %1175 : vector<1x128xf32>
    %1177 = arith.negf %1176 : vector<1x128xf32>
    %1178 = math.exp %1177 : vector<1x128xf32>
    %cst_312 = arith.constant 1.000000e+00 : f32
    %1179 = vector.broadcast %cst_312 : f32 to vector<1x128xf32>
    %1180 = arith.addf %1179, %1178 : vector<1x128xf32>
    %1181 = arith.divf %1179, %1180 : vector<1x128xf32>
    %1182 = vector.extract_strided_slice %1181 {offsets = [0, 0], sizes = [1, 32], strides = [1, 1]} : vector<1x128xf32> to vector<1x32xf32>
    %1183 = vector.extract_strided_slice %1181 {offsets = [0, 32], sizes = [1, 32], strides = [1, 1]} : vector<1x128xf32> to vector<1x32xf32>
    %1184 = vector.extract_strided_slice %1181 {offsets = [0, 96], sizes = [1, 32], strides = [1, 1]} : vector<1x128xf32> to vector<1x32xf32>
    %1185 = vector.extract_strided_slice %1176 {offsets = [0, 64], sizes = [1, 32], strides = [1, 1]} : vector<1x128xf32> to vector<1x32xf32>
    %1186 = math.tanh %1185 : vector<1x32xf32>
    %1187 = arith.mulf %1183, %1171 : vector<1x32xf32>
    %1188 = arith.mulf %1182, %1186 : vector<1x32xf32>
    %1189 = arith.addf %1187, %1188 : vector<1x32xf32>
    %1190 = math.tanh %1189 : vector<1x32xf32>
    %1191 = arith.mulf %1184, %1190 : vector<1x32xf32>
    %c31_313 = arith.constant 31 : index
    %c0_314 = arith.constant 0 : index
    %1192 = vector.load %arg14[%c31_313, %c0_314] : memref<32x128xf32, #tpu.memory_space<vmem>>, vector<1x128xf32>
    %cst_315 = arith.constant dense<0.000000e+00> : vector<1x128xf32>
    %1193 = tpu.matmul %1191, %631, %cst_315 {dimension_numbers = #tpu.dot_dimension_numbers<[1], [0], [0], [1], [0, 0, 1, 1], [], []>} : vector<1x32xf32>, vector<32x128xf32>, vector<1x128xf32> -> vector<1x128xf32>
    %1194 = arith.addf %1192, %1193 : vector<1x128xf32>
    %1195 = arith.negf %1194 : vector<1x128xf32>
    %1196 = math.exp %1195 : vector<1x128xf32>
    %cst_316 = arith.constant 1.000000e+00 : f32
    %1197 = vector.broadcast %cst_316 : f32 to vector<1x128xf32>
    %1198 = arith.addf %1197, %1196 : vector<1x128xf32>
    %1199 = arith.divf %1197, %1198 : vector<1x128xf32>
    %1200 = vector.extract_strided_slice %1199 {offsets = [0, 0], sizes = [1, 32], strides = [1, 1]} : vector<1x128xf32> to vector<1x32xf32>
    %1201 = vector.extract_strided_slice %1199 {offsets = [0, 32], sizes = [1, 32], strides = [1, 1]} : vector<1x128xf32> to vector<1x32xf32>
    %1202 = vector.extract_strided_slice %1199 {offsets = [0, 96], sizes = [1, 32], strides = [1, 1]} : vector<1x128xf32> to vector<1x32xf32>
    %1203 = vector.extract_strided_slice %1194 {offsets = [0, 64], sizes = [1, 32], strides = [1, 1]} : vector<1x128xf32> to vector<1x32xf32>
    %1204 = math.tanh %1203 : vector<1x32xf32>
    %1205 = arith.mulf %1201, %1189 : vector<1x32xf32>
    %1206 = arith.mulf %1200, %1204 : vector<1x32xf32>
    %1207 = arith.addf %1205, %1206 : vector<1x32xf32>
    %1208 = math.tanh %1207 : vector<1x32xf32>
    %1209 = arith.mulf %1202, %1208 : vector<1x32xf32>
    %c0_317 = arith.constant 0 : index
    %c0_318 = arith.constant 0 : index
    %1210 = vector.load %arg9[%c0_317, %c0_318] : memref<32x20xf32, #tpu.memory_space<vmem>>, vector<32x20xf32>
    %cst_319 = arith.constant dense<0.000000e+00> : vector<1x20xf32>
    %1211 = tpu.matmul %1209, %1210, %cst_319 {dimension_numbers = #tpu.dot_dimension_numbers<[1], [0], [0], [1], [0, 0, 1, 1], [], []>} : vector<1x32xf32>, vector<32x20xf32>, vector<1x20xf32> -> vector<1x20xf32>
    %c0_320 = arith.constant 0 : index
    %c0_321 = arith.constant 0 : index
    %1212 = vector.load %arg10[%c0_320, %c0_321] : memref<1x20xf32, #tpu.memory_space<vmem>>, vector<1x20xf32>
    %1213 = arith.addf %1211, %1212 : vector<1x20xf32>
    %cst_322 = arith.constant 0.000000e+00 : f32
    %1214 = vector.broadcast %cst_322 : f32 to vector<1x20xf32>
    %1215 = arith.maximumf %1213, %1214 : vector<1x20xf32>
    %c0_323 = arith.constant 0 : index
    %c0_324 = arith.constant 0 : index
    %1216 = vector.load %arg11[%c0_323, %c0_324] : memref<20x5xf32, #tpu.memory_space<vmem>>, vector<20x5xf32>
    %cst_325 = arith.constant dense<0.000000e+00> : vector<1x5xf32>
    %1217 = tpu.matmul %1215, %1216, %cst_325 {dimension_numbers = #tpu.dot_dimension_numbers<[1], [0], [0], [1], [0, 0, 1, 1], [], []>} : vector<1x20xf32>, vector<20x5xf32>, vector<1x5xf32> -> vector<1x5xf32>
    %c0_326 = arith.constant 0 : index
    %c0_327 = arith.constant 0 : index
    %1218 = vector.load %arg12[%c0_326, %c0_327] : memref<1x5xf32, #tpu.memory_space<vmem>>, vector<1x5xf32>
    %1219 = arith.addf %1217, %1218 : vector<1x5xf32>
    %1220 = arith.negf %1219 : vector<1x5xf32>
    %1221 = math.exp %1220 : vector<1x5xf32>
    %cst_328 = arith.constant 1.000000e+00 : f32
    %1222 = vector.broadcast %cst_328 : f32 to vector<1x5xf32>
    %1223 = arith.addf %1222, %1221 : vector<1x5xf32>
    %1224 = arith.divf %1222, %1223 : vector<1x5xf32>
    %c0_329 = arith.constant 0 : index
    %c0_330 = arith.constant 0 : index
    %1225 = vector.load %arg13[%c0_329, %c0_330] : memref<1x5xf32, #tpu.memory_space<vmem>>, vector<1x5xf32>
    tpu.vector_store %arg13[%c0_329, %c0_330], %1224 {strides = array<i32>} : memref<1x5xf32, #tpu.memory_space<vmem>>, vector<1x5xf32>,
    return
  }
}

</mosaic_0001>

<bundles_post_ra>
// kernel: wki_forward.1
= control target key start
LH: loop header
LB: loop body
LE: loop exit
PB: predicated region body
PF: predicated region fallthrough
CT: control target
= control target key end

     0   :  { %vm61_vm0 = vcmask 490496   ;;  %v9265_v8 = vmov 0.0|0.0   ;;  %vm9266_vm1 = vmmov 0   ;;  %v9267_v9 = vmov 0.0   ;;  %s10279_s0 = inlined_call_operand.vmem [shape: f32[60,1], index: 0, kind: input, shape index: {}]   ;;  %s10280_s1 = inlined_call_operand.vmem [shape: f32[32,60], index: 1, kind: input, shape index: {}]   ;;  %s10281_s2 = inlined_call_operand.vmem [shape: f32[32,1], index: 2, kind: input, shape index: {}]   ;;  %s10282_s3 = inlined_call_operand.vmem [shape: f32[1,128], index: 3, kind: input, shape index: {}]   ;;  %s10283_s4 = inlined_call_operand.vmem [shape: f32[32,128], index: 4, kind: input, shape index: {}]   ;;  %s10284_s5 = inlined_call_operand.vmem [shape: f32[1,128], index: 5, kind: input, shape index: {}]   ;;  %s10285_s6 = inlined_call_operand.vmem [shape: f32[32,128], index: 6, kind: input, shape index: {}]   ;;  %s10286_s7 = inlined_call_operand.vmem [shape: f32[32,128], index: 7, kind: input, shape index: {}]   ;;  %s10287_s8 = inlined_call_operand.vmem [shape: f32[1,128], index: 8, kind: input, shape index: {}]   ;;  %s10288_s9 = inlined_call_operand.vmem [shape: f32[32,20], index: 9, kind: input, shape index: {}]   ;;  %s10289_s10 = inlined_call_operand.vmem [shape: f32[1,20], index: 10, kind: input, shape index: {}]   ;;  %s10290_s11 = inlined_call_operand.vmem [shape: f32[20,5], index: 11, kind: input, shape index: {}]   ;;  %s10291_s12 = inlined_call_operand.vmem [shape: f32[1,5], index: 12, kind: input, shape index: {}]   ;;  %s10292_s13 = inlined_call_operand.hbm [shape: f32[1,5], index: 13, kind: output, shape index: {}]  }
   0x1   :  { %v49_v0 = vld [vmem:[%s10279_s0] sm:$0xff]  ;;  %v50_v1 = vld [vmem:[%s10279_s0 + $0x8] sm:$0xff]  ;;  %v51_v2 = vld [vmem:[%s10279_s0 + $0x10] sm:$0xff]  ;;  %8312 = vmatprep.subr.bf16.mxu1 %v9265_v8  ;;  %7564 = vmatprep.mubr.msk.f32.mxu1 %vm9266_vm1, %v9267_v9 }
   0x2   :  { %v8294_v3 = vpack.c.bf16 %v50_v1, %v49_v0  ;;  %v52_v4 = vld [vmem:[%s10279_s0 + $0x18] sm:$0xff]  ;;  %v53_v6 = vld [vmem:[%s10279_s0 + $0x20] sm:$0xff]  ;;  %v54_v7 = vld [vmem:[%s10279_s0 + $0x28] sm:$0xff] }
   0x3   :  { %v8298_v5 = vpack.c.bf16 %v52_v4, %v51_v2  ;;  %v45_v10 = vld [vmem:[%s10280_s1] sm:$0xff]  ;;  %v210_v12 = vld [vmem:[%s10283_s4 + $0x8] sm:$0xff]  ;;  %v211_v13 = vld [vmem:[%s10283_s4 + $0x10] sm:$0xff]  ;;  %v8302_v15 = vpack.c.bf16 %v54_v7, %v53_v6 }
   0x4   :  { %8295 = vmatprep.subr.bf16.mxu0 %v8294_v3  ;;  %v209_v11 = vld [vmem:[%s10283_s4] sm:$0xff]  ;;  %7550 = vmatprep.mubr.msk.f32.mxu0 %vm61_vm0, %v45_v10  ;;  %v212_v14 = vld [vmem:[%s10283_s4 + $0x18] sm:$0xff] }
   0x5   :  { %8297 = vmatpush3.bf16.msra.mxu0 %v8294_v3  ;;  %v9380_v16 = vpack.c.bf16 %v210_v12, %v209_v11 }
   0x6   :  { %8299 = vmatprep.subr.bf16.mxu0 %v8298_v5 }
   0x7   :  { %18 = vsyncpa [#allocation5], 0  ;;  %v55_v17 = vld [vmem:[%s10279_s0 + $0x30] sm:$0xff]  ;;  %v56_v18 = vld [vmem:[%s10279_s0 + $0x38] sm:$0xf]  ;;  %vm74_vm2 = vcmask 1043456   ;;  %8314 = vmatpush3.bf16.msra.mxu1 %v9380_v16  ;;  %v9389_v19 = vpack.c.bf16 %v212_v14, %v211_v13 }
   0x8   :  { %8315 = vmatprep.subr.bf16.mxu1 %v9265_v8  ;;  %v8306_v20 = vpack.c.bf16 %v56_v18, %v55_v17  ;;  %vm9268_vm3 = vmmov 1   ;;  %v46_v21 = vld [vmem:[%s10280_s1 + $0x8] sm:$0xff]  ;;  %v9269_v22 = vmov 0   ;;  %v57_v23 = vld [vmem:[%s10281_s2] sm:$0xff]  ;;  %s9270_s23 = smov 64   ;;  %s9271_s24 = smov 32  }
   0x9   :  { %8301 = vmatpush3.bf16.msra.mxu0 %v8298_v5  ;;  %vm8307_vm4 = vmpackc.low %vm74_vm2, %vm9268_vm3  ;;  %8721 = vset.pattern.permute.xlu0 %v9269_v22  ;;  %v9419_v29 = vld [vmem:[%s10282_s3] ss:$0 sm:$0xff]  ;;  %vm317_vm5 = vcmask 253952   ;;  %vm214_vm6 = vcmask 261120   ;;  %v47_v0 = vld [vmem:[%s10280_s1 + $0x10] sm:$0xff]  ;;  %vm6944_vm7 = vcmask 162816  }
   0xa   :  { %8303 = vmatprep.subr.bf16.mxu0 %v8302_v15  ;;  %8722 = vset.pattern.permute.xlu1 %v9269_v22  ;;  %v9424_v30 = vld [vmem:[%s10284_s5] ss:$0 sm:$0xff]  ;;  %v48_v1 = vld [vmem:[%s10280_s1 + $0x18] sm:$0xff]  ;;  %vm7027_vm8 = vcmask 32768  }
   0xb   :  { %8317 = vmatpush3.bf16.msra.mxu1 %v9389_v19 }
   0xc   :  { %8318 = vmatprep.subr.bf16.mxu1 %v9265_v8 }
   0xd   :  { %8305 = vmatpush3.bf16.msra.mxu0 %v8302_v15 }
   0xe   :  { %8308 = vmatprep.subr.msk.bf16.mxu0 %vm8307_vm4, %v8306_v20  ;;  %7565 = vmatmul.mubr.f32.vlgmr.msra.gmra.mrb[0].mxu1 %v9267_v9 }
   0xf   :  { %8320 = vmatpush3.bf16.msra.mxu1 %v9380_v16  ;;  %7575 = vmatprep.mubr.msk.f32.mxu1 %vm9266_vm1, %v9267_v9 }
  0x10   :  { %8321 = vmatprep.subr.bf16.mxu1 %v9265_v8 }
  0x11   :  { %8311 = vmatpush3.bf16.msk.msra.mxu0 %vm8307_vm4, %v8306_v20 }
  0x12   :  { %8324 = vmatprep.subr.bf16.mxu0 %v9265_v8 }
  0x13   :  { %8323 = vmatpush3.bf16.msra.mxu1 %v9389_v19 }
  0x14   :  { %7551 = vmatmul.mubr.msk.f32.vlgmr.msra.gmra.mrb[0].mxu0 %vm61_vm0, %v46_v21  ;;  %8330 = vmatprep.subr.bf16.mxu1 %v9265_v8 }
  0x15   :  { %8326 = vmatpush3.bf16.msra.mxu0 %v9380_v16  ;;  %7553 = vmatprep.mubr.msk.f32.mxu0 %vm61_vm0, %v47_v0 }
  0x16   :  { %8327 = vmatprep.subr.bf16.mxu0 %v9265_v8 }
  0x18   :  { %7554 = vmatmul.mubr.msk.f32.gmra.mrb[2].mxu0 %vm61_vm0, %v48_v1 }
  0x19   :  { %8329 = vmatpush3.bf16.msra.mxu0 %v9389_v19  ;;  %7586 = vmatprep.mubr.msk.f32.mxu0 %vm9266_vm1, %v9267_v9 }
  0x1a   :  { %8336 = vmatprep.subr.bf16.mxu0 %v9265_v8 }
  0xe1   :  { %v284_v27 = vpop.f32.mrb[0].mxu1 }
  0xe2   :  { %v7566_v28 = vpop.f32.mrb[1].mxu1 }
  0xe7   :  { %v9414_v24 = vpop.f32.mrb[0].mxu0 }
  0xe8   :  { %v144_v25 = vpop.f32.mrb[1].mxu0 }
  0xe9   :  { %v145_v26 = vadd.f32 %v144_v25, %v57_v23 }
  0xeb   :  { %166 = vperm.xlu0 %8721, %v145_v26   ;;  %v9454_v5 = vpop.f32.mrb[2].mxu0 }
  0xec   :  { %v9456_v6 = vpop.f32.mrb[3].mxu0 }
 0x16a   :  { %v167_v31 = vpop.permute.xlu0 %166 }
 0x16b   :  { %v190_v32 = vmul.f32 %v9419_v29, %v167_v31 }
 0x16d   :  { %v201_v33 = vadd.f32 %v9424_v30, %v190_v32 }
 0x16f   :  { %205 = vst [vmem:[#allocation2] sm:$0xff] %v201_v33 }
 0x176   :  { %v213_v34 = vld [vmem:[#allocation2] sm:$0x1]  ;;  %v319_v50 = vld [vmem:[#allocation2 + $0x1] sm:$0x1]  ;;  %v422_v10 = vld [vmem:[#allocation2 + $0x2] sm:$0x1] }
 0x177   :  { %v288_v35 = vadd.f32 %v284_v27, %v213_v34  ;;  %v525_v33 = vld [vmem:[#allocation2 + $0x3] sm:$0x1] }
 0x179   :  { %8723 = vtanh.f32 %v288_v35  ;;  %v7050_v37 = vmul.f32 -1.442695, %v288_v35 }
 0x17b   :  { %8725 = vpow2.f32 %v7050_v37 }
 0x183   :  { %v8724_v36 = vpop.eup %8723 }
 0x184   :  { %298 = vrot.lane.b32.xlu0 %v8724_v36, %s9270_s23 }
 0x185   :  { %v8726_v38 = vpop.eup %8725 }
 0x186   :  { %v292_v39 = vadd.f32 1.0, %v8726_v38 }
 0x188   :  { %8727 = vrcp.f32 %v292_v39 }
 0x192   :  { %v8728_v40 = vpop.eup %8727 }
 0x193   :  { %v296_v43 = vmul.f32 0.0, %v8728_v40 }
 0x1f6   :  { %v299_v41 = vpop.permute.xlu0 %298 }
 0x1f7   :  { %v301_v42 = vmul.f32 %v8728_v40, %v299_v41 }
 0x1f9   :  { %303 = vrot.lane.b32.xlu1 %v301_v42, %s9271_s24 }
 0x26b   :  { %v304_v44 = vpop.permute.xlu1 %303 }
 0x26c   :  { %v306_v45 = vadd.f32 %v304_v44, %v296_v43 }
 0x26e   :  { %8729 = vtanh.f32 %v306_v45 }
 0x278   :  { %v8730_v46 = vpop.eup %8729 }
 0x279   :  { %309 = vrot.lane.b32.xlu1 %v8730_v46, %s9270_s23 }
 0x2eb   :  { %v310_v47 = vpop.permute.xlu1 %309 }
 0x2ec   :  { %v312_v48 = vmul.f32 %v8728_v40, %v310_v47 }
 0x2ee   :  { %314 = vrot.lane.b32.xlu0 %v312_v48, %s9271_s24 }
 0x360   :  { %v315_v49 = vpop.permute.xlu0 %314 }
 0x361   :  { %318 = vst.msk [vmem:[#allocation3] sm:$0x1] %vm317_vm5, %v315_v49  ;;  %7576 = vmatmul.mubr.msk.f32.vlgmr.msra.gmra.mrb[2].mxu1 %vm214_vm6, %v315_v49 }
 0x362   :  { %8332 = vmatpush3.bf16.msra.mxu1 %v9380_v16  ;;  %7597 = vmatprep.mubr.msk.f32.mxu1 %vm9266_vm1, %v9267_v9 }
 0x363   :  { %8333 = vmatprep.subr.bf16.mxu1 %v9265_v8 }
 0x366   :  { %8335 = vmatpush3.bf16.msra.mxu1 %v9389_v19 }
 0x367   :  { %8342 = vmatprep.subr.bf16.mxu1 %v9265_v8 }
 0x434   :  { %v388_v51 = vpop.f32.mrb[2].mxu1 }
 0x435   :  { %v392_v52 = vadd.f32 %v388_v51, %v319_v50  ;;  %v7577_v53 = vpop.f32.mrb[3].mxu1  ;;  %v628_v51 = vld [vmem:[#allocation2 + $0x4] sm:$0x1] }
 0x437   :  { %8731 = vtanh.f32 %v392_v52  ;;  %v7052_v55 = vmul.f32 -1.442695, %v392_v52 }
 0x439   :  { %8733 = vpow2.f32 %v7052_v55 }
 0x441   :  { %v8732_v54 = vpop.eup %8731 }
 0x442   :  { %402 = vrot.lane.b32.xlu1 %v8732_v54, %s9270_s23 }
 0x443   :  { %v8734_v56 = vpop.eup %8733 }
 0x444   :  { %v396_v57 = vadd.f32 1.0, %v8734_v56 }
 0x446   :  { %8735 = vrcp.f32 %v396_v57 }
 0x450   :  { %v8736_v58 = vpop.eup %8735 }
 0x451   :  { %v400_v61 = vmul.f32 %v8736_v58, %v306_v45 }
 0x4b4   :  { %v403_v59 = vpop.permute.xlu1 %402 }
 0x4b5   :  { %v405_v60 = vmul.f32 %v8736_v58, %v403_v59 }
 0x4b7   :  { %407 = vrot.lane.b32.xlu0 %v405_v60, %s9271_s24 }
 0x529   :  { %v408_v62 = vpop.permute.xlu0 %407 }
 0x52a   :  { %v410_v63 = vadd.f32 %v408_v62, %v400_v61 }
 0x52c   :  { %8737 = vtanh.f32 %v410_v63 }
 0x536   :  { %v8738_v2 = vpop.eup %8737 }
 0x537   :  { %413 = vrot.lane.b32.xlu1 %v8738_v2, %s9270_s23 }
 0x5a9   :  { %v414_v3 = vpop.permute.xlu1 %413 }
 0x5aa   :  { %v416_v4 = vmul.f32 %v8736_v58, %v414_v3 }
 0x5ac   :  { %418 = vrot.lane.b32.xlu0 %v416_v4, %s9271_s24 }
 0x61e   :  { %v419_v7 = vpop.permute.xlu0 %418 }
 0x61f   :  { %421 = vst.msk [vmem:[#allocation3 + $0x1] sm:$0x1] %vm317_vm5, %v419_v7  ;;  %7587 = vmatmul.mubr.msk.f32.vlgmr.msra.gmra.mrb[4].mxu0 %vm214_vm6, %v419_v7  ;;  %v731_v7 = vld [vmem:[#allocation2 + $0x5] sm:$0x1] }
 0x620   :  { %8338 = vmatpush3.bf16.msra.mxu0 %v9380_v16  ;;  %7608 = vmatprep.mubr.msk.f32.mxu0 %vm9266_vm1, %v9267_v9 }
 0x621   :  { %8339 = vmatprep.subr.bf16.mxu0 %v9265_v8 }
 0x624   :  { %8341 = vmatpush3.bf16.msra.mxu0 %v9389_v19 }
 0x625   :  { %8348 = vmatprep.subr.bf16.mxu0 %v9265_v8 }
 0x6f2   :  { %v491_v11 = vpop.f32.mrb[4].mxu0 }
 0x6f3   :  { %v495_v12 = vadd.f32 %v491_v11, %v422_v10  ;;  %v7588_v13 = vpop.f32.mrb[5].mxu0 }
 0x6f5   :  { %8739 = vtanh.f32 %v495_v12  ;;  %v7054_v15 = vmul.f32 -1.442695, %v495_v12 }
 0x6f7   :  { %8741 = vpow2.f32 %v7054_v15 }
 0x6ff   :  { %v8740_v14 = vpop.eup %8739 }
 0x700   :  { %505 = vrot.lane.b32.xlu1 %v8740_v14, %s9270_s23 }
 0x701   :  { %v8742_v17 = vpop.eup %8741 }
 0x702   :  { %v499_v18 = vadd.f32 1.0, %v8742_v17 }
 0x704   :  { %8743 = vrcp.f32 %v499_v18 }
 0x70e   :  { %v8744_v20 = vpop.eup %8743 }
 0x70f   :  { %v503_v23 = vmul.f32 %v8744_v20, %v410_v63 }
 0x772   :  { %v506_v21 = vpop.permute.xlu1 %505 }
 0x773   :  { %v508_v22 = vmul.f32 %v8744_v20, %v506_v21 }
 0x775   :  { %510 = vrot.lane.b32.xlu0 %v508_v22, %s9271_s24 }
 0x7e7   :  { %v511_v25 = vpop.permute.xlu0 %510 }
 0x7e8   :  { %v513_v26 = vadd.f32 %v511_v25, %v503_v23 }
 0x7ea   :  { %8745 = vtanh.f32 %v513_v26 }
 0x7f4   :  { %v8746_v27 = vpop.eup %8745 }
 0x7f5   :  { %516 = vrot.lane.b32.xlu1 %v8746_v27, %s9270_s23 }
 0x867   :  { %v517_v28 = vpop.permute.xlu1 %516 }
 0x868   :  { %v519_v31 = vmul.f32 %v8744_v20, %v517_v28 }
 0x86a   :  { %521 = vrot.lane.b32.xlu0 %v519_v31, %s9271_s24 }
 0x8dc   :  { %v522_v32 = vpop.permute.xlu0 %521 }
 0x8dd   :  { %524 = vst.msk [vmem:[#allocation3 + $0x2] sm:$0x1] %vm317_vm5, %v522_v32  ;;  %7598 = vmatmul.mubr.msk.f32.vlgmr.msra.gmra.mrb[4].mxu1 %vm214_vm6, %v522_v32  ;;  %v834_v32 = vld [vmem:[#allocation2 + $0x6] sm:$0x1] }
 0x8de   :  { %8344 = vmatpush3.bf16.msra.mxu1 %v9380_v16  ;;  %7619 = vmatprep.mubr.msk.f32.mxu1 %vm9266_vm1, %v9267_v9 }
 0x8df   :  { %8345 = vmatprep.subr.bf16.mxu1 %v9265_v8 }
 0x8e2   :  { %8347 = vmatpush3.bf16.msra.mxu1 %v9389_v19 }
 0x8e3   :  { %8354 = vmatprep.subr.bf16.mxu1 %v9265_v8 }
 0x9b0   :  { %v594_v34 = vpop.f32.mrb[4].mxu1 }
 0x9b1   :  { %v598_v35 = vadd.f32 %v594_v34, %v525_v33  ;;  %v7599_v36 = vpop.f32.mrb[5].mxu1 }
 0x9b3   :  { %8747 = vtanh.f32 %v598_v35  ;;  %v7056_v38 = vmul.f32 -1.442695, %v598_v35 }
 0x9b5   :  { %8749 = vpow2.f32 %v7056_v38 }
 0x9bd   :  { %v8748_v37 = vpop.eup %8747 }
 0x9be   :  { %608 = vrot.lane.b32.xlu1 %v8748_v37, %s9270_s23 }
 0x9bf   :  { %v8750_v39 = vpop.eup %8749 }
 0x9c0   :  { %v602_v40 = vadd.f32 1.0, %v8750_v39 }
 0x9c2   :  { %8751 = vrcp.f32 %v602_v40 }
 0x9cc   :  { %v8752_v41 = vpop.eup %8751 }
 0x9cd   :  { %v606_v44 = vmul.f32 %v8752_v41, %v513_v26 }
 0xa30   :  { %v609_v42 = vpop.permute.xlu1 %608 }
 0xa31   :  { %v611_v43 = vmul.f32 %v8752_v41, %v609_v42 }
 0xa33   :  { %613 = vrot.lane.b32.xlu0 %v611_v43, %s9271_s24 }
 0xaa5   :  { %v614_v45 = vpop.permute.xlu0 %613 }
 0xaa6   :  { %v616_v46 = vadd.f32 %v614_v45, %v606_v44 }
 0xaa8   :  { %8753 = vtanh.f32 %v616_v46 }
 0xab2   :  { %v8754_v47 = vpop.eup %8753 }
 0xab3   :  { %619 = vrot.lane.b32.xlu1 %v8754_v47, %s9270_s23 }
 0xb25   :  { %v620_v48 = vpop.permute.xlu1 %619 }
 0xb26   :  { %v622_v49 = vmul.f32 %v8752_v41, %v620_v48 }
 0xb28   :  { %624 = vrot.lane.b32.xlu0 %v622_v49, %s9271_s24 }
 0xb9a   :  { %v625_v50 = vpop.permute.xlu0 %624 }
 0xb9b   :  { %627 = vst.msk [vmem:[#allocation3 + $0x3] sm:$0x1] %vm317_vm5, %v625_v50  ;;  %7609 = vmatmul.mubr.msk.f32.vlgmr.msra.gmra.mrb[6].mxu0 %vm214_vm6, %v625_v50  ;;  %v937_v50 = vld [vmem:[#allocation2 + $0x7] sm:$0x1] }
 0xb9c   :  { %8350 = vmatpush3.bf16.msra.mxu0 %v9380_v16  ;;  %7630 = vmatprep.mubr.msk.f32.mxu0 %vm9266_vm1, %v9267_v9 }
 0xb9d   :  { %8351 = vmatprep.subr.bf16.mxu0 %v9265_v8 }
 0xba0   :  { %8353 = vmatpush3.bf16.msra.mxu0 %v9389_v19 }
 0xba1   :  { %8360 = vmatprep.subr.bf16.mxu0 %v9265_v8 }
 0xc6e   :  { %v697_v52 = vpop.f32.mrb[6].mxu0 }
 0xc6f   :  { %v701_v53 = vadd.f32 %v697_v52, %v628_v51  ;;  %v7610_v54 = vpop.f32.mrb[7].mxu0 }
 0xc71   :  { %8755 = vtanh.f32 %v701_v53  ;;  %v7058_v56 = vmul.f32 -1.442695, %v701_v53 }
 0xc73   :  { %8757 = vpow2.f32 %v7058_v56 }
 0xc7b   :  { %v8756_v55 = vpop.eup %8755 }
 0xc7c   :  { %711 = vrot.lane.b32.xlu1 %v8756_v55, %s9270_s23 }
 0xc7d   :  { %v8758_v57 = vpop.eup %8757 }
 0xc7e   :  { %v705_v58 = vadd.f32 1.0, %v8758_v57 }
 0xc80   :  { %8759 = vrcp.f32 %v705_v58 }
 0xc8a   :  { %v8760_v59 = vpop.eup %8759 }
 0xc8b   :  { %v709_v62 = vmul.f32 %v8760_v59, %v616_v46 }
 0xcee   :  { %v712_v60 = vpop.permute.xlu1 %711 }
 0xcef   :  { %v714_v61 = vmul.f32 %v8760_v59, %v712_v60 }
 0xcf1   :  { %716 = vrot.lane.b32.xlu0 %v714_v61, %s9271_s24 }
 0xd63   :  { %v717_v63 = vpop.permute.xlu0 %716 }
 0xd64   :  { %v719_v0 = vadd.f32 %v717_v63, %v709_v62 }
 0xd66   :  { %8761 = vtanh.f32 %v719_v0 }
 0xd70   :  { %v8762_v1 = vpop.eup %8761 }
 0xd71   :  { %722 = vrot.lane.b32.xlu1 %v8762_v1, %s9270_s23  ;;  %v58_v1 = vld [vmem:[%s10281_s2 + $0x8] sm:$0xff] }
 0xde3   :  { %v723_v2 = vpop.permute.xlu1 %722 }
 0xde4   :  { %v725_v3 = vmul.f32 %v8760_v59, %v723_v2  ;;  %v150_v2 = vadd.f32 %v9414_v24, %v58_v1 }
 0xde6   :  { %727 = vrot.lane.b32.xlu0 %v725_v3, %s9271_s24 }
 0xe58   :  { %v728_v4 = vpop.permute.xlu0 %727 }
 0xe59   :  { %730 = vst.msk [vmem:[#allocation3 + $0x4] sm:$0x1] %vm317_vm5, %v728_v4  ;;  %7620 = vmatmul.mubr.msk.f32.vlgmr.msra.gmra.mrb[6].mxu1 %vm214_vm6, %v728_v4 }
 0xe5a   :  { %8356 = vmatpush3.bf16.msra.mxu1 %v9380_v16  ;;  %7641 = vmatprep.mubr.msk.f32.mxu1 %vm9266_vm1, %v9267_v9 }
 0xe5b   :  { %8357 = vmatprep.subr.bf16.mxu1 %v9265_v8 }
 0xe5e   :  { %8359 = vmatpush3.bf16.msra.mxu1 %v9389_v19 }
 0xe5f   :  { %8366 = vmatprep.subr.bf16.mxu1 %v9265_v8 }
 0xf2c   :  { %v800_v10 = vpop.f32.mrb[6].mxu1 }
 0xf2d   :  { %v804_v11 = vadd.f32 %v800_v10, %v731_v7  ;;  %v7621_v12 = vpop.f32.mrb[7].mxu1 }
 0xf2f   :  { %8763 = vtanh.f32 %v804_v11  ;;  %v7060_v14 = vmul.f32 -1.442695, %v804_v11 }
 0xf31   :  { %8765 = vpow2.f32 %v7060_v14 }
 0xf39   :  { %v8764_v13 = vpop.eup %8763 }
 0xf3a   :  { %814 = vrot.lane.b32.xlu1 %v8764_v13, %s9270_s23 }
 0xf3b   :  { %v8766_v15 = vpop.eup %8765 }
 0xf3c   :  { %v808_v17 = vadd.f32 1.0, %v8766_v15 }
 0xf3e   :  { %8767 = vrcp.f32 %v808_v17 }
 0xf48   :  { %v8768_v18 = vpop.eup %8767 }
 0xf49   :  { %v812_v22 = vmul.f32 %v8768_v18, %v719_v0 }
 0xfac   :  { %v815_v20 = vpop.permute.xlu1 %814 }
 0xfad   :  { %v817_v21 = vmul.f32 %v8768_v18, %v815_v20 }
 0xfaf   :  { %819 = vrot.lane.b32.xlu0 %v817_v21, %s9271_s24 }
0x1021   :  { %v820_v23 = vpop.permute.xlu0 %819 }
0x1022   :  { %v822_v25 = vadd.f32 %v820_v23, %v812_v22 }
0x1024   :  { %8769 = vtanh.f32 %v822_v25 }
0x102e   :  { %v8770_v26 = vpop.eup %8769 }
0x102f   :  { %825 = vrot.lane.b32.xlu1 %v8770_v26, %s9270_s23 }
0x10a1   :  { %v826_v27 = vpop.permute.xlu1 %825 }
0x10a2   :  { %v828_v28 = vmul.f32 %v8768_v18, %v826_v27 }
0x10a4   :  { %830 = vrot.lane.b32.xlu0 %v828_v28, %s9271_s24 }
0x1116   :  { %v831_v31 = vpop.permute.xlu0 %830 }
0x1117   :  { %833 = vst.msk [vmem:[#allocation3 + $0x5] sm:$0x1] %vm317_vm5, %v831_v31  ;;  %7631 = vmatmul.mubr.msk.f32.vlgmr.msra.gmra.mrb[8].mxu0 %vm214_vm6, %v831_v31 }
0x1118   :  { %8362 = vmatpush3.bf16.msra.mxu0 %v9380_v16  ;;  %7652 = vmatprep.mubr.msk.f32.mxu0 %vm9266_vm1, %v9267_v9 }
0x1119   :  { %8363 = vmatprep.subr.bf16.mxu0 %v9265_v8 }
0x111c   :  { %8365 = vmatpush3.bf16.msra.mxu0 %v9389_v19 }
0x111d   :  { %8372 = vmatprep.subr.bf16.mxu0 %v9265_v8 }
0x11ea   :  { %v903_v33 = vpop.f32.mrb[8].mxu0 }
0x11eb   :  { %v907_v34 = vadd.f32 %v903_v33, %v834_v32  ;;  %v7632_v35 = vpop.f32.mrb[9].mxu0 }
0x11ed   :  { %8771 = vtanh.f32 %v907_v34  ;;  %v7062_v37 = vmul.f32 -1.442695, %v907_v34 }
0x11ef   :  { %8773 = vpow2.f32 %v7062_v37 }
0x11f7   :  { %v8772_v36 = vpop.eup %8771 }
0x11f8   :  { %917 = vrot.lane.b32.xlu1 %v8772_v36, %s9270_s23 }
0x11f9   :  { %v8774_v38 = vpop.eup %8773 }
0x11fa   :  { %v911_v39 = vadd.f32 1.0, %v8774_v38 }
0x11fc   :  { %8775 = vrcp.f32 %v911_v39 }
0x1206   :  { %v8776_v40 = vpop.eup %8775 }
0x1207   :  { %v915_v43 = vmul.f32 %v8776_v40, %v822_v25 }
0x126a   :  { %v918_v41 = vpop.permute.xlu1 %917 }
0x126b   :  { %v920_v42 = vmul.f32 %v8776_v40, %v918_v41 }
0x126d   :  { %922 = vrot.lane.b32.xlu0 %v920_v42, %s9271_s24 }
0x12df   :  { %v923_v44 = vpop.permute.xlu0 %922 }
0x12e0   :  { %v925_v45 = vadd.f32 %v923_v44, %v915_v43 }
0x12e2   :  { %8777 = vtanh.f32 %v925_v45 }
0x12ec   :  { %v8778_v46 = vpop.eup %8777 }
0x12ed   :  { %928 = vrot.lane.b32.xlu1 %v8778_v46, %s9270_s23 }
0x135f   :  { %v929_v47 = vpop.permute.xlu1 %928 }
0x1360   :  { %v931_v48 = vmul.f32 %v8776_v40, %v929_v47 }
0x1362   :  { %933 = vrot.lane.b32.xlu0 %v931_v48, %s9271_s24 }
0x13d4   :  { %v934_v49 = vpop.permute.xlu0 %933 }
0x13d5   :  { %936 = vst.msk [vmem:[#allocation3 + $0x6] sm:$0x1] %vm317_vm5, %v934_v49  ;;  %7642 = vmatmul.mubr.msk.f32.vlgmr.msra.gmra.mrb[8].mxu1 %vm214_vm6, %v934_v49 }
0x13d6   :  { %8368 = vmatpush3.bf16.msra.mxu1 %v9380_v16  ;;  %7663 = vmatprep.mubr.msk.f32.mxu1 %vm9266_vm1, %v9267_v9 }
0x13d7   :  { %8369 = vmatprep.subr.bf16.mxu1 %v9265_v8 }
0x13da   :  { %8371 = vmatpush3.bf16.msra.mxu1 %v9389_v19 }
0x13db   :  { %8378 = vmatprep.subr.bf16.mxu1 %v9265_v8 }
0x14a8   :  { %v1006_v51 = vpop.f32.mrb[8].mxu1 }
0x14a9   :  { %v1010_v52 = vadd.f32 %v1006_v51, %v937_v50  ;;  %v7643_v53 = vpop.f32.mrb[9].mxu1 }
0x14ab   :  { %8779 = vtanh.f32 %v1010_v52  ;;  %v7064_v55 = vmul.f32 -1.442695, %v1010_v52 }
0x14ad   :  { %8781 = vpow2.f32 %v7064_v55 }
0x14b5   :  { %v8780_v54 = vpop.eup %8779 }
0x14b6   :  { %1020 = vrot.lane.b32.xlu1 %v8780_v54, %s9270_s23 }
0x14b7   :  { %v8782_v56 = vpop.eup %8781 }
0x14b8   :  { %v1014_v57 = vadd.f32 1.0, %v8782_v56 }
0x14ba   :  { %8783 = vrcp.f32 %v1014_v57 }
0x14c4   :  { %v8784_v58 = vpop.eup %8783 }
0x14c5   :  { %v1018_v61 = vmul.f32 %v8784_v58, %v925_v45 }
0x1528   :  { %v1021_v59 = vpop.permute.xlu1 %1020 }
0x1529   :  { %v1023_v60 = vmul.f32 %v8784_v58, %v1021_v59 }
0x152b   :  { %1025 = vrot.lane.b32.xlu0 %v1023_v60, %s9271_s24 }
0x159d   :  { %v1026_v62 = vpop.permute.xlu0 %1025 }
0x159e   :  { %v1028_v63 = vadd.f32 %v1026_v62, %v1018_v61 }
0x15a0   :  { %8785 = vtanh.f32 %v1028_v63 }
0x15aa   :  { %v8786_v0 = vpop.eup %8785 }
0x15ab   :  { %1031 = vrot.lane.b32.xlu1 %v8786_v0, %s9270_s23 }
0x15af   :  { %171 = vperm.xlu1 %8722, %v150_v2  }
0x161d   :  { %v1032_v3 = vpop.permute.xlu1 %1031 }
0x161e   :  { %v1034_v4 = vmul.f32 %v8784_v58, %v1032_v3 }
0x1620   :  { %1036 = vrot.lane.b32.xlu0 %v1034_v4, %s9271_s24 }
0x162e   :  { %v172_v7 = vpop.permute.xlu1 %171 }
0x162f   :  { %v191_v10 = vmul.f32 %v9419_v29, %v172_v7 }
0x1631   :  { %v202_v11 = vadd.f32 %v9424_v30, %v191_v10 }
0x1633   :  { %206 = vst [vmem:[#allocation2 + $0x8] sm:$0xff] %v202_v11 }
0x163a   :  { %v1040_v24 = vld [vmem:[#allocation2 + $0x8] sm:$0x1]  ;;  %v1143_v33 = vld [vmem:[#allocation2 + $0x9] sm:$0x1]  ;;  %v1246_v51 = vld [vmem:[#allocation2 + $0xa] sm:$0x1] }
0x163b   :  { %v1349_v7 = vld [vmem:[#allocation2 + $0xb] sm:$0x1] }
0x1692   :  { %v1037_v12 = vpop.permute.xlu0 %1036 }
0x1693   :  { %1039 = vst.msk [vmem:[#allocation3 + $0x7] sm:$0x1] %vm317_vm5, %v1037_v12  ;;  %7653 = vmatmul.mubr.msk.f32.vlgmr.msra.gmra.mrb[10].mxu0 %vm214_vm6, %v1037_v12 }
0x1694   :  { %8374 = vmatpush3.bf16.msra.mxu0 %v9380_v16  ;;  %7674 = vmatprep.mubr.msk.f32.mxu0 %vm9266_vm1, %v9267_v9 }
0x1695   :  { %8375 = vmatprep.subr.bf16.mxu0 %v9265_v8 }
0x1698   :  { %8377 = vmatpush3.bf16.msra.mxu0 %v9389_v19 }
0x1699   :  { %8384 = vmatprep.subr.bf16.mxu0 %v9265_v8 }
0x1766   :  { %v1109_v29 = vpop.f32.mrb[10].mxu0 }
0x1767   :  { %v1113_v30 = vadd.f32 %v1109_v29, %v1040_v24  ;;  %v7654_v13 = vpop.f32.mrb[11].mxu0 }
0x1769   :  { %8787 = vtanh.f32 %v1113_v30  ;;  %v7066_v15 = vmul.f32 -1.442695, %v1113_v30 }
0x176b   :  { %8789 = vpow2.f32 %v7066_v15 }
0x1773   :  { %v8788_v14 = vpop.eup %8787 }
0x1774   :  { %1123 = vrot.lane.b32.xlu0 %v8788_v14, %s9270_s23 }
0x1775   :  { %v8790_v17 = vpop.eup %8789 }
0x1776   :  { %v1117_v18 = vadd.f32 1.0, %v8790_v17 }
0x1778   :  { %8791 = vrcp.f32 %v1117_v18 }
0x1782   :  { %v8792_v20 = vpop.eup %8791 }
0x1783   :  { %v1121_v23 = vmul.f32 %v8792_v20, %v1028_v63 }
0x17e6   :  { %v1124_v21 = vpop.permute.xlu0 %1123 }
0x17e7   :  { %v1126_v22 = vmul.f32 %v8792_v20, %v1124_v21 }
0x17e9   :  { %1128 = vrot.lane.b32.xlu1 %v1126_v22, %s9271_s24 }
0x185b   :  { %v1129_v25 = vpop.permute.xlu1 %1128 }
0x185c   :  { %v1131_v26 = vadd.f32 %v1129_v25, %v1121_v23 }
0x185e   :  { %8793 = vtanh.f32 %v1131_v26 }
0x1868   :  { %v8794_v27 = vpop.eup %8793 }
0x1869   :  { %1134 = vrot.lane.b32.xlu0 %v8794_v27, %s9270_s23  ;;  %v1452_v27 = vld [vmem:[#allocation2 + $0xc] sm:$0x1] }
0x18db   :  { %v1135_v28 = vpop.permute.xlu0 %1134 }
0x18dc   :  { %v1137_v31 = vmul.f32 %v8792_v20, %v1135_v28 }
0x18de   :  { %1139 = vrot.lane.b32.xlu1 %v1137_v31, %s9271_s24 }
0x1950   :  { %v1140_v32 = vpop.permute.xlu1 %1139 }
0x1951   :  { %1142 = vst.msk [vmem:[#allocation3 + $0x8] sm:$0x1] %vm317_vm5, %v1140_v32  ;;  %7664 = vmatmul.mubr.msk.f32.vlgmr.msra.gmra.mrb[10].mxu1 %vm214_vm6, %v1140_v32 }
0x1952   :  { %8380 = vmatpush3.bf16.msra.mxu1 %v9380_v16  ;;  %7685 = vmatprep.mubr.msk.f32.mxu1 %vm9266_vm1, %v9267_v9 }
0x1953   :  { %8381 = vmatprep.subr.bf16.mxu1 %v9265_v8 }
0x1956   :  { %8383 = vmatpush3.bf16.msra.mxu1 %v9389_v19 }
0x1957   :  { %8390 = vmatprep.subr.bf16.mxu1 %v9265_v8 }
0x1a24   :  { %v1212_v34 = vpop.f32.mrb[10].mxu1 }
0x1a25   :  { %v1216_v35 = vadd.f32 %v1212_v34, %v1143_v33  ;;  %v7665_v36 = vpop.f32.mrb[11].mxu1 }
0x1a27   :  { %8795 = vtanh.f32 %v1216_v35  ;;  %v7068_v38 = vmul.f32 -1.442695, %v1216_v35 }
0x1a29   :  { %8797 = vpow2.f32 %v7068_v38 }
0x1a31   :  { %v8796_v37 = vpop.eup %8795 }
0x1a32   :  { %1226 = vrot.lane.b32.xlu0 %v8796_v37, %s9270_s23 }
0x1a33   :  { %v8798_v39 = vpop.eup %8797 }
0x1a34   :  { %v1220_v40 = vadd.f32 1.0, %v8798_v39 }
0x1a36   :  { %8799 = vrcp.f32 %v1220_v40 }
0x1a40   :  { %v8800_v41 = vpop.eup %8799 }
0x1a41   :  { %v1224_v44 = vmul.f32 %v8800_v41, %v1131_v26 }
0x1aa4   :  { %v1227_v42 = vpop.permute.xlu0 %1226 }
0x1aa5   :  { %v1229_v43 = vmul.f32 %v8800_v41, %v1227_v42 }
0x1aa7   :  { %1231 = vrot.lane.b32.xlu1 %v1229_v43, %s9271_s24 }
0x1b19   :  { %v1232_v45 = vpop.permute.xlu1 %1231 }
0x1b1a   :  { %v1234_v46 = vadd.f32 %v1232_v45, %v1224_v44 }
0x1b1c   :  { %8801 = vtanh.f32 %v1234_v46 }
0x1b26   :  { %v8802_v47 = vpop.eup %8801 }
0x1b27   :  { %1237 = vrot.lane.b32.xlu0 %v8802_v47, %s9270_s23  ;;  %v1555_v47 = vld [vmem:[#allocation2 + $0xd] sm:$0x1] }
0x1b99   :  { %v1238_v48 = vpop.permute.xlu0 %1237 }
0x1b9a   :  { %v1240_v49 = vmul.f32 %v8800_v41, %v1238_v48 }
0x1b9c   :  { %1242 = vrot.lane.b32.xlu1 %v1240_v49, %s9271_s24 }
0x1c0e   :  { %v1243_v50 = vpop.permute.xlu1 %1242 }
0x1c0f   :  { %1245 = vst.msk [vmem:[#allocation3 + $0x9] sm:$0x1] %vm317_vm5, %v1243_v50  ;;  %7675 = vmatmul.mubr.msk.f32.vlgmr.msra.gmra.mrb[12].mxu0 %vm214_vm6, %v1243_v50 }
0x1c10   :  { %8386 = vmatpush3.bf16.msra.mxu0 %v9380_v16  ;;  %7696 = vmatprep.mubr.msk.f32.mxu0 %vm9266_vm1, %v9267_v9 }
0x1c11   :  { %8387 = vmatprep.subr.bf16.mxu0 %v9265_v8 }
0x1c14   :  { %8389 = vmatpush3.bf16.msra.mxu0 %v9389_v19 }
0x1c15   :  { %8396 = vmatprep.subr.bf16.mxu0 %v9265_v8 }
0x1ce2   :  { %v1315_v52 = vpop.f32.mrb[12].mxu0 }
0x1ce3   :  { %v1319_v53 = vadd.f32 %v1315_v52, %v1246_v51  ;;  %v7676_v54 = vpop.f32.mrb[13].mxu0 }
0x1ce5   :  { %8803 = vtanh.f32 %v1319_v53  ;;  %v7070_v56 = vmul.f32 -1.442695, %v1319_v53 }
0x1ce7   :  { %8805 = vpow2.f32 %v7070_v56 }
0x1cef   :  { %v8804_v55 = vpop.eup %8803 }
0x1cf0   :  { %1329 = vrot.lane.b32.xlu0 %v8804_v55, %s9270_s23 }
0x1cf1   :  { %v8806_v57 = vpop.eup %8805 }
0x1cf2   :  { %v1323_v58 = vadd.f32 1.0, %v8806_v57 }
0x1cf4   :  { %8807 = vrcp.f32 %v1323_v58 }
0x1cfe   :  { %v8808_v59 = vpop.eup %8807 }
0x1cff   :  { %v1327_v62 = vmul.f32 %v8808_v59, %v1234_v46 }
0x1d62   :  { %v1330_v60 = vpop.permute.xlu0 %1329 }
0x1d63   :  { %v1332_v61 = vmul.f32 %v8808_v59, %v1330_v60 }
0x1d65   :  { %1334 = vrot.lane.b32.xlu1 %v1332_v61, %s9271_s24 }
0x1dd7   :  { %v1335_v63 = vpop.permute.xlu1 %1334 }
0x1dd8   :  { %v1337_v0 = vadd.f32 %v1335_v63, %v1327_v62 }
0x1dda   :  { %8809 = vtanh.f32 %v1337_v0 }
0x1de4   :  { %v8810_v1 = vpop.eup %8809 }
0x1de5   :  { %1340 = vrot.lane.b32.xlu0 %v8810_v1, %s9270_s23  ;;  %v1658_v1 = vld [vmem:[#allocation2 + $0xe] sm:$0x1] }
0x1e57   :  { %v1341_v2 = vpop.permute.xlu0 %1340 }
0x1e58   :  { %v1343_v3 = vmul.f32 %v8808_v59, %v1341_v2 }
0x1e5a   :  { %1345 = vrot.lane.b32.xlu1 %v1343_v3, %s9271_s24 }
0x1ecc   :  { %v1346_v4 = vpop.permute.xlu1 %1345 }
0x1ecd   :  { %1348 = vst.msk [vmem:[#allocation3 + $0xa] sm:$0x1] %vm317_vm5, %v1346_v4  ;;  %7686 = vmatmul.mubr.msk.f32.vlgmr.msra.gmra.mrb[12].mxu1 %vm214_vm6, %v1346_v4 }
0x1ece   :  { %8392 = vmatpush3.bf16.msra.mxu1 %v9380_v16  ;;  %7707 = vmatprep.mubr.msk.f32.mxu1 %vm9266_vm1, %v9267_v9 }
0x1ecf   :  { %8393 = vmatprep.subr.bf16.mxu1 %v9265_v8 }
0x1ed2   :  { %8395 = vmatpush3.bf16.msra.mxu1 %v9389_v19 }
0x1ed3   :  { %8402 = vmatprep.subr.bf16.mxu1 %v9265_v8 }
0x1fa0   :  { %v1418_v10 = vpop.f32.mrb[12].mxu1 }
0x1fa1   :  { %v1422_v11 = vadd.f32 %v1418_v10, %v1349_v7  ;;  %v7687_v12 = vpop.f32.mrb[13].mxu1 }
0x1fa3   :  { %8811 = vtanh.f32 %v1422_v11  ;;  %v7072_v29 = vmul.f32 -1.442695, %v1422_v11 }
0x1fa5   :  { %8813 = vpow2.f32 %v7072_v29 }
0x1fad   :  { %v8812_v24 = vpop.eup %8811 }
0x1fae   :  { %1432 = vrot.lane.b32.xlu0 %v8812_v24, %s9270_s23 }
0x1faf   :  { %v8814_v30 = vpop.eup %8813 }
0x1fb0   :  { %v1426_v13 = vadd.f32 1.0, %v8814_v30 }
0x1fb2   :  { %8815 = vrcp.f32 %v1426_v13 }
0x1fbc   :  { %v8816_v14 = vpop.eup %8815 }
0x1fbd   :  { %v1430_v18 = vmul.f32 %v8816_v14, %v1337_v0 }
0x2020   :  { %v1433_v15 = vpop.permute.xlu0 %1432 }
0x2021   :  { %v1435_v17 = vmul.f32 %v8816_v14, %v1433_v15 }
0x2023   :  { %1437 = vrot.lane.b32.xlu1 %v1435_v17, %s9271_s24 }
0x2095   :  { %v1438_v20 = vpop.permute.xlu1 %1437 }
0x2096   :  { %v1440_v21 = vadd.f32 %v1438_v20, %v1430_v18 }
0x2098   :  { %8817 = vtanh.f32 %v1440_v21 }
0x20a2   :  { %v8818_v22 = vpop.eup %8817 }
0x20a3   :  { %1443 = vrot.lane.b32.xlu0 %v8818_v22, %s9270_s23  ;;  %v1761_v22 = vld [vmem:[#allocation2 + $0xf] sm:$0x1] }
0x2115   :  { %v1444_v23 = vpop.permute.xlu0 %1443 }
0x2116   :  { %v1446_v25 = vmul.f32 %v8816_v14, %v1444_v23 }
0x2118   :  { %1448 = vrot.lane.b32.xlu1 %v1446_v25, %s9271_s24 }
0x218a   :  { %v1449_v26 = vpop.permute.xlu1 %1448 }
0x218b   :  { %1451 = vst.msk [vmem:[#allocation3 + $0xb] sm:$0x1] %vm317_vm5, %v1449_v26  ;;  %7697 = vmatmul.mubr.msk.f32.vlgmr.msra.gmra.mrb[14].mxu0 %vm214_vm6, %v1449_v26 }
0x218c   :  { %8398 = vmatpush3.bf16.msra.mxu0 %v9380_v16  ;;  %7718 = vmatprep.mubr.msk.f32.mxu0 %vm9266_vm1, %v9267_v9 }
0x218d   :  { %8399 = vmatprep.subr.bf16.mxu0 %v9265_v8 }
0x2190   :  { %8401 = vmatpush3.bf16.msra.mxu0 %v9389_v19 }
0x2191   :  { %8408 = vmatprep.subr.bf16.mxu0 %v9265_v8 }
0x225e   :  { %v1521_v28 = vpop.f32.mrb[14].mxu0 }
0x225f   :  { %v1525_v31 = vadd.f32 %v1521_v28, %v1452_v27  ;;  %v7698_v32 = vpop.f32.mrb[15].mxu0 }
0x2261   :  { %8819 = vtanh.f32 %v1525_v31  ;;  %v7074_v34 = vmul.f32 -1.442695, %v1525_v31 }
0x2263   :  { %8821 = vpow2.f32 %v7074_v34 }
0x226b   :  { %v8820_v33 = vpop.eup %8819 }
0x226c   :  { %1535 = vrot.lane.b32.xlu0 %v8820_v33, %s9270_s23 }
0x226d   :  { %v8822_v35 = vpop.eup %8821 }
0x226e   :  { %v1529_v36 = vadd.f32 1.0, %v8822_v35 }
0x2270   :  { %8823 = vrcp.f32 %v1529_v36 }
0x227a   :  { %v8824_v37 = vpop.eup %8823 }
0x227b   :  { %v1533_v40 = vmul.f32 %v8824_v37, %v1440_v21 }
0x22de   :  { %v1536_v38 = vpop.permute.xlu0 %1535 }
0x22df   :  { %v1538_v39 = vmul.f32 %v8824_v37, %v1536_v38 }
0x22e1   :  { %1540 = vrot.lane.b32.xlu1 %v1538_v39, %s9271_s24 }
0x2353   :  { %v1541_v41 = vpop.permute.xlu1 %1540 }
0x2354   :  { %v1543_v42 = vadd.f32 %v1541_v41, %v1533_v40  ;;  %v59_v40 = vld [vmem:[%s10281_s2 + $0x10] sm:$0xff] }
0x2355   :  { %v155_v41 = vadd.f32 %v9456_v6, %v59_v40 }
0x2356   :  { %8825 = vtanh.f32 %v1543_v42 }
0x2360   :  { %v8826_v43 = vpop.eup %8825 }
0x2361   :  { %1546 = vrot.lane.b32.xlu0 %v8826_v43, %s9270_s23 }
0x23d3   :  { %v1547_v44 = vpop.permute.xlu0 %1546 }
0x23d4   :  { %v1549_v45 = vmul.f32 %v8824_v37, %v1547_v44 }
0x23d6   :  { %1551 = vrot.lane.b32.xlu1 %v1549_v45, %s9271_s24  ;;  %v9639_v45 = vld [vmem:[%s10282_s3] ss:$0 sm:$0xff] }
0x2448   :  { %v1552_v46 = vpop.permute.xlu1 %1551 }
0x2449   :  { %1554 = vst.msk [vmem:[#allocation3 + $0xc] sm:$0x1] %vm317_vm5, %v1552_v46  ;;  %7708 = vmatmul.mubr.msk.f32.vlgmr.msra.gmra.mrb[14].mxu1 %vm214_vm6, %v1552_v46 }
0x244a   :  { %8404 = vmatpush3.bf16.msra.mxu1 %v9380_v16  ;;  %7729 = vmatprep.mubr.msk.f32.mxu1 %vm9266_vm1, %v9267_v9 }
0x244b   :  { %8405 = vmatprep.subr.bf16.mxu1 %v9265_v8 }
0x244e   :  { %8407 = vmatpush3.bf16.msra.mxu1 %v9389_v19 }
0x244f   :  { %8414 = vmatprep.subr.bf16.mxu1 %v9265_v8 }
0x251c   :  { %v1624_v48 = vpop.f32.mrb[14].mxu1 }
0x251d   :  { %v1628_v49 = vadd.f32 %v1624_v48, %v1555_v47  ;;  %v7709_v50 = vpop.f32.mrb[15].mxu1  ;;  %v9645_v47 = vld [vmem:[%s10284_s5] ss:$0 sm:$0xff] }
0x251f   :  { %8827 = vtanh.f32 %v1628_v49  ;;  %v7076_v52 = vmul.f32 -1.442695, %v1628_v49 }
0x2521   :  { %8829 = vpow2.f32 %v7076_v52 }
0x2529   :  { %v8828_v51 = vpop.eup %8827 }
0x252a   :  { %1638 = vrot.lane.b32.xlu0 %v8828_v51, %s9270_s23 }
0x252b   :  { %v8830_v53 = vpop.eup %8829 }
0x252c   :  { %v1632_v54 = vadd.f32 1.0, %v8830_v53 }
0x252e   :  { %8831 = vrcp.f32 %v1632_v54 }
0x2538   :  { %v8832_v55 = vpop.eup %8831 }
0x2539   :  { %v1636_v58 = vmul.f32 %v8832_v55, %v1543_v42 }
0x259c   :  { %v1639_v56 = vpop.permute.xlu0 %1638 }
0x259d   :  { %v1641_v57 = vmul.f32 %v8832_v55, %v1639_v56 }
0x259f   :  { %1643 = vrot.lane.b32.xlu1 %v1641_v57, %s9271_s24 }
0x2611   :  { %v1644_v59 = vpop.permute.xlu1 %1643 }
0x2612   :  { %v1646_v60 = vadd.f32 %v1644_v59, %v1636_v58 }
0x2614   :  { %8833 = vtanh.f32 %v1646_v60 }
0x261e   :  { %v8834_v61 = vpop.eup %8833 }
0x261f   :  { %1649 = vrot.lane.b32.xlu0 %v8834_v61, %s9270_s23 }
0x2691   :  { %v1650_v62 = vpop.permute.xlu0 %1649 }
0x2692   :  { %v1652_v63 = vmul.f32 %v8832_v55, %v1650_v62 }
0x2694   :  { %1654 = vrot.lane.b32.xlu1 %v1652_v63, %s9271_s24 }
0x2706   :  { %v1655_v0 = vpop.permute.xlu1 %1654 }
0x2707   :  { %1657 = vst.msk [vmem:[#allocation3 + $0xd] sm:$0x1] %vm317_vm5, %v1655_v0  ;;  %7719 = vmatmul.mubr.msk.f32.vlgmr.msra.gmra.mrb[16].mxu0 %vm214_vm6, %v1655_v0 }
0x2708   :  { %8410 = vmatpush3.bf16.msra.mxu0 %v9380_v16  ;;  %7740 = vmatprep.mubr.msk.f32.mxu0 %vm9266_vm1, %v9267_v9 }
0x2709   :  { %8411 = vmatprep.subr.bf16.mxu0 %v9265_v8 }
0x270c   :  { %8413 = vmatpush3.bf16.msra.mxu0 %v9389_v19 }
0x270d   :  { %8420 = vmatprep.subr.bf16.mxu0 %v9265_v8 }
0x27da   :  { %v1727_v2 = vpop.f32.mrb[16].mxu0 }
0x27db   :  { %v1731_v3 = vadd.f32 %v1727_v2, %v1658_v1  ;;  %v7720_v4 = vpop.f32.mrb[17].mxu0 }
0x27dd   :  { %8835 = vtanh.f32 %v1731_v3  ;;  %v7078_v10 = vmul.f32 -1.442695, %v1731_v3 }
0x27df   :  { %8837 = vpow2.f32 %v7078_v10 }
0x27e7   :  { %v8836_v7 = vpop.eup %8835 }
0x27e8   :  { %1741 = vrot.lane.b32.xlu0 %v8836_v7, %s9270_s23 }
0x27e9   :  { %v8838_v11 = vpop.eup %8837 }
0x27ea   :  { %v1735_v12 = vadd.f32 1.0, %v8838_v11 }
0x27ec   :  { %8839 = vrcp.f32 %v1735_v12 }
0x27f6   :  { %v8840_v24 = vpop.eup %8839 }
0x27f7   :  { %v1739_v13 = vmul.f32 %v8840_v24, %v1646_v60 }
0x285a   :  { %v1742_v29 = vpop.permute.xlu0 %1741 }
0x285b   :  { %v1744_v30 = vmul.f32 %v8840_v24, %v1742_v29 }
0x285d   :  { %1746 = vrot.lane.b32.xlu1 %v1744_v30, %s9271_s24 }
0x28cf   :  { %v1747_v14 = vpop.permute.xlu1 %1746 }
0x28d0   :  { %v1749_v15 = vadd.f32 %v1747_v14, %v1739_v13 }
0x28d2   :  { %8841 = vtanh.f32 %v1749_v15 }
0x28dc   :  { %v8842_v17 = vpop.eup %8841 }
0x28dd   :  { %1752 = vrot.lane.b32.xlu0 %v8842_v17, %s9270_s23 }
0x294f   :  { %v1753_v18 = vpop.permute.xlu0 %1752 }
0x2950   :  { %v1755_v20 = vmul.f32 %v8840_v24, %v1753_v18 }
0x2952   :  { %1757 = vrot.lane.b32.xlu1 %v1755_v20, %s9271_s24 }
0x29c4   :  { %v1758_v21 = vpop.permute.xlu1 %1757 }
0x29c5   :  { %1760 = vst.msk [vmem:[#allocation3 + $0xe] sm:$0x1] %vm317_vm5, %v1758_v21  ;;  %7730 = vmatmul.mubr.msk.f32.vlgmr.msra.gmra.mrb[16].mxu1 %vm214_vm6, %v1758_v21 }
0x29c6   :  { %8416 = vmatpush3.bf16.msra.mxu1 %v9380_v16  ;;  %7751 = vmatprep.mubr.msk.f32.mxu1 %vm9266_vm1, %v9267_v9 }
0x29c7   :  { %8417 = vmatprep.subr.bf16.mxu1 %v9265_v8 }
0x29ca   :  { %8419 = vmatpush3.bf16.msra.mxu1 %v9389_v19 }
0x29cb   :  { %8426 = vmatprep.subr.bf16.mxu1 %v9265_v8 }
0x2a98   :  { %v1830_v23 = vpop.f32.mrb[16].mxu1 }
0x2a99   :  { %v1834_v25 = vadd.f32 %v1830_v23, %v1761_v22  ;;  %v7731_v26 = vpop.f32.mrb[17].mxu1 }
0x2a9b   :  { %8843 = vtanh.f32 %v1834_v25  ;;  %v7080_v28 = vmul.f32 -1.442695, %v1834_v25 }
0x2a9d   :  { %8845 = vpow2.f32 %v7080_v28 }
0x2aa5   :  { %v8844_v27 = vpop.eup %8843 }
0x2aa6   :  { %1844 = vrot.lane.b32.xlu0 %v8844_v27, %s9270_s23 }
0x2aa7   :  { %v8846_v31 = vpop.eup %8845 }
0x2aa8   :  { %v1838_v32 = vadd.f32 1.0, %v8846_v31 }
0x2aaa   :  { %8847 = vrcp.f32 %v1838_v32 }
0x2ab4   :  { %v8848_v33 = vpop.eup %8847 }
0x2ab5   :  { %v1842_v36 = vmul.f32 %v8848_v33, %v1749_v15 }
0x2b18   :  { %v1845_v34 = vpop.permute.xlu0 %1844 }
0x2b19   :  { %v1847_v35 = vmul.f32 %v8848_v33, %v1845_v34 }
0x2b1b   :  { %1849 = vrot.lane.b32.xlu1 %v1847_v35, %s9271_s24 }
0x2b8d   :  { %v1850_v37 = vpop.permute.xlu1 %1849 }
0x2b8e   :  { %v1852_v38 = vadd.f32 %v1850_v37, %v1842_v36 }
0x2b90   :  { %8849 = vtanh.f32 %v1852_v38 }
0x2b9a   :  { %v8850_v39 = vpop.eup %8849 }
0x2b9b   :  { %1855 = vrot.lane.b32.xlu0 %v8850_v39, %s9270_s23 }
0x2b9f   :  { %176 = vperm.xlu0 %8721, %v155_v41  }
0x2c0d   :  { %v1856_v42 = vpop.permute.xlu0 %1855 }
0x2c0e   :  { %v1858_v43 = vmul.f32 %v8848_v33, %v1856_v42 }
0x2c10   :  { %1860 = vrot.lane.b32.xlu1 %v1858_v43, %s9271_s24 }
0x2c1e   :  { %v177_v44 = vpop.permute.xlu0 %176 }
0x2c1f   :  { %v192_v46 = vmul.f32 %v9639_v45, %v177_v44 }
0x2c21   :  { %v203_v6 = vadd.f32 %v9645_v47, %v192_v46 }
0x2c23   :  { %207 = vst [vmem:[#allocation2 + $0x10] sm:$0xff] %v203_v6 }
0x2c2a   :  { %v1864_v49 = vld [vmem:[#allocation2 + $0x10] sm:$0x1]  ;;  %v1967_v3 = vld [vmem:[#allocation2 + $0x11] sm:$0x1]  ;;  %v2070_v25 = vld [vmem:[#allocation2 + $0x12] sm:$0x1] }
0x2c2b   :  { %v2173_v46 = vld [vmem:[#allocation2 + $0x13] sm:$0x1] }
0x2c82   :  { %v1861_v48 = vpop.permute.xlu1 %1860 }
0x2c83   :  { %1863 = vst.msk [vmem:[#allocation3 + $0xf] sm:$0x1] %vm317_vm5, %v1861_v48  ;;  %7741 = vmatmul.mubr.msk.f32.vlgmr.msra.gmra.mrb[18].mxu0 %vm214_vm6, %v1861_v48 }
0x2c84   :  { %8422 = vmatpush3.bf16.msra.mxu0 %v9380_v16  ;;  %7762 = vmatprep.mubr.msk.f32.mxu0 %vm9266_vm1, %v9267_v9 }
0x2c85   :  { %8423 = vmatprep.subr.bf16.mxu0 %v9265_v8 }
0x2c88   :  { %8425 = vmatpush3.bf16.msra.mxu0 %v9389_v19 }
0x2c89   :  { %8432 = vmatprep.subr.bf16.mxu0 %v9265_v8 }
0x2d56   :  { %v1933_v50 = vpop.f32.mrb[18].mxu0 }
0x2d57   :  { %v1937_v51 = vadd.f32 %v1933_v50, %v1864_v49  ;;  %v7742_v52 = vpop.f32.mrb[19].mxu0 }
0x2d59   :  { %8851 = vtanh.f32 %v1937_v51  ;;  %v7082_v54 = vmul.f32 -1.442695, %v1937_v51 }
0x2d5b   :  { %8853 = vpow2.f32 %v7082_v54 }
0x2d63   :  { %v8852_v53 = vpop.eup %8851 }
0x2d64   :  { %1947 = vrot.lane.b32.xlu1 %v8852_v53, %s9270_s23 }
0x2d65   :  { %v8854_v55 = vpop.eup %8853 }
0x2d66   :  { %v1941_v56 = vadd.f32 1.0, %v8854_v55 }
0x2d68   :  { %8855 = vrcp.f32 %v1941_v56 }
0x2d72   :  { %v8856_v57 = vpop.eup %8855 }
0x2d73   :  { %v1945_v60 = vmul.f32 %v8856_v57, %v1852_v38 }
0x2dd6   :  { %v1948_v58 = vpop.permute.xlu1 %1947 }
0x2dd7   :  { %v1950_v59 = vmul.f32 %v8856_v57, %v1948_v58 }
0x2dd9   :  { %1952 = vrot.lane.b32.xlu0 %v1950_v59, %s9271_s24 }
0x2e4b   :  { %v1953_v61 = vpop.permute.xlu0 %1952 }
0x2e4c   :  { %v1955_v62 = vadd.f32 %v1953_v61, %v1945_v60 }
0x2e4e   :  { %8857 = vtanh.f32 %v1955_v62 }
0x2e58   :  { %v8858_v63 = vpop.eup %8857 }
0x2e59   :  { %1958 = vrot.lane.b32.xlu1 %v8858_v63, %s9270_s23 }
0x2ecb   :  { %v1959_v0 = vpop.permute.xlu1 %1958 }
0x2ecc   :  { %v1961_v1 = vmul.f32 %v8856_v57, %v1959_v0  ;;  %v2276_v0 = vld [vmem:[#allocation2 + $0x14] sm:$0x1] }
0x2ece   :  { %1963 = vrot.lane.b32.xlu0 %v1961_v1, %s9271_s24 }
0x2f40   :  { %v1964_v2 = vpop.permute.xlu0 %1963 }
0x2f41   :  { %1966 = vst.msk [vmem:[#allocation3 + $0x10] sm:$0x1] %vm317_vm5, %v1964_v2  ;;  %7752 = vmatmul.mubr.msk.f32.vlgmr.msra.gmra.mrb[18].mxu1 %vm214_vm6, %v1964_v2 }
0x2f42   :  { %8428 = vmatpush3.bf16.msra.mxu1 %v9380_v16  ;;  %7773 = vmatprep.mubr.msk.f32.mxu1 %vm9266_vm1, %v9267_v9 }
0x2f43   :  { %8429 = vmatprep.subr.bf16.mxu1 %v9265_v8 }
0x2f46   :  { %8431 = vmatpush3.bf16.msra.mxu1 %v9389_v19 }
0x2f47   :  { %8438 = vmatprep.subr.bf16.mxu1 %v9265_v8 }
0x3014   :  { %v2036_v4 = vpop.f32.mrb[18].mxu1 }
0x3015   :  { %v2040_v7 = vadd.f32 %v2036_v4, %v1967_v3  ;;  %v7753_v10 = vpop.f32.mrb[19].mxu1 }
0x3017   :  { %8859 = vtanh.f32 %v2040_v7  ;;  %v7084_v12 = vmul.f32 -1.442695, %v2040_v7 }
0x3019   :  { %8861 = vpow2.f32 %v7084_v12 }
0x3021   :  { %v8860_v11 = vpop.eup %8859 }
0x3022   :  { %2050 = vrot.lane.b32.xlu1 %v8860_v11, %s9270_s23 }
0x3023   :  { %v8862_v24 = vpop.eup %8861 }
0x3024   :  { %v2044_v29 = vadd.f32 1.0, %v8862_v24 }
0x3026   :  { %8863 = vrcp.f32 %v2044_v29 }
0x3030   :  { %v8864_v30 = vpop.eup %8863 }
0x3031   :  { %v2048_v15 = vmul.f32 %v8864_v30, %v1955_v62 }
0x3094   :  { %v2051_v13 = vpop.permute.xlu1 %2050 }
0x3095   :  { %v2053_v14 = vmul.f32 %v8864_v30, %v2051_v13 }
0x3097   :  { %2055 = vrot.lane.b32.xlu0 %v2053_v14, %s9271_s24 }
0x3109   :  { %v2056_v17 = vpop.permute.xlu0 %2055 }
0x310a   :  { %v2058_v18 = vadd.f32 %v2056_v17, %v2048_v15 }
0x310c   :  { %8865 = vtanh.f32 %v2058_v18 }
0x3116   :  { %v8866_v20 = vpop.eup %8865 }
0x3117   :  { %2061 = vrot.lane.b32.xlu1 %v8866_v20, %s9270_s23 }
0x3189   :  { %v2062_v21 = vpop.permute.xlu1 %2061 }
0x318a   :  { %v2064_v22 = vmul.f32 %v8864_v30, %v2062_v21  ;;  %v2379_v21 = vld [vmem:[#allocation2 + $0x15] sm:$0x1] }
0x318c   :  { %2066 = vrot.lane.b32.xlu0 %v2064_v22, %s9271_s24 }
0x31fe   :  { %v2067_v23 = vpop.permute.xlu0 %2066 }
0x31ff   :  { %2069 = vst.msk [vmem:[#allocation3 + $0x11] sm:$0x1] %vm317_vm5, %v2067_v23  ;;  %7763 = vmatmul.mubr.msk.f32.vlgmr.msra.gmra.mrb[20].mxu0 %vm214_vm6, %v2067_v23 }
0x3200   :  { %8434 = vmatpush3.bf16.msra.mxu0 %v9380_v16  ;;  %7784 = vmatprep.mubr.msk.f32.mxu0 %vm9266_vm1, %v9267_v9 }
0x3201   :  { %8435 = vmatprep.subr.bf16.mxu0 %v9265_v8 }
0x3204   :  { %8437 = vmatpush3.bf16.msra.mxu0 %v9389_v19 }
0x3205   :  { %8444 = vmatprep.subr.bf16.mxu0 %v9265_v8 }
0x32d2   :  { %v2139_v26 = vpop.f32.mrb[20].mxu0 }
0x32d3   :  { %v2143_v27 = vadd.f32 %v2139_v26, %v2070_v25  ;;  %v7764_v28 = vpop.f32.mrb[21].mxu0 }
0x32d5   :  { %8867 = vtanh.f32 %v2143_v27  ;;  %v7086_v32 = vmul.f32 -1.442695, %v2143_v27 }
0x32d7   :  { %8869 = vpow2.f32 %v7086_v32 }
0x32df   :  { %v8868_v31 = vpop.eup %8867 }
0x32e0   :  { %2153 = vrot.lane.b32.xlu1 %v8868_v31, %s9270_s23 }
0x32e1   :  { %v8870_v33 = vpop.eup %8869 }
0x32e2   :  { %v2147_v34 = vadd.f32 1.0, %v8870_v33 }
0x32e4   :  { %8871 = vrcp.f32 %v2147_v34 }
0x32ee   :  { %v8872_v35 = vpop.eup %8871 }
0x32ef   :  { %v2151_v38 = vmul.f32 %v8872_v35, %v2058_v18 }
0x3352   :  { %v2154_v36 = vpop.permute.xlu1 %2153 }
0x3353   :  { %v2156_v37 = vmul.f32 %v8872_v35, %v2154_v36 }
0x3355   :  { %2158 = vrot.lane.b32.xlu0 %v2156_v37, %s9271_s24 }
0x33c7   :  { %v2159_v39 = vpop.permute.xlu0 %2158 }
0x33c8   :  { %v2161_v40 = vadd.f32 %v2159_v39, %v2151_v38 }
0x33ca   :  { %8873 = vtanh.f32 %v2161_v40 }
0x33d4   :  { %v8874_v41 = vpop.eup %8873 }
0x33d5   :  { %2164 = vrot.lane.b32.xlu1 %v8874_v41, %s9270_s23 }
0x3447   :  { %v2165_v42 = vpop.permute.xlu1 %2164 }
0x3448   :  { %v2167_v43 = vmul.f32 %v8872_v35, %v2165_v42  ;;  %v2482_v42 = vld [vmem:[#allocation2 + $0x16] sm:$0x1] }
0x344a   :  { %2169 = vrot.lane.b32.xlu0 %v2167_v43, %s9271_s24 }
0x34bc   :  { %v2170_v44 = vpop.permute.xlu0 %2169 }
0x34bd   :  { %2172 = vst.msk [vmem:[#allocation3 + $0x12] sm:$0x1] %vm317_vm5, %v2170_v44  ;;  %7774 = vmatmul.mubr.msk.f32.vlgmr.msra.gmra.mrb[20].mxu1 %vm214_vm6, %v2170_v44 }
0x34be   :  { %8440 = vmatpush3.bf16.msra.mxu1 %v9380_v16  ;;  %7795 = vmatprep.mubr.msk.f32.mxu1 %vm9266_vm1, %v9267_v9 }
0x34bf   :  { %8441 = vmatprep.subr.bf16.mxu1 %v9265_v8 }
0x34c2   :  { %8443 = vmatpush3.bf16.msra.mxu1 %v9389_v19 }
0x34c3   :  { %8450 = vmatprep.subr.bf16.mxu1 %v9265_v8 }
0x3590   :  { %v2242_v6 = vpop.f32.mrb[20].mxu1 }
0x3591   :  { %v2246_v48 = vadd.f32 %v2242_v6, %v2173_v46  ;;  %v7775_v49 = vpop.f32.mrb[21].mxu1 }
0x3593   :  { %8875 = vtanh.f32 %v2246_v48  ;;  %v7088_v51 = vmul.f32 -1.442695, %v2246_v48 }
0x3595   :  { %8877 = vpow2.f32 %v7088_v51 }
0x359d   :  { %v8876_v50 = vpop.eup %8875 }
0x359e   :  { %2256 = vrot.lane.b32.xlu1 %v8876_v50, %s9270_s23 }
0x359f   :  { %v8878_v52 = vpop.eup %8877 }
0x35a0   :  { %v2250_v53 = vadd.f32 1.0, %v8878_v52 }
0x35a2   :  { %8879 = vrcp.f32 %v2250_v53 }
0x35ac   :  { %v8880_v54 = vpop.eup %8879 }
0x35ad   :  { %v2254_v57 = vmul.f32 %v8880_v54, %v2161_v40 }
0x3610   :  { %v2257_v55 = vpop.permute.xlu1 %2256 }
0x3611   :  { %v2259_v56 = vmul.f32 %v8880_v54, %v2257_v55 }
0x3613   :  { %2261 = vrot.lane.b32.xlu0 %v2259_v56, %s9271_s24 }
0x3685   :  { %v2262_v58 = vpop.permute.xlu0 %2261 }
0x3686   :  { %v2264_v59 = vadd.f32 %v2262_v58, %v2254_v57 }
0x3688   :  { %8881 = vtanh.f32 %v2264_v59 }
0x3692   :  { %v8882_v60 = vpop.eup %8881 }
0x3693   :  { %2267 = vrot.lane.b32.xlu1 %v8882_v60, %s9270_s23 }
0x3705   :  { %v2268_v61 = vpop.permute.xlu1 %2267 }
0x3706   :  { %v2270_v62 = vmul.f32 %v8880_v54, %v2268_v61  ;;  %v2585_v61 = vld [vmem:[#allocation2 + $0x17] sm:$0x1] }
0x3708   :  { %2272 = vrot.lane.b32.xlu0 %v2270_v62, %s9271_s24 }
0x377a   :  { %v2273_v63 = vpop.permute.xlu0 %2272 }
0x377b   :  { %2275 = vst.msk [vmem:[#allocation3 + $0x13] sm:$0x1] %vm317_vm5, %v2273_v63  ;;  %7785 = vmatmul.mubr.msk.f32.vlgmr.msra.gmra.mrb[22].mxu0 %vm214_vm6, %v2273_v63 }
0x377c   :  { %8446 = vmatpush3.bf16.msra.mxu0 %v9380_v16  ;;  %7806 = vmatprep.mubr.msk.f32.mxu0 %vm9266_vm1, %v9267_v9 }
0x377d   :  { %8447 = vmatprep.subr.bf16.mxu0 %v9265_v8 }
0x3780   :  { %8449 = vmatpush3.bf16.msra.mxu0 %v9389_v19 }
0x3781   :  { %8456 = vmatprep.subr.bf16.mxu0 %v9265_v8 }
0x384e   :  { %v2345_v1 = vpop.f32.mrb[22].mxu0 }
0x384f   :  { %v2349_v2 = vadd.f32 %v2345_v1, %v2276_v0  ;;  %v7786_v3 = vpop.f32.mrb[23].mxu0 }
0x3851   :  { %8883 = vtanh.f32 %v2349_v2  ;;  %v7090_v7 = vmul.f32 -1.442695, %v2349_v2 }
0x3853   :  { %8885 = vpow2.f32 %v7090_v7 }
0x385b   :  { %v8884_v4 = vpop.eup %8883 }
0x385c   :  { %2359 = vrot.lane.b32.xlu1 %v8884_v4, %s9270_s23 }
0x385d   :  { %v8886_v10 = vpop.eup %8885 }
0x385e   :  { %v2353_v11 = vadd.f32 1.0, %v8886_v10 }
0x3860   :  { %8887 = vrcp.f32 %v2353_v11 }
0x386a   :  { %v8888_v12 = vpop.eup %8887 }
0x386b   :  { %v2357_v30 = vmul.f32 %v8888_v12, %v2264_v59 }
0x38ce   :  { %v2360_v24 = vpop.permute.xlu1 %2359 }
0x38cf   :  { %v2362_v29 = vmul.f32 %v8888_v12, %v2360_v24 }
0x38d1   :  { %2364 = vrot.lane.b32.xlu0 %v2362_v29, %s9271_s24 }
0x3943   :  { %v2365_v13 = vpop.permute.xlu0 %2364 }
0x3944   :  { %v2367_v14 = vadd.f32 %v2365_v13, %v2357_v30  ;;  %v60_v13 = vld [vmem:[%s10281_s2 + $0x18] sm:$0xff] }
0x3946   :  { %8889 = vtanh.f32 %v2367_v14 }
0x3950   :  { %v8890_v15 = vpop.eup %8889 }
0x3951   :  { %2370 = vrot.lane.b32.xlu1 %v8890_v15, %s9270_s23 }
0x39c3   :  { %v2371_v17 = vpop.permute.xlu1 %2370 }
0x39c4   :  { %v2373_v18 = vmul.f32 %v8888_v12, %v2371_v17 }
0x39c6   :  { %2375 = vrot.lane.b32.xlu0 %v2373_v18, %s9271_s24 }
0x3a38   :  { %v2376_v20 = vpop.permute.xlu0 %2375 }
0x3a39   :  { %2378 = vst.msk [vmem:[#allocation3 + $0x14] sm:$0x1] %vm317_vm5, %v2376_v20  ;;  %7796 = vmatmul.mubr.msk.f32.vlgmr.msra.gmra.mrb[22].mxu1 %vm214_vm6, %v2376_v20 }
0x3a3a   :  { %8452 = vmatpush3.bf16.msra.mxu1 %v9380_v16  ;;  %7817 = vmatprep.mubr.msk.f32.mxu1 %vm9266_vm1, %v9267_v9 }
0x3a3b   :  { %8453 = vmatprep.subr.bf16.mxu1 %v9265_v8 }
0x3a3e   :  { %8455 = vmatpush3.bf16.msra.mxu1 %v9389_v19 }
0x3a3f   :  { %8462 = vmatprep.subr.bf16.mxu1 %v9265_v8 }
0x3b0c   :  { %v2448_v22 = vpop.f32.mrb[22].mxu1 }
0x3b0d   :  { %v2452_v23 = vadd.f32 %v2448_v22, %v2379_v21  ;;  %v7797_v25 = vpop.f32.mrb[23].mxu1 }
0x3b0f   :  { %8891 = vtanh.f32 %v2452_v23  ;;  %v7092_v27 = vmul.f32 -1.442695, %v2452_v23 }
0x3b11   :  { %8893 = vpow2.f32 %v7092_v27 }
0x3b19   :  { %v8892_v26 = vpop.eup %8891 }
0x3b1a   :  { %2462 = vrot.lane.b32.xlu1 %v8892_v26, %s9270_s23 }
0x3b1b   :  { %v8894_v28 = vpop.eup %8893 }
0x3b1c   :  { %v2456_v31 = vadd.f32 1.0, %v8894_v28 }
0x3b1e   :  { %8895 = vrcp.f32 %v2456_v31 }
0x3b28   :  { %v8896_v32 = vpop.eup %8895 }
0x3b29   :  { %v2460_v35 = vmul.f32 %v8896_v32, %v2367_v14  ;;  %v160_v14 = vadd.f32 %v9454_v5, %v60_v13 }
0x3b8c   :  { %v2463_v33 = vpop.permute.xlu1 %2462 }
0x3b8d   :  { %v2465_v34 = vmul.f32 %v8896_v32, %v2463_v33 }
0x3b8f   :  { %2467 = vrot.lane.b32.xlu0 %v2465_v34, %s9271_s24 }
0x3c01   :  { %v2468_v36 = vpop.permute.xlu0 %2467 }
0x3c02   :  { %v2470_v37 = vadd.f32 %v2468_v36, %v2460_v35 }
0x3c04   :  { %8897 = vtanh.f32 %v2470_v37 }
0x3c0e   :  { %v8898_v38 = vpop.eup %8897 }
0x3c0f   :  { %2473 = vrot.lane.b32.xlu1 %v8898_v38, %s9270_s23 }
0x3c81   :  { %v2474_v39 = vpop.permute.xlu1 %2473 }
0x3c82   :  { %v2476_v40 = vmul.f32 %v8896_v32, %v2474_v39 }
0x3c84   :  { %2478 = vrot.lane.b32.xlu0 %v2476_v40, %s9271_s24 }
0x3cf6   :  { %v2479_v41 = vpop.permute.xlu0 %2478 }
0x3cf7   :  { %2481 = vst.msk [vmem:[#allocation3 + $0x15] sm:$0x1] %vm317_vm5, %v2479_v41  ;;  %7807 = vmatmul.mubr.msk.f32.vlgmr.msra.gmra.mrb[24].mxu0 %vm214_vm6, %v2479_v41 }
0x3cf8   :  { %8458 = vmatpush3.bf16.msra.mxu0 %v9380_v16  ;;  %7828 = vmatprep.mubr.msk.f32.mxu0 %vm9266_vm1, %v9267_v9 }
0x3cf9   :  { %8459 = vmatprep.subr.bf16.mxu0 %v9265_v8 }
0x3cfc   :  { %8461 = vmatpush3.bf16.msra.mxu0 %v9389_v19 }
0x3cfd   :  { %8468 = vmatprep.subr.bf16.mxu0 %v9265_v8 }
0x3dca   :  { %v2551_v43 = vpop.f32.mrb[24].mxu0 }
0x3dcb   :  { %v2555_v44 = vadd.f32 %v2551_v43, %v2482_v42  ;;  %v7808_v46 = vpop.f32.mrb[25].mxu0 }
0x3dcd   :  { %8899 = vtanh.f32 %v2555_v44  ;;  %v7094_v48 = vmul.f32 -1.442695, %v2555_v44 }
0x3dcf   :  { %8901 = vpow2.f32 %v7094_v48 }
0x3dd7   :  { %v8900_v6 = vpop.eup %8899 }
0x3dd8   :  { %2565 = vrot.lane.b32.xlu1 %v8900_v6, %s9270_s23 }
0x3dd9   :  { %v8902_v49 = vpop.eup %8901 }
0x3dda   :  { %v2559_v50 = vadd.f32 1.0, %v8902_v49 }
0x3ddc   :  { %8903 = vrcp.f32 %v2559_v50 }
0x3de6   :  { %v8904_v51 = vpop.eup %8903 }
0x3de7   :  { %v2563_v54 = vmul.f32 %v8904_v51, %v2470_v37 }
0x3e4a   :  { %v2566_v52 = vpop.permute.xlu1 %2565 }
0x3e4b   :  { %v2568_v53 = vmul.f32 %v8904_v51, %v2566_v52 }
0x3e4d   :  { %2570 = vrot.lane.b32.xlu0 %v2568_v53, %s9271_s24 }
0x3ebf   :  { %v2571_v55 = vpop.permute.xlu0 %2570 }
0x3ec0   :  { %v2573_v56 = vadd.f32 %v2571_v55, %v2563_v54 }
0x3ec2   :  { %8905 = vtanh.f32 %v2573_v56 }
0x3ecc   :  { %v8906_v57 = vpop.eup %8905 }
0x3ecd   :  { %2576 = vrot.lane.b32.xlu1 %v8906_v57, %s9270_s23 }
0x3f3f   :  { %v2577_v58 = vpop.permute.xlu1 %2576 }
0x3f40   :  { %v2579_v59 = vmul.f32 %v8904_v51, %v2577_v58 }
0x3f42   :  { %2581 = vrot.lane.b32.xlu0 %v2579_v59, %s9271_s24 }
0x3fb4   :  { %v2582_v60 = vpop.permute.xlu0 %2581 }
0x3fb5   :  { %2584 = vst.msk [vmem:[#allocation3 + $0x16] sm:$0x1] %vm317_vm5, %v2582_v60  ;;  %7818 = vmatmul.mubr.msk.f32.vlgmr.msra.gmra.mrb[24].mxu1 %vm214_vm6, %v2582_v60 }
0x3fb6   :  { %8464 = vmatpush3.bf16.msra.mxu1 %v9380_v16  ;;  %7839 = vmatprep.mubr.msk.f32.mxu1 %vm9266_vm1, %v9267_v9 }
0x3fb7   :  { %8465 = vmatprep.subr.bf16.mxu1 %v9265_v8 }
0x3fba   :  { %8467 = vmatpush3.bf16.msra.mxu1 %v9389_v19 }
0x3fbb   :  { %8474 = vmatprep.subr.bf16.mxu1 %v9265_v8 }
0x4088   :  { %v2654_v62 = vpop.f32.mrb[24].mxu1 }
0x4089   :  { %v2658_v63 = vadd.f32 %v2654_v62, %v2585_v61  ;;  %v7819_v0 = vpop.f32.mrb[25].mxu1 }
0x408b   :  { %8907 = vtanh.f32 %v2658_v63  ;;  %v7096_v2 = vmul.f32 -1.442695, %v2658_v63 }
0x408d   :  { %8909 = vpow2.f32 %v7096_v2 }
0x4095   :  { %v8908_v1 = vpop.eup %8907 }
0x4096   :  { %2668 = vrot.lane.b32.xlu1 %v8908_v1, %s9270_s23 }
0x4097   :  { %v8910_v3 = vpop.eup %8909 }
0x4098   :  { %v2662_v4 = vadd.f32 1.0, %v8910_v3 }
0x409a   :  { %8911 = vrcp.f32 %v2662_v4 }
0x40a4   :  { %v8912_v7 = vpop.eup %8911 }
0x40a5   :  { %v2666_v12 = vmul.f32 %v8912_v7, %v2573_v56 }
0x4108   :  { %v2669_v10 = vpop.permute.xlu1 %2668 }
0x4109   :  { %v2671_v11 = vmul.f32 %v8912_v7, %v2669_v10 }
0x410b   :  { %2673 = vrot.lane.b32.xlu0 %v2671_v11, %s9271_s24 }
0x417d   :  { %v2674_v24 = vpop.permute.xlu0 %2673 }
0x417e   :  { %v2676_v29 = vadd.f32 %v2674_v24, %v2666_v12 }
0x4180   :  { %8913 = vtanh.f32 %v2676_v29 }
0x418a   :  { %v8914_v30 = vpop.eup %8913 }
0x418b   :  { %2679 = vrot.lane.b32.xlu1 %v8914_v30, %s9270_s23 }
0x418f   :  { %181 = vperm.xlu1 %8722, %v160_v14  }
0x41fd   :  { %v2680_v15 = vpop.permute.xlu1 %2679 }
0x41fe   :  { %v2682_v17 = vmul.f32 %v8912_v7, %v2680_v15 }
0x4200   :  { %2684 = vrot.lane.b32.xlu0 %v2682_v17, %s9271_s24 }
0x420e   :  { %v182_v18 = vpop.permute.xlu1 %181 }
0x420f   :  { %v193_v20 = vmul.f32 %v9639_v45, %v182_v18 }
0x4211   :  { %v204_v21 = vadd.f32 %v9645_v47, %v193_v20 }
0x4213   :  { %208 = vst [vmem:[#allocation2 + $0x18] sm:$0xff] %v204_v21 }
0x421a   :  { %v2688_v5 = vld [vmem:[#allocation2 + $0x18] sm:$0x1]  ;;  %v2791_v41 = vld [vmem:[#allocation2 + $0x19] sm:$0x1]  ;;  %v2894_v60 = vld [vmem:[#allocation2 + $0x1a] sm:$0x1] }
0x421b   :  { %v2997_v15 = vld [vmem:[#allocation2 + $0x1b] sm:$0x1] }
0x4272   :  { %v2685_v22 = vpop.permute.xlu0 %2684 }
0x4273   :  { %2687 = vst.msk [vmem:[#allocation3 + $0x17] sm:$0x1] %vm317_vm5, %v2685_v22  ;;  %7829 = vmatmul.mubr.msk.f32.vlgmr.msra.gmra.mrb[26].mxu0 %vm214_vm6, %v2685_v22 }
0x4274   :  { %8470 = vmatpush3.bf16.msra.mxu0 %v9380_v16  ;;  %7850 = vmatprep.mubr.msk.f32.mxu0 %vm9266_vm1, %v9267_v9 }
0x4275   :  { %8471 = vmatprep.subr.bf16.mxu0 %v9265_v8 }
0x4278   :  { %8473 = vmatpush3.bf16.msra.mxu0 %v9389_v19 }
0x4279   :  { %8480 = vmatprep.subr.bf16.mxu0 %v9265_v8 }
0x4346   :  { %v2757_v45 = vpop.f32.mrb[26].mxu0 }
0x4347   :  { %v2761_v47 = vadd.f32 %v2757_v45, %v2688_v5  ;;  %v7830_v23 = vpop.f32.mrb[27].mxu0 }
0x4349   :  { %8915 = vtanh.f32 %v2761_v47  ;;  %v7098_v26 = vmul.f32 -1.442695, %v2761_v47 }
0x434b   :  { %8917 = vpow2.f32 %v7098_v26 }
0x4353   :  { %v8916_v25 = vpop.eup %8915 }
0x4354   :  { %2771 = vrot.lane.b32.xlu0 %v8916_v25, %s9270_s23 }
0x4355   :  { %v8918_v27 = vpop.eup %8917 }
0x4356   :  { %v2765_v28 = vadd.f32 1.0, %v8918_v27 }
0x4358   :  { %8919 = vrcp.f32 %v2765_v28 }
0x4362   :  { %v8920_v31 = vpop.eup %8919 }
0x4363   :  { %v2769_v34 = vmul.f32 %v8920_v31, %v2676_v29 }
0x43c6   :  { %v2772_v32 = vpop.permute.xlu0 %2771 }
0x43c7   :  { %v2774_v33 = vmul.f32 %v8920_v31, %v2772_v32 }
0x43c9   :  { %2776 = vrot.lane.b32.xlu1 %v2774_v33, %s9271_s24 }
0x443b   :  { %v2777_v35 = vpop.permute.xlu1 %2776 }
0x443c   :  { %v2779_v36 = vadd.f32 %v2777_v35, %v2769_v34  ;;  %v3100_v35 = vld [vmem:[#allocation2 + $0x1c] sm:$0x1] }
0x443e   :  { %8921 = vtanh.f32 %v2779_v36 }
0x4448   :  { %v8922_v37 = vpop.eup %8921 }
0x4449   :  { %2782 = vrot.lane.b32.xlu0 %v8922_v37, %s9270_s23 }
0x44bb   :  { %v2783_v38 = vpop.permute.xlu0 %2782 }
0x44bc   :  { %v2785_v39 = vmul.f32 %v8920_v31, %v2783_v38 }
0x44be   :  { %2787 = vrot.lane.b32.xlu1 %v2785_v39, %s9271_s24 }
0x4530   :  { %v2788_v40 = vpop.permute.xlu1 %2787 }
0x4531   :  { %2790 = vst.msk [vmem:[#allocation3 + $0x18] sm:$0x1] %vm317_vm5, %v2788_v40  ;;  %7840 = vmatmul.mubr.msk.f32.vlgmr.msra.gmra.mrb[26].mxu1 %vm214_vm6, %v2788_v40 }
0x4532   :  { %8476 = vmatpush3.bf16.msra.mxu1 %v9380_v16  ;;  %7861 = vmatprep.mubr.msk.f32.mxu1 %vm9266_vm1, %v9267_v9 }
0x4533   :  { %8477 = vmatprep.subr.bf16.mxu1 %v9265_v8 }
0x4536   :  { %8479 = vmatpush3.bf16.msra.mxu1 %v9389_v19 }
0x4537   :  { %8486 = vmatprep.subr.bf16.mxu1 %v9265_v8 }
0x4604   :  { %v2860_v42 = vpop.f32.mrb[26].mxu1 }
0x4605   :  { %v2864_v43 = vadd.f32 %v2860_v42, %v2791_v41  ;;  %v7841_v44 = vpop.f32.mrb[27].mxu1 }
0x4607   :  { %8923 = vtanh.f32 %v2864_v43  ;;  %v7100_v6 = vmul.f32 -1.442695, %v2864_v43 }
0x4609   :  { %8925 = vpow2.f32 %v7100_v6 }
0x4611   :  { %v8924_v46 = vpop.eup %8923 }
0x4612   :  { %2874 = vrot.lane.b32.xlu0 %v8924_v46, %s9270_s23 }
0x4613   :  { %v8926_v48 = vpop.eup %8925 }
0x4614   :  { %v2868_v49 = vadd.f32 1.0, %v8926_v48 }
0x4616   :  { %8927 = vrcp.f32 %v2868_v49 }
0x4620   :  { %v8928_v50 = vpop.eup %8927 }
0x4621   :  { %v2872_v53 = vmul.f32 %v8928_v50, %v2779_v36 }
0x4684   :  { %v2875_v51 = vpop.permute.xlu0 %2874 }
0x4685   :  { %v2877_v52 = vmul.f32 %v8928_v50, %v2875_v51 }
0x4687   :  { %2879 = vrot.lane.b32.xlu1 %v2877_v52, %s9271_s24 }
0x46f9   :  { %v2880_v54 = vpop.permute.xlu1 %2879 }
0x46fa   :  { %v2882_v55 = vadd.f32 %v2880_v54, %v2872_v53  ;;  %v3203_v54 = vld [vmem:[#allocation2 + $0x1d] sm:$0x1] }
0x46fc   :  { %8929 = vtanh.f32 %v2882_v55 }
0x4706   :  { %v8930_v56 = vpop.eup %8929 }
0x4707   :  { %2885 = vrot.lane.b32.xlu0 %v8930_v56, %s9270_s23 }
0x4779   :  { %v2886_v57 = vpop.permute.xlu0 %2885 }
0x477a   :  { %v2888_v58 = vmul.f32 %v8928_v50, %v2886_v57 }
0x477c   :  { %2890 = vrot.lane.b32.xlu1 %v2888_v58, %s9271_s24 }
0x47ee   :  { %v2891_v59 = vpop.permute.xlu1 %2890 }
0x47ef   :  { %2893 = vst.msk [vmem:[#allocation3 + $0x19] sm:$0x1] %vm317_vm5, %v2891_v59  ;;  %7851 = vmatmul.mubr.msk.f32.vlgmr.msra.gmra.mrb[28].mxu0 %vm214_vm6, %v2891_v59 }
0x47f0   :  { %8482 = vmatpush3.bf16.msra.mxu0 %v9380_v16  ;;  %7872 = vmatprep.mubr.msk.f32.mxu0 %vm9266_vm1, %v9267_v9 }
0x47f1   :  { %8483 = vmatprep.subr.bf16.mxu0 %v9265_v8 }
0x47f4   :  { %8485 = vmatpush3.bf16.msra.mxu0 %v9389_v19 }
0x47f5   :  { %8492 = vmatprep.subr.bf16.mxu0 %v9265_v8 }
0x48c2   :  { %v2963_v61 = vpop.f32.mrb[28].mxu0 }
0x48c3   :  { %v2967_v62 = vadd.f32 %v2963_v61, %v2894_v60  ;;  %v7852_v63 = vpop.f32.mrb[29].mxu0 }
0x48c5   :  { %8931 = vtanh.f32 %v2967_v62  ;;  %v7102_v1 = vmul.f32 -1.442695, %v2967_v62 }
0x48c7   :  { %8933 = vpow2.f32 %v7102_v1 }
0x48cf   :  { %v8932_v0 = vpop.eup %8931 }
0x48d0   :  { %2977 = vrot.lane.b32.xlu0 %v8932_v0, %s9270_s23 }
0x48d1   :  { %v8934_v2 = vpop.eup %8933 }
0x48d2   :  { %v2971_v3 = vadd.f32 1.0, %v8934_v2  ;;  %v3516_v2 = vld [vmem:[%s10285_s6] sm:$0xff] }
0x48d4   :  { %8935 = vrcp.f32 %v2971_v3  ;;  %v3517_v3 = vld [vmem:[%s10285_s6 + $0x8] sm:$0xff] }
0x48de   :  { %v8936_v4 = vpop.eup %8935 }
0x48df   :  { %v2975_v11 = vmul.f32 %v8936_v4, %v2882_v55 }
0x4942   :  { %v2978_v7 = vpop.permute.xlu0 %2977 }
0x4943   :  { %v2980_v10 = vmul.f32 %v8936_v4, %v2978_v7 }
0x4945   :  { %2982 = vrot.lane.b32.xlu1 %v2980_v10, %s9271_s24 }
0x49b7   :  { %v2983_v12 = vpop.permute.xlu1 %2982 }
0x49b8   :  { %v2985_v24 = vadd.f32 %v2983_v12, %v2975_v11  ;;  %v3518_v12 = vld [vmem:[%s10285_s6 + $0x10] sm:$0xff] }
0x49ba   :  { %8937 = vtanh.f32 %v2985_v24 }
0x49c4   :  { %v8938_v29 = vpop.eup %8937 }
0x49c5   :  { %2988 = vrot.lane.b32.xlu0 %v8938_v29, %s9270_s23 }
0x4a37   :  { %v2989_v30 = vpop.permute.xlu0 %2988 }
0x4a38   :  { %v2991_v13 = vmul.f32 %v8936_v4, %v2989_v30  ;;  %v8504_v4 = vpack.c.bf16 %v3517_v3, %v3516_v2 }
0x4a3a   :  { %2993 = vrot.lane.b32.xlu1 %v2991_v13, %s9271_s24  ;;  %v3512_v13 = vld [vmem:[#allocation3] sm:$0xff] }
0x4aac   :  { %v2994_v14 = vpop.permute.xlu1 %2993 }
0x4aad   :  { %2996 = vst.msk [vmem:[#allocation3 + $0x1a] sm:$0x1] %vm317_vm5, %v2994_v14  ;;  %7862 = vmatmul.mubr.msk.f32.vlgmr.msra.gmra.mrb[28].mxu1 %vm214_vm6, %v2994_v14  ;;  %v3513_v14 = vld [vmem:[#allocation3 + $0x8] sm:$0xff] }
0x4aae   :  { %8488 = vmatpush3.bf16.msra.mxu1 %v9380_v16  ;;  %7883 = vmatprep.mubr.msk.f32.mxu1 %vm9266_vm1, %v9267_v9 }
0x4aaf   :  { %8489 = vmatprep.subr.bf16.mxu1 %v9265_v8 }
0x4ab2   :  { %8491 = vmatpush3.bf16.msra.mxu1 %v9389_v19 }
0x4ab3   :  { %8498 = vmatprep.subr.bf16.mxu1 %v9265_v8 }
0x4b80   :  { %v3066_v17 = vpop.f32.mrb[28].mxu1 }
0x4b81   :  { %v3070_v18 = vadd.f32 %v3066_v17, %v2997_v15  ;;  %v7863_v20 = vpop.f32.mrb[29].mxu1  ;;  %v3514_v15 = vld [vmem:[#allocation3 + $0x10] sm:$0xff]  ;;  %v3306_v17 = vld [vmem:[#allocation2 + $0x1e] sm:$0x1] }
0x4b83   :  { %8939 = vtanh.f32 %v3070_v18  ;;  %v7104_v22 = vmul.f32 -1.442695, %v3070_v18 }
0x4b85   :  { %8941 = vpow2.f32 %v7104_v22  ;;  %v9842_v22 = vld [vmem:[%s10287_s8] ss:$0 sm:$0xff] }
0x4b8d   :  { %v8940_v21 = vpop.eup %8939 }
0x4b8e   :  { %3080 = vrot.lane.b32.xlu0 %v8940_v21, %s9270_s23 }
0x4b8f   :  { %v8942_v5 = vpop.eup %8941 }
0x4b90   :  { %v3074_v45 = vadd.f32 1.0, %v8942_v5 }
0x4b92   :  { %8943 = vrcp.f32 %v3074_v45 }
0x4b9c   :  { %v8944_v47 = vpop.eup %8943 }
0x4b9d   :  { %v3078_v26 = vmul.f32 %v8944_v47, %v2985_v24  ;;  %v3519_v24 = vld [vmem:[%s10285_s6 + $0x18] sm:$0xff] }
0x4b9e   :  { %v8508_v29 = vpack.c.bf16 %v3519_v24, %v3518_v12 }
0x4c00   :  { %v3081_v23 = vpop.permute.xlu0 %3080 }
0x4c01   :  { %v3083_v25 = vmul.f32 %v8944_v47, %v3081_v23 }
0x4c03   :  { %3085 = vrot.lane.b32.xlu1 %v3083_v25, %s9271_s24 }
0x4c75   :  { %v3086_v27 = vpop.permute.xlu1 %3085 }
0x4c76   :  { %v3088_v28 = vadd.f32 %v3086_v27, %v3078_v26 }
0x4c78   :  { %8945 = vtanh.f32 %v3088_v28 }
0x4c82   :  { %v8946_v31 = vpop.eup %8945 }
0x4c83   :  { %3091 = vrot.lane.b32.xlu0 %v8946_v31, %s9270_s23 }
0x4cf5   :  { %v3092_v32 = vpop.permute.xlu0 %3091 }
0x4cf6   :  { %v3094_v33 = vmul.f32 %v8944_v47, %v3092_v32 }
0x4cf8   :  { %3096 = vrot.lane.b32.xlu1 %v3094_v33, %s9271_s24 }
0x4d6a   :  { %v3097_v34 = vpop.permute.xlu1 %3096 }
0x4d6b   :  { %3099 = vst.msk [vmem:[#allocation3 + $0x1b] sm:$0x1] %vm317_vm5, %v3097_v34  ;;  %7873 = vmatmul.mubr.msk.f32.vlgmr.msra.gmra.mrb[30].mxu0 %vm214_vm6, %v3097_v34 }
0x4d6c   :  { %8494 = vmatpush3.bf16.msra.mxu0 %v9380_v16  ;;  %7894 = vmatprep.mubr.msk.f32.mxu0 %vm9266_vm1, %v9267_v9 }
0x4d6d   :  { %8495 = vmatprep.subr.bf16.mxu0 %v9265_v8 }
0x4d70   :  { %8497 = vmatpush3.bf16.msra.mxu0 %v9389_v19 }
0x4d71   :  { %8505 = vmatprep.subr.bf16.mxu0 %v8504_v4 }
0x4e3e   :  { %v3169_v36 = vpop.f32.mrb[30].mxu0 }
0x4e3f   :  { %v3173_v37 = vadd.f32 %v3169_v36, %v3100_v35  ;;  %v7874_v38 = vpop.f32.mrb[31].mxu0 }
0x4e40   :  { %v3628_v38 = vld [vmem:[%s10286_s7] sm:$0xff] }
0x4e41   :  { %8947 = vtanh.f32 %v3173_v37  ;;  %v7106_v40 = vmul.f32 -1.442695, %v3173_v37 }
0x4e43   :  { %8949 = vpow2.f32 %v7106_v40 }
0x4e4b   :  { %v8948_v39 = vpop.eup %8947 }
0x4e4c   :  { %3183 = vrot.lane.b32.xlu0 %v8948_v39, %s9270_s23  ;;  %v3629_v39 = vld [vmem:[%s10286_s7 + $0x8] sm:$0xff] }
0x4e4d   :  { %v8950_v41 = vpop.eup %8949  ;;  %v9858_v40 = vpack.c.bf16 %v3629_v39, %v3628_v38 }
0x4e4e   :  { %v3177_v42 = vadd.f32 1.0, %v8950_v41  ;;  %v3630_v41 = vld [vmem:[%s10286_s7 + $0x10] sm:$0xff] }
0x4e50   :  { %8951 = vrcp.f32 %v3177_v42  ;;  %v3631_v42 = vld [vmem:[%s10286_s7 + $0x18] sm:$0xff] }
0x4e5a   :  { %v8952_v43 = vpop.eup %8951 }
0x4e5b   :  { %v3181_v6 = vmul.f32 %v8952_v43, %v3088_v28 }
0x4ebe   :  { %v3184_v44 = vpop.permute.xlu0 %3183 }
0x4ebf   :  { %v3186_v46 = vmul.f32 %v8952_v43, %v3184_v44 }
0x4ec1   :  { %3188 = vrot.lane.b32.xlu1 %v3186_v46, %s9271_s24 }
0x4f33   :  { %v3189_v48 = vpop.permute.xlu1 %3188 }
0x4f34   :  { %v3191_v49 = vadd.f32 %v3189_v48, %v3181_v6  ;;  %v3409_v48 = vld [vmem:[#allocation2 + $0x1f] sm:$0x1] }
0x4f36   :  { %8953 = vtanh.f32 %v3191_v49 }
0x4f40   :  { %v8954_v50 = vpop.eup %8953 }
0x4f41   :  { %3194 = vrot.lane.b32.xlu0 %v8954_v50, %s9270_s23 }
0x4fb3   :  { %v3195_v51 = vpop.permute.xlu0 %3194 }
0x4fb4   :  { %v3197_v52 = vmul.f32 %v8952_v43, %v3195_v51  ;;  %v9868_v43 = vpack.c.bf16 %v3631_v42, %v3630_v41 }
0x4fb6   :  { %3199 = vrot.lane.b32.xlu1 %v3197_v52, %s9271_s24 }
0x5028   :  { %v3200_v53 = vpop.permute.xlu1 %3199 }
0x5029   :  { %3202 = vst.msk [vmem:[#allocation3 + $0x1c] sm:$0x1] %vm317_vm5, %v3200_v53  ;;  %7884 = vmatmul.mubr.msk.f32.vlgmr.msra.gmra.mrb[30].mxu1 %vm214_vm6, %v3200_v53 }
0x502a   :  { %8500 = vmatpush3.bf16.msra.mxu1 %v9380_v16  ;;  %7905 = vmatprep.mubr.msk.f32.mxu1 %vm9266_vm1, %v9267_v9 }
0x502b   :  { %8501 = vmatprep.subr.bf16.mxu1 %v9265_v8 }
0x502e   :  { %8503 = vmatpush3.bf16.msra.mxu1 %v9389_v19 }
0x502f   :  { %8512 = vmatprep.subr.bf16.mxu1 %v9265_v8 }
0x50fc   :  { %v3272_v55 = vpop.f32.mrb[30].mxu1 }
0x50fd   :  { %v3276_v56 = vadd.f32 %v3272_v55, %v3203_v54  ;;  %v7885_v57 = vpop.f32.mrb[31].mxu1 }
0x50ff   :  { %8955 = vtanh.f32 %v3276_v56  ;;  %v7108_v59 = vmul.f32 -1.442695, %v3276_v56 }
0x5101   :  { %8957 = vpow2.f32 %v7108_v59 }
0x5109   :  { %v8956_v58 = vpop.eup %8955 }
0x510a   :  { %3286 = vrot.lane.b32.xlu0 %v8956_v58, %s9270_s23 }
0x510b   :  { %v8958_v16 = vpop.eup %8957 }
0x510c   :  { %v3280_v60 = vadd.f32 1.0, %v8958_v16 }
0x510e   :  { %8959 = vrcp.f32 %v3280_v60 }
0x5118   :  { %v8960_v61 = vpop.eup %8959 }
0x5119   :  { %v3284_v19 = vmul.f32 %v8960_v61, %v3191_v49 }
0x517c   :  { %v3287_v62 = vpop.permute.xlu0 %3286 }
0x517d   :  { %v3289_v63 = vmul.f32 %v8960_v61, %v3287_v62 }
0x517f   :  { %3291 = vrot.lane.b32.xlu1 %v3289_v63, %s9271_s24 }
0x51f1   :  { %v3292_v0 = vpop.permute.xlu1 %3291 }
0x51f2   :  { %v3294_v1 = vadd.f32 %v3292_v0, %v3284_v19 }
0x51f4   :  { %8961 = vtanh.f32 %v3294_v1 }
0x51fe   :  { %v8962_v7 = vpop.eup %8961 }
0x51ff   :  { %3297 = vrot.lane.b32.xlu0 %v8962_v7, %s9270_s23 }
0x5271   :  { %v3298_v10 = vpop.permute.xlu0 %3297 }
0x5272   :  { %v3300_v11 = vmul.f32 %v8960_v61, %v3298_v10 }
0x5274   :  { %3302 = vrot.lane.b32.xlu1 %v3300_v11, %s9271_s24 }
0x52e6   :  { %v3303_v30 = vpop.permute.xlu1 %3302 }
0x52e7   :  { %3305 = vst.msk [vmem:[#allocation3 + $0x1d] sm:$0x1] %vm317_vm5, %v3303_v30  ;;  %7895 = vmatmul.mubr.msk.f32.vlgmr.msra.gmra.mrb[32].mxu0 %vm214_vm6, %v3303_v30 }
0x52e8   :  { %8507 = vmatpush3.bf16.msra.mxu0 %v8504_v4  ;;  %7916 = vmatprep.mubr.msk.f32.mxu0 %vm214_vm6, %v3512_v13 }
0x52e9   :  { %8509 = vmatprep.subr.bf16.mxu0 %v8508_v29 }
0x52ec   :  { %8511 = vmatpush3.bf16.msra.mxu0 %v8508_v29 }
0x52ed   :  { %8518 = vmatprep.subr.bf16.mxu0 %v9265_v8 }
0x52ef   :  { %7917 = vmatmul.mubr.msk.f32.vlgmr.msra.gmra.mrb[34].mxu0 %vm214_vm6, %v3513_v14 }
0x52f0   :  { %7919 = vmatprep.mubr.msk.f32.mxu0 %vm214_vm6, %v3514_v15  ;;  %8520 = vmatpush3.bf16.msra.mxu0 %v9858_v40 }
0x52f1   :  { %8521 = vmatprep.subr.bf16.mxu0 %v9265_v8 }
0x52f4   :  { %8523 = vmatpush3.bf16.msra.mxu0 %v9868_v43 }
0x52f5   :  { %8530 = vmatprep.subr.bf16.mxu0 %v9265_v8 }
0x53ba   :  { %v3375_v18 = vpop.f32.mrb[32].mxu0 }
0x53bb   :  { %v3379_v20 = vadd.f32 %v3375_v18, %v3306_v17  ;;  %v7896_v21 = vpop.f32.mrb[33].mxu0 }
0x53bd   :  { %8963 = vtanh.f32 %v3379_v20  ;;  %v7110_v26 = vmul.f32 -1.442695, %v3379_v20 }
0x53bf   :  { %8965 = vpow2.f32 %v7110_v26 }
0x53c2   :  { %v7918_v5 = vpop.f32.mrb[34].mxu0 }
0x53c3   :  { %v3611_v45 = vadd.f32 %v7918_v5, %v9842_v22  ;;  %v3605_v47 = vpop.f32.mrb[35].mxu0 }
0x53c4   :  { %v3606_v23 = vadd.f32 %v9842_v22, %v3605_v47 }
0x53c5   :  { %3625 = vst [vmem:[#allocation2 + $0x8] sm:$0xff] %v3611_v45 }
0x53c6   :  { %3624 = vst [vmem:[#allocation2] sm:$0xff] %v3606_v23 }
0x53c7   :  { %v8964_v25 = vpop.eup %8963 }
0x53c8   :  { %3389 = vrot.lane.b32.xlu0 %v8964_v25, %s9270_s23 }
0x53c9   :  { %v8966_v27 = vpop.eup %8965 }
0x53ca   :  { %v3383_v28 = vadd.f32 1.0, %v8966_v27 }
0x53cc   :  { %8967 = vrcp.f32 %v3383_v28 }
0x53cd   :  { %v3632_v52 = vld [vmem:[#allocation2] sm:$0x1]  ;;  %v3728_v25 = vld [vmem:[#allocation2 + $0x1] sm:$0x1] }
0x53d6   :  { %v8968_v31 = vpop.eup %8967 }
0x53d7   :  { %v3387_v34 = vmul.f32 %v8968_v31, %v3294_v1 }
0x543a   :  { %v3390_v32 = vpop.permute.xlu0 %3389 }
0x543b   :  { %v3392_v33 = vmul.f32 %v8968_v31, %v3390_v32 }
0x543d   :  { %3394 = vrot.lane.b32.xlu1 %v3392_v33, %s9271_s24 }
0x54af   :  { %v3395_v35 = vpop.permute.xlu1 %3394 }
0x54b0   :  { %v9848_v36 = vadd.f32 %v3395_v35, %v3387_v34 }
0x54b2   :  { %8969 = vtanh.f32 %v9848_v36 }
0x54bc   :  { %v8970_v37 = vpop.eup %8969 }
0x54bd   :  { %3400 = vrot.lane.b32.xlu0 %v8970_v37, %s9270_s23 }
0x552f   :  { %v3401_v44 = vpop.permute.xlu0 %3400 }
0x5530   :  { %v3403_v46 = vmul.f32 %v8968_v31, %v3401_v44 }
0x5532   :  { %3405 = vrot.lane.b32.xlu1 %v3403_v46, %s9271_s24 }
0x55a4   :  { %v3406_v6 = vpop.permute.xlu1 %3405 }
0x55a5   :  { %3408 = vst.msk [vmem:[#allocation3 + $0x1e] sm:$0x1] %vm317_vm5, %v3406_v6  ;;  %7906 = vmatmul.mubr.msk.f32.vlgmr.msra.gmra.mrb[32].mxu1 %vm214_vm6, %v3406_v6  ;;  %v3829_v6 = vld [vmem:[#allocation2 + $0x2] sm:$0x1] }
0x55a6   :  { %8514 = vmatpush3.bf16.msra.mxu1 %v9858_v40  ;;  %7930 = vmatprep.mubr.msk.f32.mxu1 %vm9266_vm1, %v9267_v9 }
0x55a7   :  { %8515 = vmatprep.subr.bf16.mxu1 %v9265_v8 }
0x55aa   :  { %8517 = vmatpush3.bf16.msra.mxu1 %v9868_v43 }
0x55ab   :  { %8524 = vmatprep.subr.bf16.mxu1 %v9265_v8 }
0x55ad   :  { %7931 = vmatmul.mubr.f32.vlgmr.msra.gmra.mrb[34].mxu1 %v9267_v9 }
0x55ae   :  { %8526 = vmatpush3.bf16.msra.mxu1 %v9858_v40  ;;  %7952 = vmatprep.mubr.msk.f32.mxu1 %vm9266_vm1, %v9267_v9 }
0x55af   :  { %8527 = vmatprep.subr.bf16.mxu1 %v9265_v8 }
0x55b2   :  { %8529 = vmatpush3.bf16.msra.mxu1 %v9868_v43 }
0x55b3   :  { %8536 = vmatprep.subr.bf16.mxu1 %v9265_v8 }
0x5678   :  { %v3478_v49 = vpop.f32.mrb[32].mxu1 }
0x5679   :  { %v3482_v50 = vadd.f32 %v3478_v49, %v3409_v48  ;;  %v7907_v51 = vpop.f32.mrb[33].mxu1 }
0x567b   :  { %8971 = vtanh.f32 %v3482_v50  ;;  %v7112_v58 = vmul.f32 -1.442695, %v3482_v50 }
0x5680   :  { %v3699_v53 = vpop.f32.mrb[34].mxu1 }
0x5681   :  { %v3703_v54 = vadd.f32 %v3699_v53, %v3632_v52  ;;  %v7932_v55 = vpop.f32.mrb[35].mxu1 }
0x5683   :  { %8973 = vtanh.f32 %v3703_v54  ;;  %v7118_v59 = vmul.f32 -1.442695, %v3703_v54 }
0x5684   :  { %8975 = vpow2.f32 %v7112_v58 }
0x5685   :  { %v8972_v56 = vpop.eup %8971  ;;  %8977 = vpow2.f32 %v7118_v59 }
0x5686   :  { %3492 = vrot.lane.b32.xlu0 %v8972_v56, %s9270_s23 }
0x568d   :  { %v8974_v57 = vpop.eup %8973 }
0x568e   :  { %3713 = vrot.lane.b32.xlu1 %v8974_v57, %s9270_s23  ;;  %v8976_v16 = vpop.eup %8975 }
0x568f   :  { %v3486_v60 = vadd.f32 1.0, %v8976_v16  ;;  %v8978_v61 = vpop.eup %8977 }
0x5690   :  { %v3707_v62 = vadd.f32 1.0, %v8978_v61 }
0x5691   :  { %8979 = vrcp.f32 %v3486_v60 }
0x5692   :  { %8981 = vrcp.f32 %v3707_v62 }
0x569b   :  { %v8980_v63 = vpop.eup %8979 }
0x569c   :  { %v8982_v1 = vpop.eup %8981  ;;  %v3490_v4 = vmul.f32 %v8980_v63, %v9848_v36 }
0x569d   :  { %v3711_v11 = vmul.f32 0.0, %v8982_v1 }
0x56f8   :  { %v3493_v19 = vpop.permute.xlu0 %3492 }
0x56f9   :  { %v3495_v0 = vmul.f32 %v8980_v63, %v3493_v19  ;;  %v3930_v19 = vld [vmem:[#allocation2 + $0x3] sm:$0x1] }
0x56fb   :  { %3497 = vrot.lane.b32.xlu0 %v3495_v0, %s9271_s24 }
0x5700   :  { %v3714_v2 = vpop.permute.xlu1 %3713 }
0x5701   :  { %v3716_v3 = vmul.f32 %v8982_v1, %v3714_v2 }
0x5703   :  { %3718 = vrot.lane.b32.xlu1 %v3716_v3, %s9271_s24 }
0x576d   :  { %v3498_v7 = vpop.permute.xlu0 %3497 }
0x576e   :  { %v3500_v10 = vadd.f32 %v3498_v7, %v3490_v4 }
0x5770   :  { %8983 = vtanh.f32 %v3500_v10 }
0x5775   :  { %v3719_v12 = vpop.permute.xlu1 %3718 }
0x5776   :  { %v3721_v24 = vadd.f32 %v3719_v12, %v3711_v11 }
0x5778   :  { %8985 = vtanh.f32 %v3721_v24 }
0x577a   :  { %v8984_v29 = vpop.eup %8983 }
0x577b   :  { %3503 = vrot.lane.b32.xlu0 %v8984_v29, %s9270_s23 }
0x5782   :  { %v8986_v30 = vpop.eup %8985 }
0x5783   :  { %3724 = vrot.lane.b32.xlu1 %v8986_v30, %s9270_s23 }
0x57ed   :  { %v3504_v13 = vpop.permute.xlu0 %3503 }
0x57ee   :  { %v3506_v14 = vmul.f32 %v8980_v63, %v3504_v13 }
0x57f0   :  { %3508 = vrot.lane.b32.xlu0 %v3506_v14, %s9271_s24 }
0x57f5   :  { %v3725_v15 = vpop.permute.xlu1 %3724 }
0x57f6   :  { %v3727_v17 = vmul.f32 %v8982_v1, %v3725_v15 }
0x57f8   :  { %3730 = vrot.lane.b32.xlu1 %v3727_v17, %s9271_s24 }
0x5862   :  { %v3509_v18 = vpop.permute.xlu0 %3508 }
0x5863   :  { %3511 = vst.msk [vmem:[#allocation3 + $0x1f] sm:$0x1] %vm317_vm5, %v3509_v18 }
0x586a   :  { %v3515_v20 = vld [vmem:[#allocation3 + $0x18] sm:$0xff]  ;;  %v3731_v21 = vpop.permute.xlu1 %3730 }
0x586b   :  { %7920 = vmatmul.mubr.msk.f32.gmra.mrb[36].mxu0 %vm214_vm6, %v3515_v20  ;;  %v4031_v20 = vld [vmem:[#allocation2 + $0x4] sm:$0x1] }
0x586c   :  { %7941 = vmatprep.mubr.msk.f32.mxu0 %vm9266_vm1, %v9267_v9 }
0x586f   :  { %7942 = vmatmul.mubr.msk.f32.vlgmr.msra.gmra.mrb[38].mxu0 %vm214_vm6, %v3731_v21 }
0x5870   :  { %8532 = vmatpush3.bf16.msra.mxu0 %v9858_v40  ;;  %7963 = vmatprep.mubr.msk.f32.mxu0 %vm9266_vm1, %v9267_v9 }
0x5871   :  { %8533 = vmatprep.subr.bf16.mxu0 %v9265_v8 }
0x5874   :  { %8535 = vmatpush3.bf16.msra.mxu0 %v9868_v43 }
0x5875   :  { %8542 = vmatprep.subr.bf16.mxu0 %v9265_v8 }
0x593e   :  { %v7921_v5 = vpop.f32.mrb[36].mxu0 }
0x593f   :  { %v3621_v45 = vadd.f32 %v7921_v5, %v9842_v22  ;;  %v3615_v47 = vpop.f32.mrb[37].mxu0 }
0x5940   :  { %v3616_v23 = vadd.f32 %v9842_v22, %v3615_v47 }
0x5941   :  { %3627 = vst [vmem:[#allocation2 + $0x18] sm:$0xff] %v3621_v45 }
0x5942   :  { %3626 = vst [vmem:[#allocation2 + $0x10] sm:$0xff] %v3616_v23  ;;  %v3800_v26 = vpop.f32.mrb[38].mxu0 }
0x5943   :  { %v3804_v27 = vadd.f32 %v3800_v26, %v3728_v25  ;;  %v7943_v28 = vpop.f32.mrb[39].mxu0 }
0x5945   :  { %8987 = vtanh.f32 %v3804_v27  ;;  %v7120_v32 = vmul.f32 -1.442695, %v3804_v27 }
0x5947   :  { %8989 = vpow2.f32 %v7120_v32 }
0x594f   :  { %v8988_v31 = vpop.eup %8987 }
0x5950   :  { %3814 = vrot.lane.b32.xlu0 %v8988_v31, %s9270_s23 }
0x5951   :  { %v8990_v33 = vpop.eup %8989 }
0x5952   :  { %v3808_v34 = vadd.f32 1.0, %v8990_v33 }
0x5954   :  { %8991 = vrcp.f32 %v3808_v34 }
0x595e   :  { %v8992_v35 = vpop.eup %8991 }
0x595f   :  { %v3812_v22 = vmul.f32 %v8992_v35, %v3721_v24 }
0x59c2   :  { %v3815_v36 = vpop.permute.xlu0 %3814 }
0x59c3   :  { %v3817_v37 = vmul.f32 %v8992_v35, %v3815_v36 }
0x59c5   :  { %3819 = vrot.lane.b32.xlu1 %v3817_v37, %s9271_s24 }
0x5a37   :  { %v3820_v38 = vpop.permute.xlu1 %3819 }
0x5a38   :  { %v3822_v39 = vadd.f32 %v3820_v38, %v3812_v22  ;;  %v4132_v38 = vld [vmem:[#allocation2 + $0x5] sm:$0x1] }
0x5a3a   :  { %8993 = vtanh.f32 %v3822_v39 }
0x5a44   :  { %v8994_v41 = vpop.eup %8993 }
0x5a45   :  { %3825 = vrot.lane.b32.xlu0 %v8994_v41, %s9270_s23 }
0x5ab7   :  { %v3826_v42 = vpop.permute.xlu0 %3825 }
0x5ab8   :  { %v3828_v44 = vmul.f32 %v8992_v35, %v3826_v42 }
0x5aba   :  { %3831 = vrot.lane.b32.xlu1 %v3828_v44, %s9271_s24 }
0x5b2c   :  { %v3832_v46 = vpop.permute.xlu1 %3831 }
0x5b2d   :  { %7953 = vmatmul.mubr.msk.f32.vlgmr.msra.gmra.mrb[36].mxu1 %vm214_vm6, %v3832_v46 }
0x5b2e   :  { %8538 = vmatpush3.bf16.msra.mxu1 %v9858_v40  ;;  %7974 = vmatprep.mubr.msk.f32.mxu1 %vm9266_vm1, %v9267_v9 }
0x5b2f   :  { %8539 = vmatprep.subr.bf16.mxu1 %v9265_v8 }
0x5b32   :  { %8541 = vmatpush3.bf16.msra.mxu1 %v9868_v43 }
0x5b33   :  { %8548 = vmatprep.subr.bf16.mxu1 %v9265_v8 }
0x5c00   :  { %v3901_v48 = vpop.f32.mrb[36].mxu1 }
0x5c01   :  { %v3905_v49 = vadd.f32 %v3901_v48, %v3829_v6  ;;  %v7954_v50 = vpop.f32.mrb[37].mxu1 }
0x5c03   :  { %8995 = vtanh.f32 %v3905_v49  ;;  %v7122_v52 = vmul.f32 -1.442695, %v3905_v49 }
0x5c05   :  { %8997 = vpow2.f32 %v7122_v52 }
0x5c0d   :  { %v8996_v51 = vpop.eup %8995 }
0x5c0e   :  { %3915 = vrot.lane.b32.xlu0 %v8996_v51, %s9270_s23 }
0x5c0f   :  { %v8998_v53 = vpop.eup %8997 }
0x5c10   :  { %v3909_v54 = vadd.f32 1.0, %v8998_v53 }
0x5c12   :  { %8999 = vrcp.f32 %v3909_v54 }
0x5c1c   :  { %v9000_v55 = vpop.eup %8999 }
0x5c1d   :  { %v3913_v58 = vmul.f32 %v9000_v55, %v3822_v39 }
0x5c80   :  { %v3916_v56 = vpop.permute.xlu0 %3915 }
0x5c81   :  { %v3918_v57 = vmul.f32 %v9000_v55, %v3916_v56 }
0x5c83   :  { %3920 = vrot.lane.b32.xlu1 %v3918_v57, %s9271_s24 }
0x5cf5   :  { %v3921_v59 = vpop.permute.xlu1 %3920 }
0x5cf6   :  { %v3923_v16 = vadd.f32 %v3921_v59, %v3913_v58  ;;  %v4233_v59 = vld [vmem:[#allocation2 + $0x6] sm:$0x1] }
0x5cf8   :  { %9001 = vtanh.f32 %v3923_v16 }
0x5d02   :  { %v9002_v60 = vpop.eup %9001 }
0x5d03   :  { %3926 = vrot.lane.b32.xlu0 %v9002_v60, %s9270_s23 }
0x5d75   :  { %v3927_v61 = vpop.permute.xlu0 %3926 }
0x5d76   :  { %v3929_v62 = vmul.f32 %v9000_v55, %v3927_v61 }
0x5d78   :  { %3932 = vrot.lane.b32.xlu1 %v3929_v62, %s9271_s24 }
0x5dea   :  { %v3933_v63 = vpop.permute.xlu1 %3932 }
0x5deb   :  { %7964 = vmatmul.mubr.msk.f32.vlgmr.msra.gmra.mrb[40].mxu0 %vm214_vm6, %v3933_v63 }
0x5dec   :  { %8544 = vmatpush3.bf16.msra.mxu0 %v9858_v40  ;;  %7985 = vmatprep.mubr.msk.f32.mxu0 %vm9266_vm1, %v9267_v9 }
0x5ded   :  { %8545 = vmatprep.subr.bf16.mxu0 %v9265_v8 }
0x5df0   :  { %8547 = vmatpush3.bf16.msra.mxu0 %v9868_v43 }
0x5df1   :  { %8554 = vmatprep.subr.bf16.mxu0 %v9265_v8 }
0x5ebe   :  { %v4002_v0 = vpop.f32.mrb[40].mxu0 }
0x5ebf   :  { %v4006_v1 = vadd.f32 %v4002_v0, %v3930_v19  ;;  %v7965_v2 = vpop.f32.mrb[41].mxu0 }
0x5ec1   :  { %9003 = vtanh.f32 %v4006_v1  ;;  %v7124_v4 = vmul.f32 -1.442695, %v4006_v1 }
0x5ec3   :  { %9005 = vpow2.f32 %v7124_v4 }
0x5ecb   :  { %v9004_v3 = vpop.eup %9003 }
0x5ecc   :  { %4016 = vrot.lane.b32.xlu0 %v9004_v3, %s9270_s23 }
0x5ecd   :  { %v9006_v7 = vpop.eup %9005 }
0x5ece   :  { %v4010_v10 = vadd.f32 1.0, %v9006_v7 }
0x5ed0   :  { %9007 = vrcp.f32 %v4010_v10 }
0x5eda   :  { %v9008_v11 = vpop.eup %9007 }
0x5edb   :  { %v4014_v29 = vmul.f32 %v9008_v11, %v3923_v16 }
0x5f3e   :  { %v4017_v12 = vpop.permute.xlu0 %4016 }
0x5f3f   :  { %v4019_v24 = vmul.f32 %v9008_v11, %v4017_v12 }
0x5f41   :  { %4021 = vrot.lane.b32.xlu1 %v4019_v24, %s9271_s24 }
0x5fb3   :  { %v4022_v30 = vpop.permute.xlu1 %4021 }
0x5fb4   :  { %v4024_v13 = vadd.f32 %v4022_v30, %v4014_v29  ;;  %v4334_v30 = vld [vmem:[#allocation2 + $0x7] sm:$0x1] }
0x5fb6   :  { %9009 = vtanh.f32 %v4024_v13 }
0x5fc0   :  { %v9010_v14 = vpop.eup %9009 }
0x5fc1   :  { %4027 = vrot.lane.b32.xlu0 %v9010_v14, %s9270_s23 }
0x6033   :  { %v4028_v15 = vpop.permute.xlu0 %4027 }
0x6034   :  { %v4030_v17 = vmul.f32 %v9008_v11, %v4028_v15 }
0x6036   :  { %4033 = vrot.lane.b32.xlu1 %v4030_v17, %s9271_s24 }
0x60a8   :  { %v4034_v18 = vpop.permute.xlu1 %4033 }
0x60a9   :  { %7975 = vmatmul.mubr.msk.f32.vlgmr.msra.gmra.mrb[38].mxu1 %vm214_vm6, %v4034_v18 }
0x60aa   :  { %8550 = vmatpush3.bf16.msra.mxu1 %v9858_v40  ;;  %7996 = vmatprep.mubr.msk.f32.mxu1 %vm9266_vm1, %v9267_v9 }
0x60ab   :  { %8551 = vmatprep.subr.bf16.mxu1 %v9265_v8 }
0x60ae   :  { %8553 = vmatpush3.bf16.msra.mxu1 %v9868_v43 }
0x60af   :  { %8560 = vmatprep.subr.bf16.mxu1 %v9265_v8 }
0x617c   :  { %v4103_v21 = vpop.f32.mrb[38].mxu1 }
0x617d   :  { %v4107_v5 = vadd.f32 %v4103_v21, %v4031_v20  ;;  %v7976_v45 = vpop.f32.mrb[39].mxu1 }
0x617f   :  { %9011 = vtanh.f32 %v4107_v5  ;;  %v7126_v23 = vmul.f32 -1.442695, %v4107_v5 }
0x6181   :  { %9013 = vpow2.f32 %v7126_v23 }
0x6189   :  { %v9012_v47 = vpop.eup %9011 }
0x618a   :  { %4117 = vrot.lane.b32.xlu0 %v9012_v47, %s9270_s23 }
0x618b   :  { %v9014_v25 = vpop.eup %9013 }
0x618c   :  { %v4111_v26 = vadd.f32 1.0, %v9014_v25 }
0x618e   :  { %9015 = vrcp.f32 %v4111_v26 }
0x6198   :  { %v9016_v27 = vpop.eup %9015 }
0x6199   :  { %v4115_v32 = vmul.f32 %v9016_v27, %v4024_v13 }
0x61fc   :  { %v4118_v28 = vpop.permute.xlu0 %4117 }
0x61fd   :  { %v4120_v31 = vmul.f32 %v9016_v27, %v4118_v28 }
0x61ff   :  { %4122 = vrot.lane.b32.xlu1 %v4120_v31, %s9271_s24 }
0x6271   :  { %v4123_v33 = vpop.permute.xlu1 %4122 }
0x6272   :  { %v4125_v34 = vadd.f32 %v4123_v33, %v4115_v32  ;;  %v4435_v33 = vld [vmem:[#allocation2 + $0x8] sm:$0x1] }
0x6274   :  { %9017 = vtanh.f32 %v4125_v34 }
0x627e   :  { %v9018_v35 = vpop.eup %9017 }
0x627f   :  { %4128 = vrot.lane.b32.xlu0 %v9018_v35, %s9270_s23 }
0x62f1   :  { %v4129_v36 = vpop.permute.xlu0 %4128 }
0x62f2   :  { %v4131_v37 = vmul.f32 %v9016_v27, %v4129_v36 }
0x62f4   :  { %4134 = vrot.lane.b32.xlu1 %v4131_v37, %s9271_s24 }
0x6366   :  { %v4135_v22 = vpop.permute.xlu1 %4134 }
0x6367   :  { %7986 = vmatmul.mubr.msk.f32.vlgmr.msra.gmra.mrb[42].mxu0 %vm214_vm6, %v4135_v22 }
0x6368   :  { %8556 = vmatpush3.bf16.msra.mxu0 %v9858_v40  ;;  %8007 = vmatprep.mubr.msk.f32.mxu0 %vm9266_vm1, %v9267_v9 }
0x6369   :  { %8557 = vmatprep.subr.bf16.mxu0 %v9265_v8 }
0x636c   :  { %8559 = vmatpush3.bf16.msra.mxu0 %v9868_v43 }
0x636d   :  { %8566 = vmatprep.subr.bf16.mxu0 %v9265_v8 }
0x643a   :  { %v4204_v39 = vpop.f32.mrb[42].mxu0 }
0x643b   :  { %v4208_v41 = vadd.f32 %v4204_v39, %v4132_v38  ;;  %v7987_v42 = vpop.f32.mrb[43].mxu0 }
0x643d   :  { %9019 = vtanh.f32 %v4208_v41  ;;  %v7128_v46 = vmul.f32 -1.442695, %v4208_v41 }
0x643f   :  { %9021 = vpow2.f32 %v7128_v46 }
0x6447   :  { %v9020_v44 = vpop.eup %9019 }
0x6448   :  { %4218 = vrot.lane.b32.xlu0 %v9020_v44, %s9270_s23 }
0x6449   :  { %v9022_v6 = vpop.eup %9021 }
0x644a   :  { %v4212_v48 = vadd.f32 1.0, %v9022_v6 }
0x644c   :  { %9023 = vrcp.f32 %v4212_v48 }
0x6456   :  { %v9024_v49 = vpop.eup %9023 }
0x6457   :  { %v4216_v52 = vmul.f32 %v9024_v49, %v4125_v34 }
0x64ba   :  { %v4219_v50 = vpop.permute.xlu0 %4218 }
0x64bb   :  { %v4221_v51 = vmul.f32 %v9024_v49, %v4219_v50 }
0x64bd   :  { %4223 = vrot.lane.b32.xlu1 %v4221_v51, %s9271_s24 }
0x652f   :  { %v4224_v53 = vpop.permute.xlu1 %4223 }
0x6530   :  { %v4226_v54 = vadd.f32 %v4224_v53, %v4216_v52  ;;  %v4536_v53 = vld [vmem:[#allocation2 + $0x9] sm:$0x1] }
0x6532   :  { %9025 = vtanh.f32 %v4226_v54 }
0x653c   :  { %v9026_v55 = vpop.eup %9025 }
0x653d   :  { %4229 = vrot.lane.b32.xlu0 %v9026_v55, %s9270_s23 }
0x65af   :  { %v4230_v56 = vpop.permute.xlu0 %4229 }
0x65b0   :  { %v4232_v57 = vmul.f32 %v9024_v49, %v4230_v56 }
0x65b2   :  { %4235 = vrot.lane.b32.xlu1 %v4232_v57, %s9271_s24 }
0x6624   :  { %v4236_v58 = vpop.permute.xlu1 %4235 }
0x6625   :  { %7997 = vmatmul.mubr.msk.f32.vlgmr.msra.gmra.mrb[40].mxu1 %vm214_vm6, %v4236_v58 }
0x6626   :  { %8562 = vmatpush3.bf16.msra.mxu1 %v9858_v40  ;;  %8018 = vmatprep.mubr.msk.f32.mxu1 %vm9266_vm1, %v9267_v9 }
0x6627   :  { %8563 = vmatprep.subr.bf16.mxu1 %v9265_v8 }
0x662a   :  { %8565 = vmatpush3.bf16.msra.mxu1 %v9868_v43 }
0x662b   :  { %8572 = vmatprep.subr.bf16.mxu1 %v9265_v8 }
0x66f8   :  { %v4305_v16 = vpop.f32.mrb[40].mxu1 }
0x66f9   :  { %v4309_v60 = vadd.f32 %v4305_v16, %v4233_v59  ;;  %v7998_v61 = vpop.f32.mrb[41].mxu1 }
0x66fb   :  { %9027 = vtanh.f32 %v4309_v60  ;;  %v7130_v63 = vmul.f32 -1.442695, %v4309_v60 }
0x66fd   :  { %9029 = vpow2.f32 %v7130_v63 }
0x6705   :  { %v9028_v62 = vpop.eup %9027 }
0x6706   :  { %4319 = vrot.lane.b32.xlu0 %v9028_v62, %s9270_s23 }
0x6707   :  { %v9030_v19 = vpop.eup %9029 }
0x6708   :  { %v4313_v0 = vadd.f32 1.0, %v9030_v19 }
0x670a   :  { %9031 = vrcp.f32 %v4313_v0 }
0x6714   :  { %v9032_v1 = vpop.eup %9031 }
0x6715   :  { %v4317_v4 = vmul.f32 %v9032_v1, %v4226_v54 }
0x6778   :  { %v4320_v2 = vpop.permute.xlu0 %4319 }
0x6779   :  { %v4322_v3 = vmul.f32 %v9032_v1, %v4320_v2 }
0x677b   :  { %4324 = vrot.lane.b32.xlu1 %v4322_v3, %s9271_s24 }
0x67ed   :  { %v4325_v7 = vpop.permute.xlu1 %4324 }
0x67ee   :  { %v4327_v10 = vadd.f32 %v4325_v7, %v4317_v4  ;;  %v4637_v7 = vld [vmem:[#allocation2 + $0xa] sm:$0x1] }
0x67f0   :  { %9033 = vtanh.f32 %v4327_v10 }
0x67fa   :  { %v9034_v11 = vpop.eup %9033 }
0x67fb   :  { %4330 = vrot.lane.b32.xlu0 %v9034_v11, %s9270_s23 }
0x686d   :  { %v4331_v12 = vpop.permute.xlu0 %4330 }
0x686e   :  { %v4333_v24 = vmul.f32 %v9032_v1, %v4331_v12 }
0x6870   :  { %4336 = vrot.lane.b32.xlu1 %v4333_v24, %s9271_s24 }
0x68e2   :  { %v4337_v29 = vpop.permute.xlu1 %4336 }
0x68e3   :  { %8008 = vmatmul.mubr.msk.f32.vlgmr.msra.gmra.mrb[44].mxu0 %vm214_vm6, %v4337_v29 }
0x68e4   :  { %8568 = vmatpush3.bf16.msra.mxu0 %v9858_v40  ;;  %8029 = vmatprep.mubr.msk.f32.mxu0 %vm9266_vm1, %v9267_v9 }
0x68e5   :  { %8569 = vmatprep.subr.bf16.mxu0 %v9265_v8 }
0x68e8   :  { %8571 = vmatpush3.bf16.msra.mxu0 %v9868_v43 }
0x68e9   :  { %8578 = vmatprep.subr.bf16.mxu0 %v9265_v8 }
0x69b6   :  { %v4406_v13 = vpop.f32.mrb[44].mxu0 }
0x69b7   :  { %v4410_v14 = vadd.f32 %v4406_v13, %v4334_v30  ;;  %v8009_v15 = vpop.f32.mrb[45].mxu0 }
0x69b9   :  { %9035 = vtanh.f32 %v4410_v14  ;;  %v7132_v18 = vmul.f32 -1.442695, %v4410_v14 }
0x69bb   :  { %9037 = vpow2.f32 %v7132_v18 }
0x69c3   :  { %v9036_v17 = vpop.eup %9035 }
0x69c4   :  { %4420 = vrot.lane.b32.xlu0 %v9036_v17, %s9270_s23 }
0x69c5   :  { %v9038_v20 = vpop.eup %9037 }
0x69c6   :  { %v4414_v21 = vadd.f32 1.0, %v9038_v20 }
0x69c8   :  { %9039 = vrcp.f32 %v4414_v21 }
0x69d2   :  { %v9040_v5 = vpop.eup %9039 }
0x69d3   :  { %v4418_v23 = vmul.f32 %v9040_v5, %v4327_v10 }
0x6a36   :  { %v4421_v45 = vpop.permute.xlu0 %4420 }
0x6a37   :  { %v4423_v47 = vmul.f32 %v9040_v5, %v4421_v45 }
0x6a39   :  { %4425 = vrot.lane.b32.xlu1 %v4423_v47, %s9271_s24 }
0x6aab   :  { %v4426_v25 = vpop.permute.xlu1 %4425 }
0x6aac   :  { %v4428_v26 = vadd.f32 %v4426_v25, %v4418_v23  ;;  %v4738_v25 = vld [vmem:[#allocation2 + $0xb] sm:$0x1] }
0x6aae   :  { %9041 = vtanh.f32 %v4428_v26 }
0x6ab8   :  { %v9042_v27 = vpop.eup %9041 }
0x6ab9   :  { %4431 = vrot.lane.b32.xlu0 %v9042_v27, %s9270_s23 }
0x6b2b   :  { %v4432_v28 = vpop.permute.xlu0 %4431 }
0x6b2c   :  { %v4434_v31 = vmul.f32 %v9040_v5, %v4432_v28 }
0x6b2e   :  { %4437 = vrot.lane.b32.xlu1 %v4434_v31, %s9271_s24 }
0x6ba0   :  { %v4438_v32 = vpop.permute.xlu1 %4437 }
0x6ba1   :  { %8019 = vmatmul.mubr.msk.f32.vlgmr.msra.gmra.mrb[42].mxu1 %vm214_vm6, %v4438_v32 }
0x6ba2   :  { %8574 = vmatpush3.bf16.msra.mxu1 %v9858_v40  ;;  %8040 = vmatprep.mubr.msk.f32.mxu1 %vm9266_vm1, %v9267_v9 }
0x6ba3   :  { %8575 = vmatprep.subr.bf16.mxu1 %v9265_v8 }
0x6ba6   :  { %8577 = vmatpush3.bf16.msra.mxu1 %v9868_v43 }
0x6ba7   :  { %8584 = vmatprep.subr.bf16.mxu1 %v9265_v8 }
0x6c74   :  { %v4507_v34 = vpop.f32.mrb[42].mxu1 }
0x6c75   :  { %v4511_v35 = vadd.f32 %v4507_v34, %v4435_v33  ;;  %v8020_v36 = vpop.f32.mrb[43].mxu1 }
0x6c77   :  { %9043 = vtanh.f32 %v4511_v35  ;;  %v7134_v22 = vmul.f32 -1.442695, %v4511_v35 }
0x6c79   :  { %9045 = vpow2.f32 %v7134_v22 }
0x6c81   :  { %v9044_v37 = vpop.eup %9043 }
0x6c82   :  { %4521 = vrot.lane.b32.xlu0 %v9044_v37, %s9270_s23 }
0x6c83   :  { %v9046_v38 = vpop.eup %9045 }
0x6c84   :  { %v4515_v39 = vadd.f32 1.0, %v9046_v38 }
0x6c86   :  { %9047 = vrcp.f32 %v4515_v39 }
0x6c90   :  { %v9048_v41 = vpop.eup %9047 }
0x6c91   :  { %v4519_v46 = vmul.f32 %v9048_v41, %v4428_v26 }
0x6cf4   :  { %v4522_v42 = vpop.permute.xlu0 %4521 }
0x6cf5   :  { %v4524_v44 = vmul.f32 %v9048_v41, %v4522_v42 }
0x6cf7   :  { %4526 = vrot.lane.b32.xlu1 %v4524_v44, %s9271_s24 }
0x6d69   :  { %v4527_v6 = vpop.permute.xlu1 %4526 }
0x6d6a   :  { %v4529_v48 = vadd.f32 %v4527_v6, %v4519_v46  ;;  %v4839_v6 = vld [vmem:[#allocation2 + $0xc] sm:$0x1] }
0x6d6c   :  { %9049 = vtanh.f32 %v4529_v48 }
0x6d76   :  { %v9050_v49 = vpop.eup %9049 }
0x6d77   :  { %4532 = vrot.lane.b32.xlu0 %v9050_v49, %s9270_s23 }
0x6de9   :  { %v4533_v50 = vpop.permute.xlu0 %4532 }
0x6dea   :  { %v4535_v51 = vmul.f32 %v9048_v41, %v4533_v50 }
0x6dec   :  { %4538 = vrot.lane.b32.xlu1 %v4535_v51, %s9271_s24 }
0x6e5e   :  { %v4539_v52 = vpop.permute.xlu1 %4538 }
0x6e5f   :  { %8030 = vmatmul.mubr.msk.f32.vlgmr.msra.gmra.mrb[46].mxu0 %vm214_vm6, %v4539_v52 }
0x6e60   :  { %8580 = vmatpush3.bf16.msra.mxu0 %v9858_v40  ;;  %8051 = vmatprep.mubr.msk.f32.mxu0 %vm9266_vm1, %v9267_v9 }
0x6e61   :  { %8581 = vmatprep.subr.bf16.mxu0 %v9265_v8 }
0x6e64   :  { %8583 = vmatpush3.bf16.msra.mxu0 %v9868_v43 }
0x6e65   :  { %8590 = vmatprep.subr.bf16.mxu0 %v9265_v8 }
0x6f32   :  { %v4608_v54 = vpop.f32.mrb[46].mxu0 }
0x6f33   :  { %v4612_v55 = vadd.f32 %v4608_v54, %v4536_v53  ;;  %v8031_v56 = vpop.f32.mrb[47].mxu0 }
0x6f35   :  { %9051 = vtanh.f32 %v4612_v55  ;;  %v7136_v58 = vmul.f32 -1.442695, %v4612_v55 }
0x6f37   :  { %9053 = vpow2.f32 %v7136_v58 }
0x6f3f   :  { %v9052_v57 = vpop.eup %9051 }
0x6f40   :  { %4622 = vrot.lane.b32.xlu0 %v9052_v57, %s9270_s23 }
0x6f41   :  { %v9054_v59 = vpop.eup %9053 }
0x6f42   :  { %v4616_v16 = vadd.f32 1.0, %v9054_v59 }
0x6f44   :  { %9055 = vrcp.f32 %v4616_v16 }
0x6f4e   :  { %v9056_v60 = vpop.eup %9055 }
0x6f4f   :  { %v4620_v63 = vmul.f32 %v9056_v60, %v4529_v48 }
0x6fb2   :  { %v4623_v61 = vpop.permute.xlu0 %4622 }
0x6fb3   :  { %v4625_v62 = vmul.f32 %v9056_v60, %v4623_v61 }
0x6fb5   :  { %4627 = vrot.lane.b32.xlu1 %v4625_v62, %s9271_s24 }
0x7027   :  { %v4628_v19 = vpop.permute.xlu1 %4627 }
0x7028   :  { %v4630_v0 = vadd.f32 %v4628_v19, %v4620_v63  ;;  %v4940_v19 = vld [vmem:[#allocation2 + $0xd] sm:$0x1] }
0x702a   :  { %9057 = vtanh.f32 %v4630_v0 }
0x7034   :  { %v9058_v1 = vpop.eup %9057 }
0x7035   :  { %4633 = vrot.lane.b32.xlu0 %v9058_v1, %s9270_s23 }
0x70a7   :  { %v4634_v2 = vpop.permute.xlu0 %4633 }
0x70a8   :  { %v4636_v3 = vmul.f32 %v9056_v60, %v4634_v2 }
0x70aa   :  { %4639 = vrot.lane.b32.xlu1 %v4636_v3, %s9271_s24 }
0x711c   :  { %v4640_v4 = vpop.permute.xlu1 %4639 }
0x711d   :  { %8041 = vmatmul.mubr.msk.f32.vlgmr.msra.gmra.mrb[44].mxu1 %vm214_vm6, %v4640_v4 }
0x711e   :  { %8586 = vmatpush3.bf16.msra.mxu1 %v9858_v40  ;;  %8062 = vmatprep.mubr.msk.f32.mxu1 %vm9266_vm1, %v9267_v9 }
0x711f   :  { %8587 = vmatprep.subr.bf16.mxu1 %v9265_v8 }
0x7122   :  { %8589 = vmatpush3.bf16.msra.mxu1 %v9868_v43 }
0x7123   :  { %8596 = vmatprep.subr.bf16.mxu1 %v9265_v8 }
0x71f0   :  { %v4709_v10 = vpop.f32.mrb[44].mxu1 }
0x71f1   :  { %v4713_v11 = vadd.f32 %v4709_v10, %v4637_v7  ;;  %v8042_v12 = vpop.f32.mrb[45].mxu1 }
0x71f3   :  { %9059 = vtanh.f32 %v4713_v11  ;;  %v7138_v29 = vmul.f32 -1.442695, %v4713_v11 }
0x71f5   :  { %9061 = vpow2.f32 %v7138_v29 }
0x71fd   :  { %v9060_v24 = vpop.eup %9059 }
0x71fe   :  { %4723 = vrot.lane.b32.xlu0 %v9060_v24, %s9270_s23 }
0x71ff   :  { %v9062_v30 = vpop.eup %9061 }
0x7200   :  { %v4717_v13 = vadd.f32 1.0, %v9062_v30 }
0x7202   :  { %9063 = vrcp.f32 %v4717_v13 }
0x720c   :  { %v9064_v14 = vpop.eup %9063 }
0x720d   :  { %v4721_v18 = vmul.f32 %v9064_v14, %v4630_v0 }
0x7270   :  { %v4724_v15 = vpop.permute.xlu0 %4723 }
0x7271   :  { %v4726_v17 = vmul.f32 %v9064_v14, %v4724_v15 }
0x7273   :  { %4728 = vrot.lane.b32.xlu1 %v4726_v17, %s9271_s24 }
0x72e5   :  { %v4729_v20 = vpop.permute.xlu1 %4728 }
0x72e6   :  { %v4731_v21 = vadd.f32 %v4729_v20, %v4721_v18  ;;  %v5041_v20 = vld [vmem:[#allocation2 + $0xe] sm:$0x1] }
0x72e8   :  { %9065 = vtanh.f32 %v4731_v21 }
0x72f2   :  { %v9066_v5 = vpop.eup %9065 }
0x72f3   :  { %4734 = vrot.lane.b32.xlu0 %v9066_v5, %s9270_s23 }
0x7365   :  { %v4735_v45 = vpop.permute.xlu0 %4734 }
0x7366   :  { %v4737_v47 = vmul.f32 %v9064_v14, %v4735_v45 }
0x7368   :  { %4740 = vrot.lane.b32.xlu1 %v4737_v47, %s9271_s24 }
0x73da   :  { %v4741_v23 = vpop.permute.xlu1 %4740 }
0x73db   :  { %8052 = vmatmul.mubr.msk.f32.vlgmr.msra.gmra.mrb[48].mxu0 %vm214_vm6, %v4741_v23 }
0x73dc   :  { %8592 = vmatpush3.bf16.msra.mxu0 %v9858_v40  ;;  %8073 = vmatprep.mubr.msk.f32.mxu0 %vm9266_vm1, %v9267_v9 }
0x73dd   :  { %8593 = vmatprep.subr.bf16.mxu0 %v9265_v8 }
0x73e0   :  { %8595 = vmatpush3.bf16.msra.mxu0 %v9868_v43 }
0x73e1   :  { %8602 = vmatprep.subr.bf16.mxu0 %v9265_v8 }
0x74ae   :  { %v4810_v26 = vpop.f32.mrb[48].mxu0 }
0x74af   :  { %v4814_v27 = vadd.f32 %v4810_v26, %v4738_v25  ;;  %v8053_v28 = vpop.f32.mrb[49].mxu0 }
0x74b1   :  { %9067 = vtanh.f32 %v4814_v27  ;;  %v7140_v32 = vmul.f32 -1.442695, %v4814_v27 }
0x74b3   :  { %9069 = vpow2.f32 %v7140_v32 }
0x74bb   :  { %v9068_v31 = vpop.eup %9067 }
0x74bc   :  { %4824 = vrot.lane.b32.xlu0 %v9068_v31, %s9270_s23 }
0x74bd   :  { %v9070_v33 = vpop.eup %9069 }
0x74be   :  { %v4818_v34 = vadd.f32 1.0, %v9070_v33 }
0x74c0   :  { %9071 = vrcp.f32 %v4818_v34 }
0x74ca   :  { %v9072_v35 = vpop.eup %9071 }
0x74cb   :  { %v4822_v22 = vmul.f32 %v9072_v35, %v4731_v21 }
0x752e   :  { %v4825_v36 = vpop.permute.xlu0 %4824 }
0x752f   :  { %v4827_v37 = vmul.f32 %v9072_v35, %v4825_v36 }
0x7531   :  { %4829 = vrot.lane.b32.xlu1 %v4827_v37, %s9271_s24 }
0x75a3   :  { %v4830_v38 = vpop.permute.xlu1 %4829 }
0x75a4   :  { %v4832_v39 = vadd.f32 %v4830_v38, %v4822_v22  ;;  %v5142_v38 = vld [vmem:[#allocation2 + $0xf] sm:$0x1] }
0x75a6   :  { %9073 = vtanh.f32 %v4832_v39 }
0x75b0   :  { %v9074_v41 = vpop.eup %9073 }
0x75b1   :  { %4835 = vrot.lane.b32.xlu0 %v9074_v41, %s9270_s23 }
0x7623   :  { %v4836_v42 = vpop.permute.xlu0 %4835 }
0x7624   :  { %v4838_v44 = vmul.f32 %v9072_v35, %v4836_v42 }
0x7626   :  { %4841 = vrot.lane.b32.xlu1 %v4838_v44, %s9271_s24 }
0x7698   :  { %v4842_v46 = vpop.permute.xlu1 %4841 }
0x7699   :  { %8063 = vmatmul.mubr.msk.f32.vlgmr.msra.gmra.mrb[46].mxu1 %vm214_vm6, %v4842_v46 }
0x769a   :  { %8598 = vmatpush3.bf16.msra.mxu1 %v9858_v40  ;;  %8084 = vmatprep.mubr.msk.f32.mxu1 %vm9266_vm1, %v9267_v9 }
0x769b   :  { %8599 = vmatprep.subr.bf16.mxu1 %v9265_v8 }
0x769e   :  { %8601 = vmatpush3.bf16.msra.mxu1 %v9868_v43 }
0x769f   :  { %8608 = vmatprep.subr.bf16.mxu1 %v9265_v8 }
0x776c   :  { %v4911_v48 = vpop.f32.mrb[46].mxu1 }
0x776d   :  { %v4915_v49 = vadd.f32 %v4911_v48, %v4839_v6  ;;  %v8064_v50 = vpop.f32.mrb[47].mxu1 }
0x776f   :  { %9075 = vtanh.f32 %v4915_v49  ;;  %v7142_v52 = vmul.f32 -1.442695, %v4915_v49 }
0x7771   :  { %9077 = vpow2.f32 %v7142_v52 }
0x7779   :  { %v9076_v51 = vpop.eup %9075 }
0x777a   :  { %4925 = vrot.lane.b32.xlu0 %v9076_v51, %s9270_s23 }
0x777b   :  { %v9078_v53 = vpop.eup %9077 }
0x777c   :  { %v4919_v54 = vadd.f32 1.0, %v9078_v53 }
0x777e   :  { %9079 = vrcp.f32 %v4919_v54 }
0x7788   :  { %v9080_v55 = vpop.eup %9079 }
0x7789   :  { %v4923_v58 = vmul.f32 %v9080_v55, %v4832_v39 }
0x77ec   :  { %v4926_v56 = vpop.permute.xlu0 %4925 }
0x77ed   :  { %v4928_v57 = vmul.f32 %v9080_v55, %v4926_v56 }
0x77ef   :  { %4930 = vrot.lane.b32.xlu1 %v4928_v57, %s9271_s24 }
0x7861   :  { %v4931_v59 = vpop.permute.xlu1 %4930 }
0x7862   :  { %v4933_v16 = vadd.f32 %v4931_v59, %v4923_v58  ;;  %v5243_v59 = vld [vmem:[#allocation2 + $0x10] sm:$0x1] }
0x7864   :  { %9081 = vtanh.f32 %v4933_v16 }
0x786e   :  { %v9082_v60 = vpop.eup %9081 }
0x786f   :  { %4936 = vrot.lane.b32.xlu0 %v9082_v60, %s9270_s23 }
0x78e1   :  { %v4937_v61 = vpop.permute.xlu0 %4936 }
0x78e2   :  { %v4939_v62 = vmul.f32 %v9080_v55, %v4937_v61 }
0x78e4   :  { %4942 = vrot.lane.b32.xlu1 %v4939_v62, %s9271_s24 }
0x7956   :  { %v4943_v63 = vpop.permute.xlu1 %4942 }
0x7957   :  { %8074 = vmatmul.mubr.msk.f32.vlgmr.msra.gmra.mrb[50].mxu0 %vm214_vm6, %v4943_v63 }
0x7958   :  { %8604 = vmatpush3.bf16.msra.mxu0 %v9858_v40  ;;  %8095 = vmatprep.mubr.msk.f32.mxu0 %vm9266_vm1, %v9267_v9 }
0x7959   :  { %8605 = vmatprep.subr.bf16.mxu0 %v9265_v8 }
0x795c   :  { %8607 = vmatpush3.bf16.msra.mxu0 %v9868_v43 }
0x795d   :  { %8614 = vmatprep.subr.bf16.mxu0 %v9265_v8 }
0x7a2a   :  { %v5012_v0 = vpop.f32.mrb[50].mxu0 }
0x7a2b   :  { %v5016_v1 = vadd.f32 %v5012_v0, %v4940_v19  ;;  %v8075_v2 = vpop.f32.mrb[51].mxu0 }
0x7a2d   :  { %9083 = vtanh.f32 %v5016_v1  ;;  %v7144_v4 = vmul.f32 -1.442695, %v5016_v1 }
0x7a2f   :  { %9085 = vpow2.f32 %v7144_v4 }
0x7a37   :  { %v9084_v3 = vpop.eup %9083 }
0x7a38   :  { %5026 = vrot.lane.b32.xlu0 %v9084_v3, %s9270_s23 }
0x7a39   :  { %v9086_v7 = vpop.eup %9085 }
0x7a3a   :  { %v5020_v10 = vadd.f32 1.0, %v9086_v7 }
0x7a3c   :  { %9087 = vrcp.f32 %v5020_v10 }
0x7a46   :  { %v9088_v11 = vpop.eup %9087 }
0x7a47   :  { %v5024_v29 = vmul.f32 %v9088_v11, %v4933_v16 }
0x7aaa   :  { %v5027_v12 = vpop.permute.xlu0 %5026 }
0x7aab   :  { %v5029_v24 = vmul.f32 %v9088_v11, %v5027_v12 }
0x7aad   :  { %5031 = vrot.lane.b32.xlu1 %v5029_v24, %s9271_s24 }
0x7b1f   :  { %v5032_v30 = vpop.permute.xlu1 %5031 }
0x7b20   :  { %v5034_v13 = vadd.f32 %v5032_v30, %v5024_v29  ;;  %v5344_v30 = vld [vmem:[#allocation2 + $0x11] sm:$0x1] }
0x7b22   :  { %9089 = vtanh.f32 %v5034_v13 }
0x7b2c   :  { %v9090_v14 = vpop.eup %9089 }
0x7b2d   :  { %5037 = vrot.lane.b32.xlu0 %v9090_v14, %s9270_s23 }
0x7b9f   :  { %v5038_v15 = vpop.permute.xlu0 %5037 }
0x7ba0   :  { %v5040_v17 = vmul.f32 %v9088_v11, %v5038_v15 }
0x7ba2   :  { %5043 = vrot.lane.b32.xlu1 %v5040_v17, %s9271_s24 }
0x7c14   :  { %v5044_v18 = vpop.permute.xlu1 %5043 }
0x7c15   :  { %8085 = vmatmul.mubr.msk.f32.vlgmr.msra.gmra.mrb[48].mxu1 %vm214_vm6, %v5044_v18 }
0x7c16   :  { %8610 = vmatpush3.bf16.msra.mxu1 %v9858_v40  ;;  %8106 = vmatprep.mubr.msk.f32.mxu1 %vm9266_vm1, %v9267_v9 }
0x7c17   :  { %8611 = vmatprep.subr.bf16.mxu1 %v9265_v8 }
0x7c1a   :  { %8613 = vmatpush3.bf16.msra.mxu1 %v9868_v43 }
0x7c1b   :  { %8620 = vmatprep.subr.bf16.mxu1 %v9265_v8 }
0x7ce8   :  { %v5113_v21 = vpop.f32.mrb[48].mxu1 }
0x7ce9   :  { %v5117_v5 = vadd.f32 %v5113_v21, %v5041_v20  ;;  %v8086_v45 = vpop.f32.mrb[49].mxu1 }
0x7ceb   :  { %9091 = vtanh.f32 %v5117_v5  ;;  %v7146_v23 = vmul.f32 -1.442695, %v5117_v5 }
0x7ced   :  { %9093 = vpow2.f32 %v7146_v23 }
0x7cf5   :  { %v9092_v47 = vpop.eup %9091 }
0x7cf6   :  { %5127 = vrot.lane.b32.xlu0 %v9092_v47, %s9270_s23 }
0x7cf7   :  { %v9094_v25 = vpop.eup %9093 }
0x7cf8   :  { %v5121_v26 = vadd.f32 1.0, %v9094_v25 }
0x7cfa   :  { %9095 = vrcp.f32 %v5121_v26 }
0x7d04   :  { %v9096_v27 = vpop.eup %9095 }
0x7d05   :  { %v5125_v32 = vmul.f32 %v9096_v27, %v5034_v13 }
0x7d68   :  { %v5128_v28 = vpop.permute.xlu0 %5127 }
0x7d69   :  { %v5130_v31 = vmul.f32 %v9096_v27, %v5128_v28 }
0x7d6b   :  { %5132 = vrot.lane.b32.xlu1 %v5130_v31, %s9271_s24 }
0x7ddd   :  { %v5133_v33 = vpop.permute.xlu1 %5132 }
0x7dde   :  { %v5135_v34 = vadd.f32 %v5133_v33, %v5125_v32  ;;  %v5445_v33 = vld [vmem:[#allocation2 + $0x12] sm:$0x1] }
0x7de0   :  { %9097 = vtanh.f32 %v5135_v34 }
0x7dea   :  { %v9098_v35 = vpop.eup %9097 }
0x7deb   :  { %5138 = vrot.lane.b32.xlu0 %v9098_v35, %s9270_s23 }
0x7e5d   :  { %v5139_v36 = vpop.permute.xlu0 %5138 }
0x7e5e   :  { %v5141_v37 = vmul.f32 %v9096_v27, %v5139_v36 }
0x7e60   :  { %5144 = vrot.lane.b32.xlu1 %v5141_v37, %s9271_s24 }
0x7ed2   :  { %v5145_v22 = vpop.permute.xlu1 %5144 }
0x7ed3   :  { %8096 = vmatmul.mubr.msk.f32.vlgmr.msra.gmra.mrb[52].mxu0 %vm214_vm6, %v5145_v22 }
0x7ed4   :  { %8616 = vmatpush3.bf16.msra.mxu0 %v9858_v40  ;;  %8117 = vmatprep.mubr.msk.f32.mxu0 %vm9266_vm1, %v9267_v9 }
0x7ed5   :  { %8617 = vmatprep.subr.bf16.mxu0 %v9265_v8 }
0x7ed8   :  { %8619 = vmatpush3.bf16.msra.mxu0 %v9868_v43 }
0x7ed9   :  { %8626 = vmatprep.subr.bf16.mxu0 %v9265_v8 }
0x7fa6   :  { %v5214_v39 = vpop.f32.mrb[52].mxu0 }
0x7fa7   :  { %v5218_v41 = vadd.f32 %v5214_v39, %v5142_v38  ;;  %v8097_v42 = vpop.f32.mrb[53].mxu0 }
0x7fa9   :  { %9099 = vtanh.f32 %v5218_v41  ;;  %v7148_v46 = vmul.f32 -1.442695, %v5218_v41 }
0x7fab   :  { %9101 = vpow2.f32 %v7148_v46 }
0x7fb3   :  { %v9100_v44 = vpop.eup %9099 }
0x7fb4   :  { %5228 = vrot.lane.b32.xlu0 %v9100_v44, %s9270_s23 }
0x7fb5   :  { %v9102_v6 = vpop.eup %9101 }
0x7fb6   :  { %v5222_v48 = vadd.f32 1.0, %v9102_v6 }
0x7fb8   :  { %9103 = vrcp.f32 %v5222_v48 }
0x7fc2   :  { %v9104_v49 = vpop.eup %9103 }
0x7fc3   :  { %v5226_v52 = vmul.f32 %v9104_v49, %v5135_v34 }
0x8026   :  { %v5229_v50 = vpop.permute.xlu0 %5228 }
0x8027   :  { %v5231_v51 = vmul.f32 %v9104_v49, %v5229_v50 }
0x8029   :  { %5233 = vrot.lane.b32.xlu1 %v5231_v51, %s9271_s24 }
0x809b   :  { %v5234_v53 = vpop.permute.xlu1 %5233 }
0x809c   :  { %v5236_v54 = vadd.f32 %v5234_v53, %v5226_v52  ;;  %v5546_v53 = vld [vmem:[#allocation2 + $0x13] sm:$0x1] }
0x809e   :  { %9105 = vtanh.f32 %v5236_v54 }
0x80a8   :  { %v9106_v55 = vpop.eup %9105 }
0x80a9   :  { %5239 = vrot.lane.b32.xlu0 %v9106_v55, %s9270_s23 }
0x811b   :  { %v5240_v56 = vpop.permute.xlu0 %5239 }
0x811c   :  { %v5242_v57 = vmul.f32 %v9104_v49, %v5240_v56 }
0x811e   :  { %5245 = vrot.lane.b32.xlu1 %v5242_v57, %s9271_s24 }
0x8190   :  { %v5246_v58 = vpop.permute.xlu1 %5245 }
0x8191   :  { %8107 = vmatmul.mubr.msk.f32.vlgmr.msra.gmra.mrb[50].mxu1 %vm214_vm6, %v5246_v58 }
0x8192   :  { %8622 = vmatpush3.bf16.msra.mxu1 %v9858_v40  ;;  %8128 = vmatprep.mubr.msk.f32.mxu1 %vm9266_vm1, %v9267_v9 }
0x8193   :  { %8623 = vmatprep.subr.bf16.mxu1 %v9265_v8 }
0x8196   :  { %8625 = vmatpush3.bf16.msra.mxu1 %v9868_v43 }
0x8197   :  { %8632 = vmatprep.subr.bf16.mxu1 %v9265_v8 }
0x8264   :  { %v5315_v16 = vpop.f32.mrb[50].mxu1 }
0x8265   :  { %v5319_v60 = vadd.f32 %v5315_v16, %v5243_v59  ;;  %v8108_v61 = vpop.f32.mrb[51].mxu1 }
0x8267   :  { %9107 = vtanh.f32 %v5319_v60  ;;  %v7150_v63 = vmul.f32 -1.442695, %v5319_v60 }
0x8269   :  { %9109 = vpow2.f32 %v7150_v63 }
0x8271   :  { %v9108_v62 = vpop.eup %9107 }
0x8272   :  { %5329 = vrot.lane.b32.xlu0 %v9108_v62, %s9270_s23 }
0x8273   :  { %v9110_v19 = vpop.eup %9109 }
0x8274   :  { %v5323_v0 = vadd.f32 1.0, %v9110_v19 }
0x8276   :  { %9111 = vrcp.f32 %v5323_v0 }
0x8280   :  { %v9112_v1 = vpop.eup %9111 }
0x8281   :  { %v5327_v4 = vmul.f32 %v9112_v1, %v5236_v54 }
0x82e4   :  { %v5330_v2 = vpop.permute.xlu0 %5329 }
0x82e5   :  { %v5332_v3 = vmul.f32 %v9112_v1, %v5330_v2 }
0x82e7   :  { %5334 = vrot.lane.b32.xlu1 %v5332_v3, %s9271_s24 }
0x8359   :  { %v5335_v7 = vpop.permute.xlu1 %5334 }
0x835a   :  { %v5337_v10 = vadd.f32 %v5335_v7, %v5327_v4  ;;  %v5647_v7 = vld [vmem:[#allocation2 + $0x14] sm:$0x1] }
0x835c   :  { %9113 = vtanh.f32 %v5337_v10 }
0x8366   :  { %v9114_v11 = vpop.eup %9113 }
0x8367   :  { %5340 = vrot.lane.b32.xlu0 %v9114_v11, %s9270_s23 }
0x83d9   :  { %v5341_v12 = vpop.permute.xlu0 %5340 }
0x83da   :  { %v5343_v24 = vmul.f32 %v9112_v1, %v5341_v12 }
0x83dc   :  { %5346 = vrot.lane.b32.xlu1 %v5343_v24, %s9271_s24 }
0x844e   :  { %v5347_v29 = vpop.permute.xlu1 %5346 }
0x844f   :  { %8118 = vmatmul.mubr.msk.f32.vlgmr.msra.gmra.mrb[54].mxu0 %vm214_vm6, %v5347_v29 }
0x8450   :  { %8628 = vmatpush3.bf16.msra.mxu0 %v9858_v40  ;;  %8139 = vmatprep.mubr.msk.f32.mxu0 %vm9266_vm1, %v9267_v9 }
0x8451   :  { %8629 = vmatprep.subr.bf16.mxu0 %v9265_v8 }
0x8454   :  { %8631 = vmatpush3.bf16.msra.mxu0 %v9868_v43 }
0x8455   :  { %8638 = vmatprep.subr.bf16.mxu0 %v9265_v8 }
0x8522   :  { %v5416_v13 = vpop.f32.mrb[54].mxu0 }
0x8523   :  { %v5420_v14 = vadd.f32 %v5416_v13, %v5344_v30  ;;  %v8119_v15 = vpop.f32.mrb[55].mxu0 }
0x8525   :  { %9115 = vtanh.f32 %v5420_v14  ;;  %v7152_v18 = vmul.f32 -1.442695, %v5420_v14 }
0x8527   :  { %9117 = vpow2.f32 %v7152_v18 }
0x852f   :  { %v9116_v17 = vpop.eup %9115 }
0x8530   :  { %5430 = vrot.lane.b32.xlu0 %v9116_v17, %s9270_s23 }
0x8531   :  { %v9118_v20 = vpop.eup %9117 }
0x8532   :  { %v5424_v21 = vadd.f32 1.0, %v9118_v20 }
0x8534   :  { %9119 = vrcp.f32 %v5424_v21 }
0x853e   :  { %v9120_v5 = vpop.eup %9119 }
0x853f   :  { %v5428_v23 = vmul.f32 %v9120_v5, %v5337_v10 }
0x85a2   :  { %v5431_v45 = vpop.permute.xlu0 %5430 }
0x85a3   :  { %v5433_v47 = vmul.f32 %v9120_v5, %v5431_v45 }
0x85a5   :  { %5435 = vrot.lane.b32.xlu1 %v5433_v47, %s9271_s24 }
0x8617   :  { %v5436_v25 = vpop.permute.xlu1 %5435 }
0x8618   :  { %v5438_v26 = vadd.f32 %v5436_v25, %v5428_v23  ;;  %v5748_v25 = vld [vmem:[#allocation2 + $0x15] sm:$0x1] }
0x861a   :  { %9121 = vtanh.f32 %v5438_v26 }
0x8624   :  { %v9122_v27 = vpop.eup %9121 }
0x8625   :  { %5441 = vrot.lane.b32.xlu0 %v9122_v27, %s9270_s23 }
0x8697   :  { %v5442_v28 = vpop.permute.xlu0 %5441 }
0x8698   :  { %v5444_v31 = vmul.f32 %v9120_v5, %v5442_v28 }
0x869a   :  { %5447 = vrot.lane.b32.xlu1 %v5444_v31, %s9271_s24 }
0x870c   :  { %v5448_v32 = vpop.permute.xlu1 %5447 }
0x870d   :  { %8129 = vmatmul.mubr.msk.f32.vlgmr.msra.gmra.mrb[52].mxu1 %vm214_vm6, %v5448_v32 }
0x870e   :  { %8634 = vmatpush3.bf16.msra.mxu1 %v9858_v40  ;;  %8150 = vmatprep.mubr.msk.f32.mxu1 %vm9266_vm1, %v9267_v9 }
0x870f   :  { %8635 = vmatprep.subr.bf16.mxu1 %v9265_v8 }
0x8712   :  { %8637 = vmatpush3.bf16.msra.mxu1 %v9868_v43 }
0x8713   :  { %8644 = vmatprep.subr.bf16.mxu1 %v9265_v8 }
0x87e0   :  { %v5517_v34 = vpop.f32.mrb[52].mxu1 }
0x87e1   :  { %v5521_v35 = vadd.f32 %v5517_v34, %v5445_v33  ;;  %v8130_v36 = vpop.f32.mrb[53].mxu1 }
0x87e3   :  { %9123 = vtanh.f32 %v5521_v35  ;;  %v7154_v22 = vmul.f32 -1.442695, %v5521_v35 }
0x87e5   :  { %9125 = vpow2.f32 %v7154_v22 }
0x87ed   :  { %v9124_v37 = vpop.eup %9123 }
0x87ee   :  { %5531 = vrot.lane.b32.xlu0 %v9124_v37, %s9270_s23 }
0x87ef   :  { %v9126_v38 = vpop.eup %9125 }
0x87f0   :  { %v5525_v39 = vadd.f32 1.0, %v9126_v38 }
0x87f2   :  { %9127 = vrcp.f32 %v5525_v39 }
0x87fc   :  { %v9128_v41 = vpop.eup %9127 }
0x87fd   :  { %v5529_v46 = vmul.f32 %v9128_v41, %v5438_v26 }
0x8860   :  { %v5532_v42 = vpop.permute.xlu0 %5531 }
0x8861   :  { %v5534_v44 = vmul.f32 %v9128_v41, %v5532_v42 }
0x8863   :  { %5536 = vrot.lane.b32.xlu1 %v5534_v44, %s9271_s24 }
0x88d5   :  { %v5537_v6 = vpop.permute.xlu1 %5536 }
0x88d6   :  { %v5539_v48 = vadd.f32 %v5537_v6, %v5529_v46  ;;  %v5849_v6 = vld [vmem:[#allocation2 + $0x16] sm:$0x1] }
0x88d8   :  { %9129 = vtanh.f32 %v5539_v48 }
0x88e2   :  { %v9130_v49 = vpop.eup %9129 }
0x88e3   :  { %5542 = vrot.lane.b32.xlu0 %v9130_v49, %s9270_s23 }
0x8955   :  { %v5543_v50 = vpop.permute.xlu0 %5542 }
0x8956   :  { %v5545_v51 = vmul.f32 %v9128_v41, %v5543_v50 }
0x8958   :  { %5548 = vrot.lane.b32.xlu1 %v5545_v51, %s9271_s24 }
0x89ca   :  { %v5549_v52 = vpop.permute.xlu1 %5548 }
0x89cb   :  { %8140 = vmatmul.mubr.msk.f32.vlgmr.msra.gmra.mrb[56].mxu0 %vm214_vm6, %v5549_v52 }
0x89cc   :  { %8640 = vmatpush3.bf16.msra.mxu0 %v9858_v40  ;;  %8161 = vmatprep.mubr.msk.f32.mxu0 %vm9266_vm1, %v9267_v9 }
0x89cd   :  { %8641 = vmatprep.subr.bf16.mxu0 %v9265_v8 }
0x89d0   :  { %8643 = vmatpush3.bf16.msra.mxu0 %v9868_v43 }
0x89d1   :  { %8650 = vmatprep.subr.bf16.mxu0 %v9265_v8 }
0x8a9e   :  { %v5618_v54 = vpop.f32.mrb[56].mxu0 }
0x8a9f   :  { %v5622_v55 = vadd.f32 %v5618_v54, %v5546_v53  ;;  %v8141_v56 = vpop.f32.mrb[57].mxu0 }
0x8aa1   :  { %9131 = vtanh.f32 %v5622_v55  ;;  %v7156_v58 = vmul.f32 -1.442695, %v5622_v55 }
0x8aa3   :  { %9133 = vpow2.f32 %v7156_v58 }
0x8aab   :  { %v9132_v57 = vpop.eup %9131 }
0x8aac   :  { %5632 = vrot.lane.b32.xlu0 %v9132_v57, %s9270_s23 }
0x8aad   :  { %v9134_v59 = vpop.eup %9133 }
0x8aae   :  { %v5626_v16 = vadd.f32 1.0, %v9134_v59 }
0x8ab0   :  { %9135 = vrcp.f32 %v5626_v16 }
0x8aba   :  { %v9136_v60 = vpop.eup %9135 }
0x8abb   :  { %v5630_v63 = vmul.f32 %v9136_v60, %v5539_v48 }
0x8b1e   :  { %v5633_v61 = vpop.permute.xlu0 %5632 }
0x8b1f   :  { %v5635_v62 = vmul.f32 %v9136_v60, %v5633_v61 }
0x8b21   :  { %5637 = vrot.lane.b32.xlu1 %v5635_v62, %s9271_s24 }
0x8b93   :  { %v5638_v19 = vpop.permute.xlu1 %5637 }
0x8b94   :  { %v5640_v0 = vadd.f32 %v5638_v19, %v5630_v63  ;;  %v5950_v19 = vld [vmem:[#allocation2 + $0x17] sm:$0x1] }
0x8b96   :  { %9137 = vtanh.f32 %v5640_v0 }
0x8ba0   :  { %v9138_v1 = vpop.eup %9137 }
0x8ba1   :  { %5643 = vrot.lane.b32.xlu0 %v9138_v1, %s9270_s23 }
0x8c13   :  { %v5644_v2 = vpop.permute.xlu0 %5643 }
0x8c14   :  { %v5646_v3 = vmul.f32 %v9136_v60, %v5644_v2 }
0x8c16   :  { %5649 = vrot.lane.b32.xlu1 %v5646_v3, %s9271_s24 }
0x8c88   :  { %v5650_v4 = vpop.permute.xlu1 %5649 }
0x8c89   :  { %8151 = vmatmul.mubr.msk.f32.vlgmr.msra.gmra.mrb[54].mxu1 %vm214_vm6, %v5650_v4 }
0x8c8a   :  { %8646 = vmatpush3.bf16.msra.mxu1 %v9858_v40  ;;  %8172 = vmatprep.mubr.msk.f32.mxu1 %vm9266_vm1, %v9267_v9 }
0x8c8b   :  { %8647 = vmatprep.subr.bf16.mxu1 %v9265_v8 }
0x8c8e   :  { %8649 = vmatpush3.bf16.msra.mxu1 %v9868_v43 }
0x8c8f   :  { %8656 = vmatprep.subr.bf16.mxu1 %v9265_v8 }
0x8d5c   :  { %v5719_v10 = vpop.f32.mrb[54].mxu1 }
0x8d5d   :  { %v5723_v11 = vadd.f32 %v5719_v10, %v5647_v7  ;;  %v8152_v12 = vpop.f32.mrb[55].mxu1 }
0x8d5f   :  { %9139 = vtanh.f32 %v5723_v11  ;;  %v7158_v29 = vmul.f32 -1.442695, %v5723_v11 }
0x8d61   :  { %9141 = vpow2.f32 %v7158_v29 }
0x8d69   :  { %v9140_v24 = vpop.eup %9139 }
0x8d6a   :  { %5733 = vrot.lane.b32.xlu0 %v9140_v24, %s9270_s23 }
0x8d6b   :  { %v9142_v30 = vpop.eup %9141 }
0x8d6c   :  { %v5727_v13 = vadd.f32 1.0, %v9142_v30 }
0x8d6e   :  { %9143 = vrcp.f32 %v5727_v13 }
0x8d78   :  { %v9144_v14 = vpop.eup %9143 }
0x8d79   :  { %v5731_v18 = vmul.f32 %v9144_v14, %v5640_v0 }
0x8ddc   :  { %v5734_v15 = vpop.permute.xlu0 %5733 }
0x8ddd   :  { %v5736_v17 = vmul.f32 %v9144_v14, %v5734_v15 }
0x8ddf   :  { %5738 = vrot.lane.b32.xlu1 %v5736_v17, %s9271_s24 }
0x8e51   :  { %v5739_v20 = vpop.permute.xlu1 %5738 }
0x8e52   :  { %v5741_v21 = vadd.f32 %v5739_v20, %v5731_v18  ;;  %v6051_v20 = vld [vmem:[#allocation2 + $0x18] sm:$0x1] }
0x8e54   :  { %9145 = vtanh.f32 %v5741_v21 }
0x8e5e   :  { %v9146_v5 = vpop.eup %9145 }
0x8e5f   :  { %5744 = vrot.lane.b32.xlu0 %v9146_v5, %s9270_s23 }
0x8ed1   :  { %v5745_v45 = vpop.permute.xlu0 %5744 }
0x8ed2   :  { %v5747_v47 = vmul.f32 %v9144_v14, %v5745_v45 }
0x8ed4   :  { %5750 = vrot.lane.b32.xlu1 %v5747_v47, %s9271_s24 }
0x8f46   :  { %v5751_v23 = vpop.permute.xlu1 %5750 }
0x8f47   :  { %8162 = vmatmul.mubr.msk.f32.vlgmr.msra.gmra.mrb[58].mxu0 %vm214_vm6, %v5751_v23 }
0x8f48   :  { %8652 = vmatpush3.bf16.msra.mxu0 %v9858_v40  ;;  %8183 = vmatprep.mubr.msk.f32.mxu0 %vm9266_vm1, %v9267_v9 }
0x8f49   :  { %8653 = vmatprep.subr.bf16.mxu0 %v9265_v8 }
0x8f4c   :  { %8655 = vmatpush3.bf16.msra.mxu0 %v9868_v43 }
0x8f4d   :  { %8662 = vmatprep.subr.bf16.mxu0 %v9265_v8 }
0x901a   :  { %v5820_v26 = vpop.f32.mrb[58].mxu0 }
0x901b   :  { %v5824_v27 = vadd.f32 %v5820_v26, %v5748_v25  ;;  %v8163_v28 = vpop.f32.mrb[59].mxu0 }
0x901d   :  { %9147 = vtanh.f32 %v5824_v27  ;;  %v7160_v32 = vmul.f32 -1.442695, %v5824_v27 }
0x901f   :  { %9149 = vpow2.f32 %v7160_v32 }
0x9027   :  { %v9148_v31 = vpop.eup %9147 }
0x9028   :  { %5834 = vrot.lane.b32.xlu0 %v9148_v31, %s9270_s23 }
0x9029   :  { %v9150_v33 = vpop.eup %9149 }
0x902a   :  { %v5828_v34 = vadd.f32 1.0, %v9150_v33 }
0x902c   :  { %9151 = vrcp.f32 %v5828_v34 }
0x9036   :  { %v9152_v35 = vpop.eup %9151 }
0x9037   :  { %v5832_v22 = vmul.f32 %v9152_v35, %v5741_v21 }
0x909a   :  { %v5835_v36 = vpop.permute.xlu0 %5834 }
0x909b   :  { %v5837_v37 = vmul.f32 %v9152_v35, %v5835_v36 }
0x909d   :  { %5839 = vrot.lane.b32.xlu1 %v5837_v37, %s9271_s24 }
0x910f   :  { %v5840_v38 = vpop.permute.xlu1 %5839 }
0x9110   :  { %v5842_v39 = vadd.f32 %v5840_v38, %v5832_v22  ;;  %v6152_v38 = vld [vmem:[#allocation2 + $0x19] sm:$0x1] }
0x9112   :  { %9153 = vtanh.f32 %v5842_v39 }
0x911c   :  { %v9154_v41 = vpop.eup %9153 }
0x911d   :  { %5845 = vrot.lane.b32.xlu0 %v9154_v41, %s9270_s23 }
0x918f   :  { %v5846_v42 = vpop.permute.xlu0 %5845 }
0x9190   :  { %v5848_v44 = vmul.f32 %v9152_v35, %v5846_v42 }
0x9192   :  { %5851 = vrot.lane.b32.xlu1 %v5848_v44, %s9271_s24 }
0x9204   :  { %v5852_v46 = vpop.permute.xlu1 %5851 }
0x9205   :  { %8173 = vmatmul.mubr.msk.f32.vlgmr.msra.gmra.mrb[56].mxu1 %vm214_vm6, %v5852_v46 }
0x9206   :  { %8658 = vmatpush3.bf16.msra.mxu1 %v9858_v40  ;;  %8194 = vmatprep.mubr.msk.f32.mxu1 %vm9266_vm1, %v9267_v9 }
0x9207   :  { %8659 = vmatprep.subr.bf16.mxu1 %v9265_v8 }
0x920a   :  { %8661 = vmatpush3.bf16.msra.mxu1 %v9868_v43 }
0x920b   :  { %8668 = vmatprep.subr.bf16.mxu1 %v9265_v8 }
0x92d8   :  { %v5921_v48 = vpop.f32.mrb[56].mxu1 }
0x92d9   :  { %v5925_v49 = vadd.f32 %v5921_v48, %v5849_v6  ;;  %v8174_v50 = vpop.f32.mrb[57].mxu1 }
0x92db   :  { %9155 = vtanh.f32 %v5925_v49  ;;  %v7162_v52 = vmul.f32 -1.442695, %v5925_v49 }
0x92dd   :  { %9157 = vpow2.f32 %v7162_v52 }
0x92e5   :  { %v9156_v51 = vpop.eup %9155 }
0x92e6   :  { %5935 = vrot.lane.b32.xlu0 %v9156_v51, %s9270_s23 }
0x92e7   :  { %v9158_v53 = vpop.eup %9157 }
0x92e8   :  { %v5929_v54 = vadd.f32 1.0, %v9158_v53 }
0x92ea   :  { %9159 = vrcp.f32 %v5929_v54 }
0x92f4   :  { %v9160_v55 = vpop.eup %9159 }
0x92f5   :  { %v5933_v58 = vmul.f32 %v9160_v55, %v5842_v39 }
0x9358   :  { %v5936_v56 = vpop.permute.xlu0 %5935 }
0x9359   :  { %v5938_v57 = vmul.f32 %v9160_v55, %v5936_v56 }
0x935b   :  { %5940 = vrot.lane.b32.xlu1 %v5938_v57, %s9271_s24 }
0x93cd   :  { %v5941_v59 = vpop.permute.xlu1 %5940 }
0x93ce   :  { %v5943_v16 = vadd.f32 %v5941_v59, %v5933_v58  ;;  %v6253_v59 = vld [vmem:[#allocation2 + $0x1a] sm:$0x1] }
0x93d0   :  { %9161 = vtanh.f32 %v5943_v16 }
0x93da   :  { %v9162_v60 = vpop.eup %9161 }
0x93db   :  { %5946 = vrot.lane.b32.xlu0 %v9162_v60, %s9270_s23 }
0x944d   :  { %v5947_v61 = vpop.permute.xlu0 %5946 }
0x944e   :  { %v5949_v62 = vmul.f32 %v9160_v55, %v5947_v61 }
0x9450   :  { %5952 = vrot.lane.b32.xlu1 %v5949_v62, %s9271_s24 }
0x94c2   :  { %v5953_v63 = vpop.permute.xlu1 %5952 }
0x94c3   :  { %8184 = vmatmul.mubr.msk.f32.vlgmr.msra.gmra.mrb[60].mxu0 %vm214_vm6, %v5953_v63 }
0x94c4   :  { %8664 = vmatpush3.bf16.msra.mxu0 %v9858_v40  ;;  %8205 = vmatprep.mubr.msk.f32.mxu0 %vm9266_vm1, %v9267_v9 }
0x94c5   :  { %8665 = vmatprep.subr.bf16.mxu0 %v9265_v8 }
0x94c8   :  { %8667 = vmatpush3.bf16.msra.mxu0 %v9868_v43 }
0x94c9   :  { %8674 = vmatprep.subr.bf16.mxu0 %v9265_v8 }
0x9596   :  { %v6022_v0 = vpop.f32.mrb[60].mxu0 }
0x9597   :  { %v6026_v1 = vadd.f32 %v6022_v0, %v5950_v19  ;;  %v8185_v2 = vpop.f32.mrb[61].mxu0 }
0x9599   :  { %9163 = vtanh.f32 %v6026_v1  ;;  %v7164_v4 = vmul.f32 -1.442695, %v6026_v1 }
0x959b   :  { %9165 = vpow2.f32 %v7164_v4 }
0x95a3   :  { %v9164_v3 = vpop.eup %9163 }
0x95a4   :  { %6036 = vrot.lane.b32.xlu0 %v9164_v3, %s9270_s23 }
0x95a5   :  { %v9166_v7 = vpop.eup %9165 }
0x95a6   :  { %v6030_v10 = vadd.f32 1.0, %v9166_v7 }
0x95a8   :  { %9167 = vrcp.f32 %v6030_v10 }
0x95b2   :  { %v9168_v11 = vpop.eup %9167 }
0x95b3   :  { %v6034_v29 = vmul.f32 %v9168_v11, %v5943_v16 }
0x9616   :  { %v6037_v12 = vpop.permute.xlu0 %6036 }
0x9617   :  { %v6039_v24 = vmul.f32 %v9168_v11, %v6037_v12 }
0x9619   :  { %6041 = vrot.lane.b32.xlu1 %v6039_v24, %s9271_s24 }
0x968b   :  { %v6042_v30 = vpop.permute.xlu1 %6041 }
0x968c   :  { %v6044_v13 = vadd.f32 %v6042_v30, %v6034_v29  ;;  %v6354_v30 = vld [vmem:[#allocation2 + $0x1b] sm:$0x1] }
0x968e   :  { %9169 = vtanh.f32 %v6044_v13 }
0x9698   :  { %v9170_v14 = vpop.eup %9169 }
0x9699   :  { %6047 = vrot.lane.b32.xlu0 %v9170_v14, %s9270_s23 }
0x970b   :  { %v6048_v15 = vpop.permute.xlu0 %6047 }
0x970c   :  { %v6050_v17 = vmul.f32 %v9168_v11, %v6048_v15 }
0x970e   :  { %6053 = vrot.lane.b32.xlu1 %v6050_v17, %s9271_s24 }
0x9780   :  { %v6054_v18 = vpop.permute.xlu1 %6053 }
0x9781   :  { %8195 = vmatmul.mubr.msk.f32.vlgmr.msra.gmra.mrb[58].mxu1 %vm214_vm6, %v6054_v18 }
0x9782   :  { %8670 = vmatpush3.bf16.msra.mxu1 %v9858_v40  ;;  %8216 = vmatprep.mubr.msk.f32.mxu1 %vm9266_vm1, %v9267_v9 }
0x9783   :  { %8671 = vmatprep.subr.bf16.mxu1 %v9265_v8 }
0x9786   :  { %8673 = vmatpush3.bf16.msra.mxu1 %v9868_v43 }
0x9787   :  { %8680 = vmatprep.subr.bf16.mxu1 %v9265_v8 }
0x9854   :  { %v6123_v21 = vpop.f32.mrb[58].mxu1 }
0x9855   :  { %v6127_v5 = vadd.f32 %v6123_v21, %v6051_v20  ;;  %v8196_v45 = vpop.f32.mrb[59].mxu1 }
0x9857   :  { %9171 = vtanh.f32 %v6127_v5  ;;  %v7166_v23 = vmul.f32 -1.442695, %v6127_v5 }
0x9859   :  { %9173 = vpow2.f32 %v7166_v23 }
0x9861   :  { %v9172_v47 = vpop.eup %9171 }
0x9862   :  { %6137 = vrot.lane.b32.xlu0 %v9172_v47, %s9270_s23 }
0x9863   :  { %v9174_v25 = vpop.eup %9173 }
0x9864   :  { %v6131_v26 = vadd.f32 1.0, %v9174_v25 }
0x9866   :  { %9175 = vrcp.f32 %v6131_v26 }
0x9870   :  { %v9176_v27 = vpop.eup %9175 }
0x9871   :  { %v6135_v32 = vmul.f32 %v9176_v27, %v6044_v13 }
0x98d4   :  { %v6138_v28 = vpop.permute.xlu0 %6137 }
0x98d5   :  { %v6140_v31 = vmul.f32 %v9176_v27, %v6138_v28 }
0x98d7   :  { %6142 = vrot.lane.b32.xlu1 %v6140_v31, %s9271_s24 }
0x9949   :  { %v6143_v33 = vpop.permute.xlu1 %6142 }
0x994a   :  { %v6145_v34 = vadd.f32 %v6143_v33, %v6135_v32  ;;  %v6455_v33 = vld [vmem:[#allocation2 + $0x1c] sm:$0x1] }
0x994c   :  { %9177 = vtanh.f32 %v6145_v34 }
0x9956   :  { %v9178_v35 = vpop.eup %9177 }
0x9957   :  { %6148 = vrot.lane.b32.xlu0 %v9178_v35, %s9270_s23 }
0x99c9   :  { %v6149_v36 = vpop.permute.xlu0 %6148 }
0x99ca   :  { %v6151_v37 = vmul.f32 %v9176_v27, %v6149_v36 }
0x99cc   :  { %6154 = vrot.lane.b32.xlu1 %v6151_v37, %s9271_s24 }
0x9a3e   :  { %v6155_v22 = vpop.permute.xlu1 %6154 }
0x9a3f   :  { %8206 = vmatmul.mubr.msk.f32.vlgmr.msra.gmra.mrb[62].mxu0 %vm214_vm6, %v6155_v22 }
0x9a40   :  { %8676 = vmatpush3.bf16.msra.mxu0 %v9858_v40  ;;  %8227 = vmatprep.mubr.msk.f32.mxu0 %vm9266_vm1, %v9267_v9 }
0x9a41   :  { %8677 = vmatprep.subr.bf16.mxu0 %v9265_v8 }
0x9a44   :  { %8679 = vmatpush3.bf16.msra.mxu0 %v9868_v43 }
0x9a45   :  { %8686 = vmatprep.subr.bf16.mxu0 %v9265_v8 }
0x9b12   :  { %v6224_v39 = vpop.f32.mrb[62].mxu0 }
0x9b13   :  { %v6228_v41 = vadd.f32 %v6224_v39, %v6152_v38  ;;  %v8207_v42 = vpop.f32.mrb[63].mxu0 }
0x9b15   :  { %9179 = vtanh.f32 %v6228_v41  ;;  %v7168_v46 = vmul.f32 -1.442695, %v6228_v41 }
0x9b17   :  { %9181 = vpow2.f32 %v7168_v46 }
0x9b1f   :  { %v9180_v44 = vpop.eup %9179 }
0x9b20   :  { %6238 = vrot.lane.b32.xlu0 %v9180_v44, %s9270_s23 }
0x9b21   :  { %v9182_v6 = vpop.eup %9181 }
0x9b22   :  { %v6232_v48 = vadd.f32 1.0, %v9182_v6 }
0x9b24   :  { %9183 = vrcp.f32 %v6232_v48 }
0x9b2e   :  { %v9184_v49 = vpop.eup %9183 }
0x9b2f   :  { %v6236_v52 = vmul.f32 %v9184_v49, %v6145_v34 }
0x9b92   :  { %v6239_v50 = vpop.permute.xlu0 %6238 }
0x9b93   :  { %v6241_v51 = vmul.f32 %v9184_v49, %v6239_v50 }
0x9b95   :  { %6243 = vrot.lane.b32.xlu1 %v6241_v51, %s9271_s24 }
0x9c07   :  { %v6244_v53 = vpop.permute.xlu1 %6243 }
0x9c08   :  { %v6246_v54 = vadd.f32 %v6244_v53, %v6236_v52  ;;  %v6556_v53 = vld [vmem:[#allocation2 + $0x1d] sm:$0x1] }
0x9c0a   :  { %9185 = vtanh.f32 %v6246_v54 }
0x9c14   :  { %v9186_v55 = vpop.eup %9185 }
0x9c15   :  { %6249 = vrot.lane.b32.xlu0 %v9186_v55, %s9270_s23 }
0x9c87   :  { %v6250_v56 = vpop.permute.xlu0 %6249 }
0x9c88   :  { %v6252_v57 = vmul.f32 %v9184_v49, %v6250_v56 }
0x9c8a   :  { %6255 = vrot.lane.b32.xlu1 %v6252_v57, %s9271_s24 }
0x9cfc   :  { %v6256_v58 = vpop.permute.xlu1 %6255 }
0x9cfd   :  { %8217 = vmatmul.mubr.msk.f32.vlgmr.msra.gmra.mrb[60].mxu1 %vm214_vm6, %v6256_v58 }
0x9cfe   :  { %8682 = vmatpush3.bf16.msra.mxu1 %v9858_v40  ;;  %8238 = vmatprep.mubr.msk.f32.mxu1 %vm9266_vm1, %v9267_v9 }
0x9cff   :  { %8683 = vmatprep.subr.bf16.mxu1 %v9265_v8 }
0x9d02   :  { %8685 = vmatpush3.bf16.msra.mxu1 %v9868_v43 }
0x9d03   :  { %8692 = vmatprep.subr.bf16.mxu1 %v9265_v8 }
0x9dd0   :  { %v6325_v16 = vpop.f32.mrb[60].mxu1 }
0x9dd1   :  { %v6329_v60 = vadd.f32 %v6325_v16, %v6253_v59  ;;  %v8218_v61 = vpop.f32.mrb[61].mxu1 }
0x9dd3   :  { %9187 = vtanh.f32 %v6329_v60  ;;  %v7170_v63 = vmul.f32 -1.442695, %v6329_v60 }
0x9dd5   :  { %9189 = vpow2.f32 %v7170_v63 }
0x9ddd   :  { %v9188_v62 = vpop.eup %9187 }
0x9dde   :  { %6339 = vrot.lane.b32.xlu0 %v9188_v62, %s9270_s23 }
0x9ddf   :  { %v9190_v19 = vpop.eup %9189 }
0x9de0   :  { %v6333_v0 = vadd.f32 1.0, %v9190_v19 }
0x9de2   :  { %9191 = vrcp.f32 %v6333_v0 }
0x9dec   :  { %v9192_v1 = vpop.eup %9191 }
0x9ded   :  { %v6337_v4 = vmul.f32 %v9192_v1, %v6246_v54 }
0x9e50   :  { %v6340_v2 = vpop.permute.xlu0 %6339 }
0x9e51   :  { %v6342_v3 = vmul.f32 %v9192_v1, %v6340_v2 }
0x9e53   :  { %6344 = vrot.lane.b32.xlu1 %v6342_v3, %s9271_s24  ;;  %v6657_v3 = vld [vmem:[#allocation2 + $0x1e] sm:$0x1] }
0x9ec5   :  { %v6345_v7 = vpop.permute.xlu1 %6344 }
0x9ec6   :  { %v6347_v10 = vadd.f32 %v6345_v7, %v6337_v4 }
0x9ec8   :  { %9193 = vtanh.f32 %v6347_v10 }
0x9ed2   :  { %v9194_v11 = vpop.eup %9193 }
0x9ed3   :  { %6350 = vrot.lane.b32.xlu0 %v9194_v11, %s9270_s23 }
0x9f45   :  { %v6351_v12 = vpop.permute.xlu0 %6350 }
0x9f46   :  { %v6353_v24 = vmul.f32 %v9192_v1, %v6351_v12 }
0x9f48   :  { %6356 = vrot.lane.b32.xlu1 %v6353_v24, %s9271_s24 }
0x9fba   :  { %v6357_v29 = vpop.permute.xlu1 %6356 }
0x9fbb   :  { %8228 = vmatmul.mubr.msk.f32.vlgmr.msra.gmra.mrb[64].mxu0 %vm214_vm6, %v6357_v29 }
0x9fbc   :  { %8688 = vmatpush3.bf16.msra.mxu0 %v9858_v40  ;;  %8249 = vmatprep.mubr.msk.f32.mxu0 %vm9266_vm1, %v9267_v9 }
0x9fbd   :  { %8689 = vmatprep.subr.bf16.mxu0 %v9265_v8 }
0x9fc0   :  { %8691 = vmatpush3.bf16.msra.mxu0 %v9868_v43 }
0x9fc1   :  { %8698 = vmatprep.subr.bf16.mxu0 %v9265_v8 }
0xa08e   :  { %v6426_v13 = vpop.f32.mrb[64].mxu0 }
0xa08f   :  { %v6430_v14 = vadd.f32 %v6426_v13, %v6354_v30  ;;  %v8229_v15 = vpop.f32.mrb[65].mxu0 }
0xa091   :  { %9195 = vtanh.f32 %v6430_v14  ;;  %v7172_v18 = vmul.f32 -1.442695, %v6430_v14 }
0xa093   :  { %9197 = vpow2.f32 %v7172_v18 }
0xa09b   :  { %v9196_v17 = vpop.eup %9195 }
0xa09c   :  { %6440 = vrot.lane.b32.xlu0 %v9196_v17, %s9270_s23 }
0xa09d   :  { %v9198_v20 = vpop.eup %9197 }
0xa09e   :  { %v6434_v21 = vadd.f32 1.0, %v9198_v20 }
0xa0a0   :  { %9199 = vrcp.f32 %v6434_v21 }
0xa0aa   :  { %v9200_v5 = vpop.eup %9199 }
0xa0ab   :  { %v6438_v23 = vmul.f32 %v9200_v5, %v6347_v10 }
0xa10e   :  { %v6441_v45 = vpop.permute.xlu0 %6440 }
0xa10f   :  { %v6443_v47 = vmul.f32 %v9200_v5, %v6441_v45 }
0xa111   :  { %6445 = vrot.lane.b32.xlu1 %v6443_v47, %s9271_s24  ;;  %v6758_v47 = vld [vmem:[#allocation2 + $0x1f] sm:$0x1] }
0xa183   :  { %v6446_v25 = vpop.permute.xlu1 %6445 }
0xa184   :  { %v6448_v26 = vadd.f32 %v6446_v25, %v6438_v23 }
0xa186   :  { %9201 = vtanh.f32 %v6448_v26 }
0xa190   :  { %v9202_v27 = vpop.eup %9201 }
0xa191   :  { %6451 = vrot.lane.b32.xlu0 %v9202_v27, %s9270_s23 }
0xa203   :  { %v6452_v28 = vpop.permute.xlu0 %6451 }
0xa204   :  { %v6454_v31 = vmul.f32 %v9200_v5, %v6452_v28 }
0xa206   :  { %6457 = vrot.lane.b32.xlu1 %v6454_v31, %s9271_s24 }
0xa278   :  { %v6458_v32 = vpop.permute.xlu1 %6457 }
0xa279   :  { %8239 = vmatmul.mubr.msk.f32.vlgmr.msra.gmra.mrb[62].mxu1 %vm214_vm6, %v6458_v32 }
0xa27a   :  { %8694 = vmatpush3.bf16.msra.mxu1 %v9858_v40  ;;  %8260 = vmatprep.mubr.msk.f32.mxu1 %vm9266_vm1, %v9267_v9 }
0xa27b   :  { %8695 = vmatprep.subr.bf16.mxu1 %v9265_v8 }
0xa27e   :  { %8697 = vmatpush3.bf16.msra.mxu1 %v9868_v43 }
0xa27f   :  { %8704 = vmatprep.subr.bf16.mxu1 %v9265_v8 }
0xa34c   :  { %v6527_v34 = vpop.f32.mrb[62].mxu1 }
0xa34d   :  { %v6531_v35 = vadd.f32 %v6527_v34, %v6455_v33  ;;  %v8240_v36 = vpop.f32.mrb[63].mxu1 }
0xa34f   :  { %9203 = vtanh.f32 %v6531_v35  ;;  %v7174_v22 = vmul.f32 -1.442695, %v6531_v35 }
0xa351   :  { %9205 = vpow2.f32 %v7174_v22 }
0xa359   :  { %v9204_v37 = vpop.eup %9203 }
0xa35a   :  { %6541 = vrot.lane.b32.xlu0 %v9204_v37, %s9270_s23 }
0xa35b   :  { %v9206_v38 = vpop.eup %9205 }
0xa35c   :  { %v6535_v39 = vadd.f32 1.0, %v9206_v38  ;;  %v6859_v38 = vld [vmem:[%s10288_s9] sm:$0xff] }
0xa35e   :  { %9207 = vrcp.f32 %v6535_v39  ;;  %v6860_v39 = vld [vmem:[%s10288_s9 + $0x8] sm:$0xff] }
0xa368   :  { %v9208_v41 = vpop.eup %9207 }
0xa369   :  { %v6539_v46 = vmul.f32 %v9208_v41, %v6448_v26 }
0xa3cc   :  { %v6542_v42 = vpop.permute.xlu0 %6541 }
0xa3cd   :  { %v6544_v44 = vmul.f32 %v9208_v41, %v6542_v42  ;;  %v8705_v42 = vpack.c.bf16 %v6860_v39, %v6859_v38 }
0xa3cf   :  { %6546 = vrot.lane.b32.xlu1 %v6544_v44, %s9271_s24  ;;  %v6862_v44 = vld [vmem:[%s10288_s9 + $0x18] sm:$0xff] }
0xa441   :  { %v6547_v6 = vpop.permute.xlu1 %6546 }
0xa442   :  { %v6549_v48 = vadd.f32 %v6547_v6, %v6539_v46 }
0xa444   :  { %9209 = vtanh.f32 %v6549_v48 }
0xa44e   :  { %v9210_v49 = vpop.eup %9209 }
0xa44f   :  { %6552 = vrot.lane.b32.xlu0 %v9210_v49, %s9270_s23  ;;  %v6941_v49 = vld [vmem:[%s10290_s11 + $0x8] sm:$0xff] }
0xa4c1   :  { %v6553_v50 = vpop.permute.xlu0 %6552 }
0xa4c2   :  { %v6555_v51 = vmul.f32 %v9208_v41, %v6553_v50  ;;  %v6861_v41 = vld [vmem:[%s10288_s9 + $0x10] sm:$0xff] }
0xa4c3   :  { %v8708_v46 = vpack.c.bf16 %v6862_v44, %v6861_v41 }
0xa4c4   :  { %6558 = vrot.lane.b32.xlu1 %v6555_v51, %s9271_s24 }
0xa536   :  { %v6559_v52 = vpop.permute.xlu1 %6558 }
0xa537   :  { %8250 = vmatmul.mubr.msk.f32.vlgmr.msra.gmra.mrb[66].mxu0 %vm214_vm6, %v6559_v52 }
0xa538   :  { %8700 = vmatpush3.bf16.msra.mxu0 %v9858_v40  ;;  %8271 = vmatprep.mubr.msk.f32.mxu0 %vm9266_vm1, %v9267_v9 }
0xa539   :  { %8701 = vmatprep.subr.bf16.mxu0 %v9265_v8 }
0xa53c   :  { %8703 = vmatpush3.bf16.msra.mxu0 %v9868_v43 }
0xa53d   :  { %8710 = vmatprep.subr.bf16.mxu0 %v9265_v8 }
0xa60a   :  { %v6628_v54 = vpop.f32.mrb[66].mxu0 }
0xa60b   :  { %v6632_v55 = vadd.f32 %v6628_v54, %v6556_v53  ;;  %v8251_v56 = vpop.f32.mrb[67].mxu0  ;;  %v6942_v53 = vld [vmem:[%s10290_s11 + $0x10] sm:$0xf]  ;;  %v6863_v54 = vld [vmem:[%s10289_s10] sm:$0x1] }
0xa60d   :  { %9211 = vtanh.f32 %v6632_v55  ;;  %v7176_v58 = vmul.f32 -1.442695, %v6632_v55 }
0xa60f   :  { %9213 = vpow2.f32 %v7176_v58  ;;  %v6943_v58 = vld [vmem:[%s10291_s12] sm:$0x1] }
0xa617   :  { %v9212_v57 = vpop.eup %9211 }
0xa618   :  { %6642 = vrot.lane.b32.xlu0 %v9212_v57, %s9270_s23 }
0xa619   :  { %v9214_v40 = vpop.eup %9213 }
0xa61a   :  { %v6636_v59 = vadd.f32 1.0, %v9214_v40 }
0xa61c   :  { %9215 = vrcp.f32 %v6636_v59 }
0xa626   :  { %v9216_v16 = vpop.eup %9215 }
0xa627   :  { %v6640_v43 = vmul.f32 %v9216_v16, %v6549_v48  ;;  %v6940_v48 = vld [vmem:[%s10290_s11] sm:$0xff]  ;;  %s9272_s11 = smov [#allocation4]  }
0xa628   :  { %v8711_v50 = vpack.c.bf16 %v6941_v49, %v6940_v48  ;;  %s7035_s10 = sshll.u32 %s9272_s11, 4  ;;  %s7036_s10 = int_to_ptr.vmem [resolvable:$true] %s7035_s10 }
0xa629   :  { %s9241_s26 = scalar_lea.vmem %s7036_s10, 16  ;;  %s9245_s8 = scalar_lea.vmem %s7036_s10, 32 }
0xa62a   :  { %p9242_p0 = scmp.ne.s32.totalorder %s7036_s10, %s9241_s26  ;;  %p9246_p1 = scmp.lt.s32.totalorder %s7036_s10, %s7036_s10 }
0xa62b   :  { %p9247_p2 = scmp.lt.s32.totalorder %s9245_s8, %s9241_s26 }
0xa62d   :  { %p9248_p3 = por %p9247_p2, %p9246_p1 }
0xa62f   :  { %p9249_p4 = pnand %p9248_p3, %p9242_p0 }
0xa68a   :  { %v6643_v60 = vpop.permute.xlu0 %6642 }
0xa68b   :  { %v6645_v61 = vmul.f32 %v9216_v16, %v6643_v60 }
0xa68d   :  { %6647 = vrot.lane.b32.xlu1 %v6645_v61, %s9271_s24 }
0xa6ff   :  { %v6648_v62 = vpop.permute.xlu1 %6647 }
0xa700   :  { %v6650_v63 = vadd.f32 %v6648_v62, %v6640_v43 }
0xa702   :  { %9217 = vtanh.f32 %v6650_v63 }
0xa70c   :  { %v9218_v19 = vpop.eup %9217 }
0xa70d   :  { %6653 = vrot.lane.b32.xlu0 %v9218_v19, %s9270_s23 }
0xa77f   :  { %v6654_v0 = vpop.permute.xlu0 %6653 }
0xa780   :  { %v6656_v1 = vmul.f32 %v9216_v16, %v6654_v0 }
0xa782   :  { %6659 = vrot.lane.b32.xlu1 %v6656_v1, %s9271_s24 }
0xa7f4   :  { %v6660_v2 = vpop.permute.xlu1 %6659 }
0xa7f5   :  { %8261 = vmatmul.mubr.msk.f32.vlgmr.msra.gmra.mrb[64].mxu1 %vm214_vm6, %v6660_v2 }
0xa7f6   :  { %8282 = vmatprep.mubr.msk.f32.mxu1 %vm9266_vm1, %v9267_v9  ;;  %8706 = vmatpush3.bf16.msra.mxu1 %v8705_v42 }
0xa7f7   :  { %8707 = vmatprep.subr.bf16.mxu1 %v9265_v8 }
0xa7fa   :  { %8709 = vmatpush3.bf16.msra.mxu1 %v8708_v46 }
0xa8c8   :  { %v6729_v4 = vpop.f32.mrb[64].mxu1 }
0xa8c9   :  { %v6733_v7 = vadd.f32 %v6729_v4, %v6657_v3  ;;  %v8262_v10 = vpop.f32.mrb[65].mxu1 }
0xa8cb   :  { %9219 = vtanh.f32 %v6733_v7  ;;  %v7178_v12 = vmul.f32 -1.442695, %v6733_v7 }
0xa8cd   :  { %9221 = vpow2.f32 %v7178_v12 }
0xa8d5   :  { %v9220_v11 = vpop.eup %9219 }
0xa8d6   :  { %6743 = vrot.lane.b32.xlu0 %v9220_v11, %s9270_s23 }
0xa8d7   :  { %v9222_v24 = vpop.eup %9221 }
0xa8d8   :  { %v6737_v29 = vadd.f32 1.0, %v9222_v24 }
0xa8da   :  { %9223 = vrcp.f32 %v6737_v29 }
0xa8e4   :  { %v9224_v30 = vpop.eup %9223 }
0xa8e5   :  { %v6741_v15 = vmul.f32 %v9224_v30, %v6650_v63 }
0xa948   :  { %v6744_v13 = vpop.permute.xlu0 %6743 }
0xa949   :  { %v6746_v14 = vmul.f32 %v9224_v30, %v6744_v13 }
0xa94b   :  { %6748 = vrot.lane.b32.xlu1 %v6746_v14, %s9271_s24 }
0xa9bd   :  { %v6749_v17 = vpop.permute.xlu1 %6748 }
0xa9be   :  { %v6751_v18 = vadd.f32 %v6749_v17, %v6741_v15 }
0xa9c0   :  { %9225 = vtanh.f32 %v6751_v18 }
0xa9ca   :  { %v9226_v20 = vpop.eup %9225 }
0xa9cb   :  { %6754 = vrot.lane.b32.xlu0 %v9226_v20, %s9270_s23 }
0xaa3d   :  { %v6755_v21 = vpop.permute.xlu0 %6754 }
0xaa3e   :  { %v6757_v5 = vmul.f32 %v9224_v30, %v6755_v21 }
0xaa40   :  { %6760 = vrot.lane.b32.xlu1 %v6757_v5, %s9271_s24 }
0xaab2   :  { %v6761_v45 = vpop.permute.xlu1 %6760 }
0xaab3   :  { %8272 = vmatmul.mubr.msk.f32.vlgmr.msra.gmra.mrb[68].mxu0 %vm214_vm6, %v6761_v45 }
0xaab4   :  { %8291 = vmatprep.mubr.msk.f32.mxu0 %vm9266_vm1, %v9267_v9  ;;  %8712 = vmatpush3.bf16.msra.mxu0 %v8711_v50 }
0xaab5   :  { %8289 = vmatprep.subr.mxu0 %v9267_v9 }
0xaab8   :  { %8290 = vmatpush3.msk.msra.mxu0 %vm74_vm2, %v6942_v53 }
0xab86   :  { %v6830_v23 = vpop.f32.mrb[68].mxu0 }
0xab87   :  { %v6834_v25 = vadd.f32 %v6830_v23, %v6758_v47  ;;  %v8273_v26 = vpop.f32.mrb[69].mxu0 }
0xab89   :  { %9227 = vtanh.f32 %v6834_v25  ;;  %v7180_v28 = vmul.f32 -1.442695, %v6834_v25 }
0xab8b   :  { %9229 = vpow2.f32 %v7180_v28 }
0xab93   :  { %v9228_v27 = vpop.eup %9227 }
0xab94   :  { %6844 = vrot.lane.b32.xlu0 %v9228_v27, %s9270_s23 }
0xab95   :  { %v9230_v31 = vpop.eup %9229 }
0xab96   :  { %v6838_v32 = vadd.f32 1.0, %v9230_v31 }
0xab98   :  { %9231 = vrcp.f32 %v6838_v32 }
0xaba2   :  { %v9232_v33 = vpop.eup %9231 }
0xaba3   :  { %v6842_v36 = vmul.f32 %v9232_v33, %v6751_v18 }
0xac06   :  { %v6845_v34 = vpop.permute.xlu0 %6844 }
0xac07   :  { %v6847_v35 = vmul.f32 %v9232_v33, %v6845_v34 }
0xac09   :  { %6849 = vrot.lane.b32.xlu1 %v6847_v35, %s9271_s24 }
0xac7b   :  { %v6850_v37 = vpop.permute.xlu1 %6849 }
0xac7c   :  { %v6852_v22 = vadd.f32 %v6850_v37, %v6842_v36 }
0xac7e   :  { %9233 = vtanh.f32 %v6852_v22 }
0xac88   :  { %v9234_v6 = vpop.eup %9233 }
0xac89   :  { %6855 = vrot.lane.b32.xlu0 %v9234_v6, %s9270_s23 }
0xacfb   :  { %v6856_v51 = vpop.permute.xlu0 %6855 }
0xacfc   :  { %v6858_v52 = vmul.f32 %v9232_v33, %v6856_v51 }
0xacfe   :  { %6865 = vrot.lane.b32.xlu1 %v6858_v52, %s9271_s24 }
0xad70   :  { %v6866_v8 = vpop.permute.xlu1 %6865 }
0xad71   :  { %8283 = vmatmul.mubr.msk.f32.vlgmr.msra.gmra.mrb[66].mxu1 %vm214_vm6, %v6866_v8 }
0xae44   :  { %v6935_v55 = vpop.f32.mrb[66].mxu1 }
0xae45   :  { %v6936_v56 = vadd.f32 %v6935_v55, %v6863_v54  ;;  %v8284_v9 = vpop.f32.mrb[67].mxu1 }
0xae47   :  { %v6939_v57 = vmax.f32 %v6936_v56, 0.0 }
0xae49   :  { %8292 = vmatmul.mubr.msk.f32.vlgmr.msra.gmra.mrb[70].mxu0 %vm6944_vm7, %v6939_v57 }
0xaf1c   :  { %v7017_v40 = vpop.f32.mrb[70].mxu0 }
0xaf1d   :  { %v7018_v59 = vadd.f32 %v7017_v40, %v6943_v58  ;;  %v8293_v16 = vpop.f32.mrb[71].mxu0 }
0xaf1f   :  { %v7184_v60 = vmul.f32 -1.442695, %v7018_v59 }
0xaf21   :  { %9235 = vpow2.f32 %v7184_v60 }
0xaf2b   :  { %v9236_v61 = vpop.eup %9235 }
0xaf2c   :  { %v7024_v43 = vadd.f32 1.0, %v9236_v61 }
0xaf2e   :  { %9237 = vrcp.f32 %v7024_v43 }
0xaf38   :  { %v9238_v62 = vpop.eup %9237 }
0xaf39   :  { %7028 = vst.msk [vmem:[#allocation4] sm:$0x1] %vm7027_vm8, %v9238_v62 }
0xaf3a   :  { %9252 = shalt.err (!%p9249_p4)
}
0xaf3b   :  { %s9253_s28 = scalar_lea.hbm %s10292_s13, 16 }
0xaf3c   :  { %p9254_p5 = scmp.ne.s32.totalorder %s10292_s13, %s9253_s28  ;;  %p9257_p6 = scmp.lt.u32.totalorder %s9253_s28, %s10292_s13 }
0xaf3e   :  { %p9259_p7 = pnand %p9257_p6, %p9254_p5 }
0xaf40   :  { %9262 = shalt.err (!%p9259_p7)
}
0xaf41   :  { %7038 = dma.vmem_to_hbm [thread:$0]  %s7036_s10, 16, %s10292_s13, [#allocation5]  }
0xaf42   :  { %9263 = dma.done.wait [#allocation5], 16  }
0xaf43   :  { %9264 = vsyncadd [#allocation5], 4294967280 }
0xaf44   :  { %7042 = vsyncpa [#allocation5], 1 }

</bundles_post_ra>
